<compile_context>
chip_gen: v7x
topology: tpu7x:2x2x1
jax: 0.10.0
libtpu: 0.0.40
codegen_flags: <defaults>
</compile_context>

<pallas_src>
import math

import jax
import jax.numpy as jnp
from jax.experimental import pallas as pl
from jax.experimental.pallas import tpu as pltpu

LEAKY_SLOPE = 0.01  # nn.LeakyReLU default

# (dr, dc, needs_column_parity_shift) for the 7 hexagonal taps, in weight order.
_TAPS = (
    (-1, 0, False), (0, 0, False), (1, 0, False),   # centre column (3x1)
    (-1, -1, True), (0, -1, True),                   # left column
    (-1, 1, True), (0, 1, True),                     # right column
)


# --------------------------------------------------------------------------- #
# Fused ResidualBlock kernel
# --------------------------------------------------------------------------- #
def _make_resblock_kernel(H, W, Cin, Cout, has_skip_conv, compute_dtype):
    HW = H * W

    def leaky(v):
        return jnp.where(v >= 0, v, LEAKY_SLOPE * v)

    def kernel(*refs):
        if has_skip_conv:
            (x_ref, w1_ref, b1_ref, w2_ref, b2_ref,
             ws_ref, bs_ref, o_ref, y1_ref) = refs
        else:
            (x_ref, w1_ref, b1_ref, w2_ref, b2_ref, o_ref, y1_ref) = refs

        # odd-column mask for the hexagonal half-pixel shift (built in-kernel, VPU work)
        col = jax.lax.broadcasted_iota(jnp.int32, (H, W, 1), 1)
        odd = (col % 2) == 1

        def hex_conv(read, w_ref, b_ref, cin):
            """7-tap hex conv as 7 accumulated MXU matmuls; f32 accumulation."""
            acc = jnp.zeros((HW, Cout), jnp.float32)
            for t, (dr, dc, adj) in enumerate(_TAPS):
                if adj:
                    tap = jnp.where(odd, read(dr + 1, dc), read(dr, dc))
                else:
                    tap = read(dr, dc)
                tap = tap.reshape(HW, cin).astype(compute_dtype)
                acc = acc + jnp.dot(tap, w_ref[t],
                                    preferred_element_type=jnp.float32)
            return acc + b_ref[...].astype(jnp.float32)

        # taps read straight from the haloed input tile in VMEM (no host im2col)
        read_x = lambda dr, dc: x_ref[0, 1 + dr:1 + dr + H, 1 + dc:1 + dc + W, :]

        # conv1 + folded BN1 + LeakyReLU
        y1 = leaky(hex_conv(read_x, w1_ref, b1_ref, Cin))          # (HW, Cout) f32

        # stage y1 (with zero halo) in VMEM scratch so conv2 can gather its taps
        y1_ref[...] = jnp.zeros_like(y1_ref)
        y1_ref[1:1 + H, 1:1 + W, :] = y1.reshape(H, W, Cout).astype(y1_ref.dtype)
        read_y = lambda dr, dc: y1_ref[1 + dr:1 + dr + H, 1 + dc:1 + dc + W, :]

        # conv2 + folded BN2
        y2 = hex_conv(read_y, w2_ref, b2_ref, Cout)                # (HW, Cout) f32

        # skip branch: identity (Cin == Cout) or hex conv + folded BN
        if has_skip_conv:
            res = hex_conv(read_x, ws_ref, bs_ref, Cin)
        else:
            res = read_x(0, 0).reshape(HW, Cout).astype(jnp.float32)

        out = leaky(y2 + res)                                      # (HW, Cout) f32
        # lane-dense store: (Cout, H*W); H*W is a multiple of 128 in typical use.
        o_ref[0] = out.T.astype(o_ref.dtype)

    return kernel


# --------------------------------------------------------------------------- #
# Host-side wrapper
# --------------------------------------------------------------------------- #
def _fold_bn(w, b, bn, eps=1e-5):
    """Fold eval-mode BatchNorm into conv weights: (7,Cin,Cout),(Cout,)."""
    s = bn["gamma"] / jnp.sqrt(bn["var"] + eps)
    return w * s[None, None, :], (b - bn["mean"]) * s + bn["beta"]


def residual_block(x_nchw, params, compute_dtype=jnp.bfloat16):
    """PyTorch ResidualBlock forward. x_nchw: (B, Cin, H, W) -> (B, Cout, H, W)."""
    B, Cin, H, W = x_nchw.shape
    Cout = params["conv1_w"].shape[-1]
    has_skip_conv = "skip_w" in params
    if not has_skip_conv:
        assert Cin == Cout, "identity skip requires in_channels == out_channels"

    w1, b1 = _fold_bn(params["conv1_w"], params["conv1_b"], params["bn1"])
    w2, b2 = _fold_bn(params["conv2_w"], params["conv2_b"], params["bn2"])

    # channels-last with a 1-pixel zero halo (cheap; replaces the 7x im2col blowup)
    x_pad = jnp.pad(jnp.transpose(x_nchw, (0, 2, 3, 1)),
                    ((0, 0), (1, 1), (1, 1), (0, 0)))

    args = [
        x_pad,
        w1.astype(compute_dtype), b1.reshape(1, Cout).astype(jnp.float32),
        w2.astype(compute_dtype), b2.reshape(1, Cout).astype(jnp.float32),
    ]
    in_specs = [
        pl.BlockSpec((1, H + 2, W + 2, Cin), lambda b: (b, 0, 0, 0)),
        pl.BlockSpec((7, Cin, Cout), lambda b: (0, 0, 0)),
        pl.BlockSpec((1, Cout), lambda b: (0, 0)),
        pl.BlockSpec((7, Cout, Cout), lambda b: (0, 0, 0)),
        pl.BlockSpec((1, Cout), lambda b: (0, 0)),
    ]
    if has_skip_conv:
        ws, bs = _fold_bn(params["skip_w"], params["skip_b"], params["skip_bn"])
        args += [ws.astype(compute_dtype), bs.reshape(1, Cout).astype(jnp.float32)]
        in_specs += [
            pl.BlockSpec((7, Cin, Cout), lambda b: (0, 0, 0)),
            pl.BlockSpec((1, Cout), lambda b: (0, 0)),
        ]

    out = pl.pallas_call(
        _make_resblock_kernel(H, W, Cin, Cout, has_skip_conv, compute_dtype),
        out_shape=jax.ShapeDtypeStruct((B, Cout, H * W), x_nchw.dtype),
        grid=(B,),
        in_specs=in_specs,
        out_specs=pl.BlockSpec((1, Cout, H * W), lambda b: (b, 0, 0)),
        scratch_shapes=[pltpu.VMEM((H + 2, W + 2, Cout), compute_dtype)],
        compiler_params=pltpu.CompilerParams(dimension_semantics=("parallel",)),
    )(*args)
    # (B, Cout, H*W) is already lane-dense and reshapes for free to PyTorch NCHW.
    return out.reshape(B, Cout, H, W)


# --------------------------------------------------------------------------- #
# Pure-JAX reference (explicit BatchNorm, same hex convention) for validation
# --------------------------------------------------------------------------- #
def _hex_conv_ref(x_nhwc, w, b):
    B, H, W, Cin = x_nhwc.shape
    xp = jnp.pad(x_nhwc, ((0, 0), (1, 1), (1, 1), (0, 0)))

    def sh(dr, dc):
        return xp[:, 1 + dr:1 + dr + H, 1 + dc:1 + dc + W, :]

    odd = ((jnp.arange(W) % 2) == 1)[None, None, :, None]
    y = jnp.zeros(x_nhwc.shape[:3] + (w.shape[-1],), jnp.float32) + b
    for t, (dr, dc, adj) in enumerate(_TAPS):
        tap = jnp.where(odd, sh(dr + 1, dc), sh(dr, dc)) if adj else sh(dr, dc)
        y = y + jnp.einsum("bhwc,cd->bhwd", tap, w[t])
    return y


def _bn_ref(x, bn, eps=1e-5):
    return (x - bn["mean"]) / jnp.sqrt(bn["var"] + eps) * bn["gamma"] + bn["beta"]


def residual_block_ref(x_nchw, p):
    leaky = lambda v: jnp.where(v >= 0, v, LEAKY_SLOPE * v)
    x = jnp.transpose(x_nchw, (0, 2, 3, 1))
    y = leaky(_bn_ref(_hex_conv_ref(x, p["conv1_w"], p["conv1_b"]), p["bn1"]))
    y = _bn_ref(_hex_conv_ref(y, p["conv2_w"], p["conv2_b"]), p["bn2"])
    if "skip_w" in p:
        res = _bn_ref(_hex_conv_ref(x, p["skip_w"], p["skip_b"]), p["skip_bn"])
    else:
        res = x
    return jnp.transpose(leaky(y + res), (0, 3, 1, 2))


# --------------------------------------------------------------------------- #
# Deterministic parameter init
# --------------------------------------------------------------------------- #
def init_resblock_params(key, in_channels, out_channels):
    ks = jax.random.split(key, 9)

    def hexw(k, cin, cout):
        std = math.sqrt(2.0 / (7 * cin + cout))
        return (std * jax.random.normal(k, (7, cin, cout))).astype(jnp.float32)

    def bn(k, c):
        k1, k2, k3, k4 = jax.random.split(k, 4)
        return dict(gamma=1.0 + 0.1 * jax.random.normal(k1, (c,)),
                    beta=0.1 * jax.random.normal(k2, (c,)),
                    mean=0.1 * jax.random.normal(k3, (c,)),
                    var=jnp.abs(1.0 + 0.1 * jax.random.normal(k4, (c,))))

    p = dict(
        conv1_w=hexw(ks[0], in_channels, out_channels),
        conv1_b=0.1 * jax.random.normal(ks[1], (out_channels,)),
        bn1=bn(ks[2], out_channels),
        conv2_w=hexw(ks[3], out_channels, out_channels),
        conv2_b=0.1 * jax.random.normal(ks[4], (out_channels,)),
        bn2=bn(ks[5], out_channels),
    )
    if in_channels != out_channels:
        p["skip_w"] = hexw(ks[6], in_channels, out_channels)
        p["skip_b"] = 0.1 * jax.random.normal(ks[7], (out_channels,))
        p["skip_bn"] = bn(ks[8], out_channels)
    return p


# --------------------------------------------------------------------------- #
if __name__ == "__main__":
    key = jax.random.PRNGKey(0)
    kx1, kp1, kx2, kp2 = jax.random.split(key, 4)

    # Case 1: identity skip (in_channels == out_channels), as used in Model_2_0.
    B, C, H, W = 2, 47, 16, 16
    x1 = jax.random.normal(kx1, (B, C, H, W), jnp.float32)
    p1 = init_resblock_params(kp1, C, C)
    out1 = jax.jit(lambda v: residual_block(v, p1))(x1)
    jax.block_until_ready(out1)
    assert out1.shape == (B, C, H, W), out1.shape
    assert bool(jnp.all(jnp.isfinite(out1)))
    ref1 = residual_block_ref(x1, p1)
    assert bool(jnp.all(jnp.abs(out1 - ref1) <= 0.1 + 0.05 * jnp.abs(ref1))), \
        float(jnp.max(jnp.abs(out1 - ref1)))

    # Case 2: channel-changing block -> conv + BN skip path.
    Cin2, Cout2 = 24, 32
    x2 = jax.random.normal(kx2, (B, Cin2, H, W), jnp.float32)
    p2 = init_resblock_params(kp2, Cin2, Cout2)
    out2 = jax.jit(lambda v: residual_block(v, p2))(x2)
    jax.block_until_ready(out2)
    assert out2.shape == (B, Cout2, H, W), out2.shape
    assert bool(jnp.all(jnp.isfinite(out2)))
    ref2 = residual_block_ref(x2, p2)
    assert bool(jnp.all(jnp.abs(out2 - ref2) <= 0.1 + 0.05 * jnp.abs(ref2))), \
        float(jnp.max(jnp.abs(out2 - ref2)))

    print("KERNEL_OK")
</pallas_src>

<mosaic_0001>
module attributes {stable_mosaic.version = 11 : i64} {
  func.func @kernel(%arg0: i32, %arg1: memref<1x18x18x47xf32, #tpu.memory_space<vmem>>, %arg2: memref<7x47x47xbf16, #tpu.memory_space<vmem>>, %arg3: memref<1x47xf32, #tpu.memory_space<vmem>>, %arg4: memref<7x47x47xbf16, #tpu.memory_space<vmem>>, %arg5: memref<1x47xf32, #tpu.memory_space<vmem>>, %arg6: memref<1x47x256xf32, #tpu.memory_space<vmem>>, %arg7: memref<18x18x47xbf16, #tpu.memory_space<vmem>>) attributes {dimension_semantics = [#tpu.dimension_semantics<parallel>], iteration_bounds = array<i64: 2>, scalar_prefetch = 0 : i64, scratch_operands = 1 : i64, tpu.core_type = #tpu.core_type<tc>, window_params = [{transform_indices = @transform_0, window_bounds = array<i64: 1, 18, 18, 47>}, {pipeline_mode = #tpu.pipeline_mode<synchronous>, transform_indices = @transform_1, window_bounds = array<i64: 7, 47, 47>}, {pipeline_mode = #tpu.pipeline_mode<synchronous>, transform_indices = @transform_2, window_bounds = array<i64: 1, 47>}, {pipeline_mode = #tpu.pipeline_mode<synchronous>, transform_indices = @transform_3, window_bounds = array<i64: 7, 47, 47>}, {pipeline_mode = #tpu.pipeline_mode<synchronous>, transform_indices = @transform_4, window_bounds = array<i64: 1, 47>}, {transform_indices = @transform_5, window_bounds = array<i64: 1, 47, 256>}]} {
    %0 = tpu.iota {dimensions = array<i32: 1>} : vector<16x16x1xi32>
    %c2_i32 = arith.constant 2 : i32
    %c0_i32 = arith.constant 0 : i32
    %1 = arith.cmpi eq, %c2_i32, %c0_i32 : i32
    %c1_i32 = arith.constant 1 : i32
    %2 = arith.select %1, %c1_i32, %c2_i32 : i32
    %3 = vector.broadcast %2 : i32 to vector<16x16x1xi32>
    %4 = arith.remsi %0, %3 : vector<16x16x1xi32>
    %c0_i32_0 = arith.constant 0 : i32
    %5 = vector.broadcast %c0_i32_0 : i32 to vector<16x16x1xi32>
    %6 = arith.cmpi ne, %4, %5 : vector<16x16x1xi32>
    %c0_i32_1 = arith.constant 0 : i32
    %7 = vector.broadcast %c0_i32_1 : i32 to vector<16x16x1xi32>
    %8 = arith.cmpi slt, %4, %7 : vector<16x16x1xi32>
    %c0_i32_2 = arith.constant 0 : i32
    %9 = arith.cmpi slt, %2, %c0_i32_2 : i32
    %10 = vector.broadcast %9 : i1 to vector<16x16x1xi1>
    %11 = vector.broadcast %10 : vector<16x16x1xi1> to vector<16x16x1xi1>
    %12 = arith.xori %8, %11 : vector<16x16x1xi1>
    %13 = arith.andi %12, %6 : vector<16x16x1xi1>
    %14 = vector.broadcast %2 : i32 to vector<16x16x1xi32>
    %15 = arith.addi %4, %14 : vector<16x16x1xi32>
    %16 = arith.select %13, %15, %4 : vector<16x16x1xi1>, vector<16x16x1xi32>
    %c1_i32_3 = arith.constant 1 : i32
    %17 = vector.broadcast %c1_i32_3 : i32 to vector<16x16x1xi32>
    %18 = arith.cmpi eq, %16, %17 : vector<16x16x1xi32>
    %cst = arith.constant 0.000000e+00 : f32
    %19 = vector.broadcast %cst : f32 to vector<256x47xf32>
    %c0 = arith.constant 0 : index
    %c0_4 = arith.constant 0 : index
    %c1 = arith.constant 1 : index
    %c0_5 = arith.constant 0 : index
    %20 = vector.load %arg1[%c0, %c0_4, %c1, %c0_5] : memref<1x18x18x47xf32, #tpu.memory_space<vmem>>, vector<1x16x16x47xf32>
    %21 = vector.shape_cast %20 : vector<1x16x16x47xf32> to vector<16x16x47xf32>
    %22 = vector.shape_cast %21 : vector<16x16x47xf32> to vector<256x47xf32>
    %23 = arith.truncf %22 : vector<256x47xf32> to vector<256x47xbf16>
    %c0_6 = arith.constant 0 : index
    %c0_7 = arith.constant 0 : index
    %c0_8 = arith.constant 0 : index
    %24 = vector.load %arg2[%c0_6, %c0_7, %c0_8] : memref<7x47x47xbf16, #tpu.memory_space<vmem>>, vector<1x47x47xbf16>
    %25 = vector.shape_cast %24 : vector<1x47x47xbf16> to vector<47x47xbf16>
    %cst_9 = arith.constant dense<0.000000e+00> : vector<256x47xf32>
    %26 = tpu.matmul %23, %25, %cst_9 {dimension_numbers = #tpu.dot_dimension_numbers<[1], [0], [0], [1], [0, 0, 1, 1], [], []>} : vector<256x47xbf16>, vector<47x47xbf16>, vector<256x47xf32> -> vector<256x47xf32>
    %27 = arith.addf %19, %26 : vector<256x47xf32>
    %c0_10 = arith.constant 0 : index
    %c1_11 = arith.constant 1 : index
    %c1_12 = arith.constant 1 : index
    %c0_13 = arith.constant 0 : index
    %28 = vector.load %arg1[%c0_10, %c1_11, %c1_12, %c0_13] : memref<1x18x18x47xf32, #tpu.memory_space<vmem>>, vector<1x16x16x47xf32>
    %29 = vector.shape_cast %28 : vector<1x16x16x47xf32> to vector<16x16x47xf32>
    %30 = vector.shape_cast %29 : vector<16x16x47xf32> to vector<256x47xf32>
    %31 = arith.truncf %30 : vector<256x47xf32> to vector<256x47xbf16>
    %c1_14 = arith.constant 1 : index
    %c0_15 = arith.constant 0 : index
    %c0_16 = arith.constant 0 : index
    %32 = vector.load %arg2[%c1_14, %c0_15, %c0_16] : memref<7x47x47xbf16, #tpu.memory_space<vmem>>, vector<1x47x47xbf16>
    %33 = vector.shape_cast %32 : vector<1x47x47xbf16> to vector<47x47xbf16>
    %cst_17 = arith.constant dense<0.000000e+00> : vector<256x47xf32>
    %34 = tpu.matmul %31, %33, %cst_17 {dimension_numbers = #tpu.dot_dimension_numbers<[1], [0], [0], [1], [0, 0, 1, 1], [], []>} : vector<256x47xbf16>, vector<47x47xbf16>, vector<256x47xf32> -> vector<256x47xf32>
    %35 = arith.addf %27, %34 : vector<256x47xf32>
    %c0_18 = arith.constant 0 : index
    %c2 = arith.constant 2 : index
    %c1_19 = arith.constant 1 : index
    %c0_20 = arith.constant 0 : index
    %36 = vector.load %arg1[%c0_18, %c2, %c1_19, %c0_20] : memref<1x18x18x47xf32, #tpu.memory_space<vmem>>, vector<1x16x16x47xf32>
    %37 = vector.shape_cast %36 : vector<1x16x16x47xf32> to vector<16x16x47xf32>
    %38 = vector.shape_cast %37 : vector<16x16x47xf32> to vector<256x47xf32>
    %39 = arith.truncf %38 : vector<256x47xf32> to vector<256x47xbf16>
    %c2_21 = arith.constant 2 : index
    %c0_22 = arith.constant 0 : index
    %c0_23 = arith.constant 0 : index
    %40 = vector.load %arg2[%c2_21, %c0_22, %c0_23] : memref<7x47x47xbf16, #tpu.memory_space<vmem>>, vector<1x47x47xbf16>
    %41 = vector.shape_cast %40 : vector<1x47x47xbf16> to vector<47x47xbf16>
    %cst_24 = arith.constant dense<0.000000e+00> : vector<256x47xf32>
    %42 = tpu.matmul %39, %41, %cst_24 {dimension_numbers = #tpu.dot_dimension_numbers<[1], [0], [0], [1], [0, 0, 1, 1], [], []>} : vector<256x47xbf16>, vector<47x47xbf16>, vector<256x47xf32> -> vector<256x47xf32>
    %43 = arith.addf %35, %42 : vector<256x47xf32>
    %c0_25 = arith.constant 0 : index
    %c1_26 = arith.constant 1 : index
    %c0_27 = arith.constant 0 : index
    %c0_28 = arith.constant 0 : index
    %44 = vector.load %arg1[%c0_25, %c1_26, %c0_27, %c0_28] : memref<1x18x18x47xf32, #tpu.memory_space<vmem>>, vector<1x16x16x47xf32>
    %45 = vector.shape_cast %44 : vector<1x16x16x47xf32> to vector<16x16x47xf32>
    %c0_29 = arith.constant 0 : index
    %c0_30 = arith.constant 0 : index
    %c0_31 = arith.constant 0 : index
    %c0_32 = arith.constant 0 : index
    %46 = vector.load %arg1[%c0_29, %c0_30, %c0_31, %c0_32] : memref<1x18x18x47xf32, #tpu.memory_space<vmem>>, vector<1x16x16x47xf32>
    %47 = vector.shape_cast %46 : vector<1x16x16x47xf32> to vector<16x16x47xf32>
    %48 = vector.shape_cast %18 : vector<16x16x1xi1> to vector<16x16x1xi1>
    %49 = vector.broadcast %48 : vector<16x16x1xi1> to vector<16x16x47xi1>
    %50 = arith.select %49, %45, %47 : vector<16x16x47xi1>, vector<16x16x47xf32>
    %51 = vector.shape_cast %50 : vector<16x16x47xf32> to vector<256x47xf32>
    %52 = arith.truncf %51 : vector<256x47xf32> to vector<256x47xbf16>
    %c3 = arith.constant 3 : index
    %c0_33 = arith.constant 0 : index
    %c0_34 = arith.constant 0 : index
    %53 = vector.load %arg2[%c3, %c0_33, %c0_34] : memref<7x47x47xbf16, #tpu.memory_space<vmem>>, vector<1x47x47xbf16>
    %54 = vector.shape_cast %53 : vector<1x47x47xbf16> to vector<47x47xbf16>
    %cst_35 = arith.constant dense<0.000000e+00> : vector<256x47xf32>
    %55 = tpu.matmul %52, %54, %cst_35 {dimension_numbers = #tpu.dot_dimension_numbers<[1], [0], [0], [1], [0, 0, 1, 1], [], []>} : vector<256x47xbf16>, vector<47x47xbf16>, vector<256x47xf32> -> vector<256x47xf32>
    %56 = arith.addf %43, %55 : vector<256x47xf32>
    %c0_36 = arith.constant 0 : index
    %c2_37 = arith.constant 2 : index
    %c0_38 = arith.constant 0 : index
    %c0_39 = arith.constant 0 : index
    %57 = vector.load %arg1[%c0_36, %c2_37, %c0_38, %c0_39] : memref<1x18x18x47xf32, #tpu.memory_space<vmem>>, vector<1x16x16x47xf32>
    %58 = vector.shape_cast %57 : vector<1x16x16x47xf32> to vector<16x16x47xf32>
    %c0_40 = arith.constant 0 : index
    %c1_41 = arith.constant 1 : index
    %c0_42 = arith.constant 0 : index
    %c0_43 = arith.constant 0 : index
    %59 = vector.load %arg1[%c0_40, %c1_41, %c0_42, %c0_43] : memref<1x18x18x47xf32, #tpu.memory_space<vmem>>, vector<1x16x16x47xf32>
    %60 = vector.shape_cast %59 : vector<1x16x16x47xf32> to vector<16x16x47xf32>
    %61 = vector.shape_cast %18 : vector<16x16x1xi1> to vector<16x16x1xi1>
    %62 = vector.broadcast %61 : vector<16x16x1xi1> to vector<16x16x47xi1>
    %63 = arith.select %62, %58, %60 : vector<16x16x47xi1>, vector<16x16x47xf32>
    %64 = vector.shape_cast %63 : vector<16x16x47xf32> to vector<256x47xf32>
    %65 = arith.truncf %64 : vector<256x47xf32> to vector<256x47xbf16>
    %c4 = arith.constant 4 : index
    %c0_44 = arith.constant 0 : index
    %c0_45 = arith.constant 0 : index
    %66 = vector.load %arg2[%c4, %c0_44, %c0_45] : memref<7x47x47xbf16, #tpu.memory_space<vmem>>, vector<1x47x47xbf16>
    %67 = vector.shape_cast %66 : vector<1x47x47xbf16> to vector<47x47xbf16>
    %cst_46 = arith.constant dense<0.000000e+00> : vector<256x47xf32>
    %68 = tpu.matmul %65, %67, %cst_46 {dimension_numbers = #tpu.dot_dimension_numbers<[1], [0], [0], [1], [0, 0, 1, 1], [], []>} : vector<256x47xbf16>, vector<47x47xbf16>, vector<256x47xf32> -> vector<256x47xf32>
    %69 = arith.addf %56, %68 : vector<256x47xf32>
    %c0_47 = arith.constant 0 : index
    %c1_48 = arith.constant 1 : index
    %c2_49 = arith.constant 2 : index
    %c0_50 = arith.constant 0 : index
    %70 = vector.load %arg1[%c0_47, %c1_48, %c2_49, %c0_50] : memref<1x18x18x47xf32, #tpu.memory_space<vmem>>, vector<1x16x16x47xf32>
    %71 = vector.shape_cast %70 : vector<1x16x16x47xf32> to vector<16x16x47xf32>
    %c0_51 = arith.constant 0 : index
    %c0_52 = arith.constant 0 : index
    %c2_53 = arith.constant 2 : index
    %c0_54 = arith.constant 0 : index
    %72 = vector.load %arg1[%c0_51, %c0_52, %c2_53, %c0_54] : memref<1x18x18x47xf32, #tpu.memory_space<vmem>>, vector<1x16x16x47xf32>
    %73 = vector.shape_cast %72 : vector<1x16x16x47xf32> to vector<16x16x47xf32>
    %74 = vector.shape_cast %18 : vector<16x16x1xi1> to vector<16x16x1xi1>
    %75 = vector.broadcast %74 : vector<16x16x1xi1> to vector<16x16x47xi1>
    %76 = arith.select %75, %71, %73 : vector<16x16x47xi1>, vector<16x16x47xf32>
    %77 = vector.shape_cast %76 : vector<16x16x47xf32> to vector<256x47xf32>
    %78 = arith.truncf %77 : vector<256x47xf32> to vector<256x47xbf16>
    %c5 = arith.constant 5 : index
    %c0_55 = arith.constant 0 : index
    %c0_56 = arith.constant 0 : index
    %79 = vector.load %arg2[%c5, %c0_55, %c0_56] : memref<7x47x47xbf16, #tpu.memory_space<vmem>>, vector<1x47x47xbf16>
    %80 = vector.shape_cast %79 : vector<1x47x47xbf16> to vector<47x47xbf16>
    %cst_57 = arith.constant dense<0.000000e+00> : vector<256x47xf32>
    %81 = tpu.matmul %78, %80, %cst_57 {dimension_numbers = #tpu.dot_dimension_numbers<[1], [0], [0], [1], [0, 0, 1, 1], [], []>} : vector<256x47xbf16>, vector<47x47xbf16>, vector<256x47xf32> -> vector<256x47xf32>
    %82 = arith.addf %69, %81 : vector<256x47xf32>
    %c0_58 = arith.constant 0 : index
    %c2_59 = arith.constant 2 : index
    %c2_60 = arith.constant 2 : index
    %c0_61 = arith.constant 0 : index
    %83 = vector.load %arg1[%c0_58, %c2_59, %c2_60, %c0_61] : memref<1x18x18x47xf32, #tpu.memory_space<vmem>>, vector<1x16x16x47xf32>
    %84 = vector.shape_cast %83 : vector<1x16x16x47xf32> to vector<16x16x47xf32>
    %c0_62 = arith.constant 0 : index
    %c1_63 = arith.constant 1 : index
    %c2_64 = arith.constant 2 : index
    %c0_65 = arith.constant 0 : index
    %85 = vector.load %arg1[%c0_62, %c1_63, %c2_64, %c0_65] : memref<1x18x18x47xf32, #tpu.memory_space<vmem>>, vector<1x16x16x47xf32>
    %86 = vector.shape_cast %85 : vector<1x16x16x47xf32> to vector<16x16x47xf32>
    %87 = vector.shape_cast %18 : vector<16x16x1xi1> to vector<16x16x1xi1>
    %88 = vector.broadcast %87 : vector<16x16x1xi1> to vector<16x16x47xi1>
    %89 = arith.select %88, %84, %86 : vector<16x16x47xi1>, vector<16x16x47xf32>
    %90 = vector.shape_cast %89 : vector<16x16x47xf32> to vector<256x47xf32>
    %91 = arith.truncf %90 : vector<256x47xf32> to vector<256x47xbf16>
    %c6 = arith.constant 6 : index
    %c0_66 = arith.constant 0 : index
    %c0_67 = arith.constant 0 : index
    %92 = vector.load %arg2[%c6, %c0_66, %c0_67] : memref<7x47x47xbf16, #tpu.memory_space<vmem>>, vector<1x47x47xbf16>
    %93 = vector.shape_cast %92 : vector<1x47x47xbf16> to vector<47x47xbf16>
    %cst_68 = arith.constant dense<0.000000e+00> : vector<256x47xf32>
    %94 = tpu.matmul %91, %93, %cst_68 {dimension_numbers = #tpu.dot_dimension_numbers<[1], [0], [0], [1], [0, 0, 1, 1], [], []>} : vector<256x47xbf16>, vector<47x47xbf16>, vector<256x47xf32> -> vector<256x47xf32>
    %95 = arith.addf %82, %94 : vector<256x47xf32>
    %c0_69 = arith.constant 0 : index
    %c0_70 = arith.constant 0 : index
    %96 = vector.load %arg3[%c0_69, %c0_70] : memref<1x47xf32, #tpu.memory_space<vmem>>, vector<1x47xf32>
    %97 = vector.broadcast %96 : vector<1x47xf32> to vector<256x47xf32>
    %98 = arith.addf %95, %97 : vector<256x47xf32>
    %cst_71 = arith.constant 0.000000e+00 : f32
    %99 = vector.broadcast %cst_71 : f32 to vector<256x47xf32>
    %100 = arith.cmpf oge, %98, %99 : vector<256x47xf32>
    %cst_72 = arith.constant 0.00999999977 : f32
    %101 = vector.broadcast %cst_72 : f32 to vector<256x47xf32>
    %102 = arith.mulf %101, %98 : vector<256x47xf32>
    %103 = arith.select %100, %98, %102 : vector<256x47xi1>, vector<256x47xf32>
    %cst_73 = arith.constant 0.000000e+00 : bf16
    %104 = vector.broadcast %cst_73 : bf16 to vector<18x18x47xbf16>
    %c0_74 = arith.constant 0 : index
    %c0_75 = arith.constant 0 : index
    %c0_76 = arith.constant 0 : index
    %105 = vector.load %arg7[%c0_74, %c0_75, %c0_76] : memref<18x18x47xbf16, #tpu.memory_space<vmem>>, vector<18x18x47xbf16>
    tpu.vector_store %arg7[%c0_74, %c0_75, %c0_76], %104 {strides = array<i32>} : memref<18x18x47xbf16, #tpu.memory_space<vmem>>, vector<18x18x47xbf16>,
    %106 = vector.shape_cast %103 : vector<256x47xf32> to vector<16x16x47xf32>
    %107 = arith.truncf %106 : vector<16x16x47xf32> to vector<16x16x47xbf16>
    %c1_77 = arith.constant 1 : index
    %c1_78 = arith.constant 1 : index
    %c0_79 = arith.constant 0 : index
    %108 = vector.load %arg7[%c1_77, %c1_78, %c0_79] : memref<18x18x47xbf16, #tpu.memory_space<vmem>>, vector<16x16x47xbf16>
    tpu.vector_store %arg7[%c1_77, %c1_78, %c0_79], %107 {strides = array<i32>} : memref<18x18x47xbf16, #tpu.memory_space<vmem>>, vector<16x16x47xbf16>,
    %cst_80 = arith.constant 0.000000e+00 : f32
    %109 = vector.broadcast %cst_80 : f32 to vector<256x47xf32>
    %c0_81 = arith.constant 0 : index
    %c1_82 = arith.constant 1 : index
    %c0_83 = arith.constant 0 : index
    %110 = vector.load %arg7[%c0_81, %c1_82, %c0_83] : memref<18x18x47xbf16, #tpu.memory_space<vmem>>, vector<16x16x47xbf16>
    %111 = vector.shape_cast %110 : vector<16x16x47xbf16> to vector<256x47xbf16>
    %c0_84 = arith.constant 0 : index
    %c0_85 = arith.constant 0 : index
    %c0_86 = arith.constant 0 : index
    %112 = vector.load %arg4[%c0_84, %c0_85, %c0_86] : memref<7x47x47xbf16, #tpu.memory_space<vmem>>, vector<1x47x47xbf16>
    %113 = vector.shape_cast %112 : vector<1x47x47xbf16> to vector<47x47xbf16>
    %cst_87 = arith.constant dense<0.000000e+00> : vector<256x47xf32>
    %114 = tpu.matmul %111, %113, %cst_87 {dimension_numbers = #tpu.dot_dimension_numbers<[1], [0], [0], [1], [0, 0, 1, 1], [], []>} : vector<256x47xbf16>, vector<47x47xbf16>, vector<256x47xf32> -> vector<256x47xf32>
    %115 = arith.addf %109, %114 : vector<256x47xf32>
    %c1_88 = arith.constant 1 : index
    %c1_89 = arith.constant 1 : index
    %c0_90 = arith.constant 0 : index
    %116 = vector.load %arg7[%c1_88, %c1_89, %c0_90] : memref<18x18x47xbf16, #tpu.memory_space<vmem>>, vector<16x16x47xbf16>
    %117 = vector.shape_cast %116 : vector<16x16x47xbf16> to vector<256x47xbf16>
    %c1_91 = arith.constant 1 : index
    %c0_92 = arith.constant 0 : index
    %c0_93 = arith.constant 0 : index
    %118 = vector.load %arg4[%c1_91, %c0_92, %c0_93] : memref<7x47x47xbf16, #tpu.memory_space<vmem>>, vector<1x47x47xbf16>
    %119 = vector.shape_cast %118 : vector<1x47x47xbf16> to vector<47x47xbf16>
    %cst_94 = arith.constant dense<0.000000e+00> : vector<256x47xf32>
    %120 = tpu.matmul %117, %119, %cst_94 {dimension_numbers = #tpu.dot_dimension_numbers<[1], [0], [0], [1], [0, 0, 1, 1], [], []>} : vector<256x47xbf16>, vector<47x47xbf16>, vector<256x47xf32> -> vector<256x47xf32>
    %121 = arith.addf %115, %120 : vector<256x47xf32>
    %c2_95 = arith.constant 2 : index
    %c1_96 = arith.constant 1 : index
    %c0_97 = arith.constant 0 : index
    %122 = vector.load %arg7[%c2_95, %c1_96, %c0_97] : memref<18x18x47xbf16, #tpu.memory_space<vmem>>, vector<16x16x47xbf16>
    %123 = vector.shape_cast %122 : vector<16x16x47xbf16> to vector<256x47xbf16>
    %c2_98 = arith.constant 2 : index
    %c0_99 = arith.constant 0 : index
    %c0_100 = arith.constant 0 : index
    %124 = vector.load %arg4[%c2_98, %c0_99, %c0_100] : memref<7x47x47xbf16, #tpu.memory_space<vmem>>, vector<1x47x47xbf16>
    %125 = vector.shape_cast %124 : vector<1x47x47xbf16> to vector<47x47xbf16>
    %cst_101 = arith.constant dense<0.000000e+00> : vector<256x47xf32>
    %126 = tpu.matmul %123, %125, %cst_101 {dimension_numbers = #tpu.dot_dimension_numbers<[1], [0], [0], [1], [0, 0, 1, 1], [], []>} : vector<256x47xbf16>, vector<47x47xbf16>, vector<256x47xf32> -> vector<256x47xf32>
    %127 = arith.addf %121, %126 : vector<256x47xf32>
    %c1_102 = arith.constant 1 : index
    %c0_103 = arith.constant 0 : index
    %c0_104 = arith.constant 0 : index
    %128 = vector.load %arg7[%c1_102, %c0_103, %c0_104] : memref<18x18x47xbf16, #tpu.memory_space<vmem>>, vector<16x16x47xbf16>
    %c0_105 = arith.constant 0 : index
    %c0_106 = arith.constant 0 : index
    %c0_107 = arith.constant 0 : index
    %129 = vector.load %arg7[%c0_105, %c0_106, %c0_107] : memref<18x18x47xbf16, #tpu.memory_space<vmem>>, vector<16x16x47xbf16>
    %130 = vector.shape_cast %18 : vector<16x16x1xi1> to vector<16x16x1xi1>
    %131 = vector.broadcast %130 : vector<16x16x1xi1> to vector<16x16x47xi1>
    %132 = arith.select %131, %128, %129 : vector<16x16x47xi1>, vector<16x16x47xbf16>
    %133 = vector.shape_cast %132 : vector<16x16x47xbf16> to vector<256x47xbf16>
    %c3_108 = arith.constant 3 : index
    %c0_109 = arith.constant 0 : index
    %c0_110 = arith.constant 0 : index
    %134 = vector.load %arg4[%c3_108, %c0_109, %c0_110] : memref<7x47x47xbf16, #tpu.memory_space<vmem>>, vector<1x47x47xbf16>
    %135 = vector.shape_cast %134 : vector<1x47x47xbf16> to vector<47x47xbf16>
    %cst_111 = arith.constant dense<0.000000e+00> : vector<256x47xf32>
    %136 = tpu.matmul %133, %135, %cst_111 {dimension_numbers = #tpu.dot_dimension_numbers<[1], [0], [0], [1], [0, 0, 1, 1], [], []>} : vector<256x47xbf16>, vector<47x47xbf16>, vector<256x47xf32> -> vector<256x47xf32>
    %137 = arith.addf %127, %136 : vector<256x47xf32>
    %c2_112 = arith.constant 2 : index
    %c0_113 = arith.constant 0 : index
    %c0_114 = arith.constant 0 : index
    %138 = vector.load %arg7[%c2_112, %c0_113, %c0_114] : memref<18x18x47xbf16, #tpu.memory_space<vmem>>, vector<16x16x47xbf16>
    %c1_115 = arith.constant 1 : index
    %c0_116 = arith.constant 0 : index
    %c0_117 = arith.constant 0 : index
    %139 = vector.load %arg7[%c1_115, %c0_116, %c0_117] : memref<18x18x47xbf16, #tpu.memory_space<vmem>>, vector<16x16x47xbf16>
    %140 = vector.shape_cast %18 : vector<16x16x1xi1> to vector<16x16x1xi1>
    %141 = vector.broadcast %140 : vector<16x16x1xi1> to vector<16x16x47xi1>
    %142 = arith.select %141, %138, %139 : vector<16x16x47xi1>, vector<16x16x47xbf16>
    %143 = vector.shape_cast %142 : vector<16x16x47xbf16> to vector<256x47xbf16>
    %c4_118 = arith.constant 4 : index
    %c0_119 = arith.constant 0 : index
    %c0_120 = arith.constant 0 : index
    %144 = vector.load %arg4[%c4_118, %c0_119, %c0_120] : memref<7x47x47xbf16, #tpu.memory_space<vmem>>, vector<1x47x47xbf16>
    %145 = vector.shape_cast %144 : vector<1x47x47xbf16> to vector<47x47xbf16>
    %cst_121 = arith.constant dense<0.000000e+00> : vector<256x47xf32>
    %146 = tpu.matmul %143, %145, %cst_121 {dimension_numbers = #tpu.dot_dimension_numbers<[1], [0], [0], [1], [0, 0, 1, 1], [], []>} : vector<256x47xbf16>, vector<47x47xbf16>, vector<256x47xf32> -> vector<256x47xf32>
    %147 = arith.addf %137, %146 : vector<256x47xf32>
    %c1_122 = arith.constant 1 : index
    %c2_123 = arith.constant 2 : index
    %c0_124 = arith.constant 0 : index
    %148 = vector.load %arg7[%c1_122, %c2_123, %c0_124] : memref<18x18x47xbf16, #tpu.memory_space<vmem>>, vector<16x16x47xbf16>
    %c0_125 = arith.constant 0 : index
    %c2_126 = arith.constant 2 : index
    %c0_127 = arith.constant 0 : index
    %149 = vector.load %arg7[%c0_125, %c2_126, %c0_127] : memref<18x18x47xbf16, #tpu.memory_space<vmem>>, vector<16x16x47xbf16>
    %150 = vector.shape_cast %18 : vector<16x16x1xi1> to vector<16x16x1xi1>
    %151 = vector.broadcast %150 : vector<16x16x1xi1> to vector<16x16x47xi1>
    %152 = arith.select %151, %148, %149 : vector<16x16x47xi1>, vector<16x16x47xbf16>
    %153 = vector.shape_cast %152 : vector<16x16x47xbf16> to vector<256x47xbf16>
    %c5_128 = arith.constant 5 : index
    %c0_129 = arith.constant 0 : index
    %c0_130 = arith.constant 0 : index
    %154 = vector.load %arg4[%c5_128, %c0_129, %c0_130] : memref<7x47x47xbf16, #tpu.memory_space<vmem>>, vector<1x47x47xbf16>
    %155 = vector.shape_cast %154 : vector<1x47x47xbf16> to vector<47x47xbf16>
    %cst_131 = arith.constant dense<0.000000e+00> : vector<256x47xf32>
    %156 = tpu.matmul %153, %155, %cst_131 {dimension_numbers = #tpu.dot_dimension_numbers<[1], [0], [0], [1], [0, 0, 1, 1], [], []>} : vector<256x47xbf16>, vector<47x47xbf16>, vector<256x47xf32> -> vector<256x47xf32>
    %157 = arith.addf %147, %156 : vector<256x47xf32>
    %c2_132 = arith.constant 2 : index
    %c2_133 = arith.constant 2 : index
    %c0_134 = arith.constant 0 : index
    %158 = vector.load %arg7[%c2_132, %c2_133, %c0_134] : memref<18x18x47xbf16, #tpu.memory_space<vmem>>, vector<16x16x47xbf16>
    %c1_135 = arith.constant 1 : index
    %c2_136 = arith.constant 2 : index
    %c0_137 = arith.constant 0 : index
    %159 = vector.load %arg7[%c1_135, %c2_136, %c0_137] : memref<18x18x47xbf16, #tpu.memory_space<vmem>>, vector<16x16x47xbf16>
    %160 = vector.shape_cast %18 : vector<16x16x1xi1> to vector<16x16x1xi1>
    %161 = vector.broadcast %160 : vector<16x16x1xi1> to vector<16x16x47xi1>
    %162 = arith.select %161, %158, %159 : vector<16x16x47xi1>, vector<16x16x47xbf16>
    %163 = vector.shape_cast %162 : vector<16x16x47xbf16> to vector<256x47xbf16>
    %c6_138 = arith.constant 6 : index
    %c0_139 = arith.constant 0 : index
    %c0_140 = arith.constant 0 : index
    %164 = vector.load %arg4[%c6_138, %c0_139, %c0_140] : memref<7x47x47xbf16, #tpu.memory_space<vmem>>, vector<1x47x47xbf16>
    %165 = vector.shape_cast %164 : vector<1x47x47xbf16> to vector<47x47xbf16>
    %cst_141 = arith.constant dense<0.000000e+00> : vector<256x47xf32>
    %166 = tpu.matmul %163, %165, %cst_141 {dimension_numbers = #tpu.dot_dimension_numbers<[1], [0], [0], [1], [0, 0, 1, 1], [], []>} : vector<256x47xbf16>, vector<47x47xbf16>, vector<256x47xf32> -> vector<256x47xf32>
    %167 = arith.addf %157, %166 : vector<256x47xf32>
    %c0_142 = arith.constant 0 : index
    %c0_143 = arith.constant 0 : index
    %168 = vector.load %arg5[%c0_142, %c0_143] : memref<1x47xf32, #tpu.memory_space<vmem>>, vector<1x47xf32>
    %169 = vector.broadcast %168 : vector<1x47xf32> to vector<256x47xf32>
    %170 = arith.addf %167, %169 : vector<256x47xf32>
    %c0_144 = arith.constant 0 : index
    %c1_145 = arith.constant 1 : index
    %c1_146 = arith.constant 1 : index
    %c0_147 = arith.constant 0 : index
    %171 = vector.load %arg1[%c0_144, %c1_145, %c1_146, %c0_147] : memref<1x18x18x47xf32, #tpu.memory_space<vmem>>, vector<1x16x16x47xf32>
    %172 = vector.shape_cast %171 : vector<1x16x16x47xf32> to vector<16x16x47xf32>
    %173 = vector.shape_cast %172 : vector<16x16x47xf32> to vector<256x47xf32>
    %174 = arith.addf %170, %173 : vector<256x47xf32>
    %cst_148 = arith.constant 0.000000e+00 : f32
    %175 = vector.broadcast %cst_148 : f32 to vector<256x47xf32>
    %176 = arith.cmpf oge, %174, %175 : vector<256x47xf32>
    %cst_149 = arith.constant 0.00999999977 : f32
    %177 = vector.broadcast %cst_149 : f32 to vector<256x47xf32>
    %178 = arith.mulf %177, %174 : vector<256x47xf32>
    %179 = arith.select %176, %174, %178 : vector<256x47xi1>, vector<256x47xf32>
    %180 = tpu.transpose %179, [1, 0] : vector<256x47xf32> -> vector<47x256xf32>
    %c0_150 = arith.constant 0 : index
    %c0_151 = arith.constant 0 : index
    %c0_152 = arith.constant 0 : index
    %181 = vector.load %arg6[%c0_150, %c0_151, %c0_152] : memref<1x47x256xf32, #tpu.memory_space<vmem>>, vector<1x47x256xf32>
    %182 = vector.shape_cast %181 : vector<1x47x256xf32> to vector<47x256xf32>
    %183 = vector.shape_cast %180 : vector<47x256xf32> to vector<1x47x256xf32>
    tpu.vector_store %arg6[%c0_150, %c0_151, %c0_152], %183 {strides = array<i32>} : memref<1x47x256xf32, #tpu.memory_space<vmem>>, vector<1x47x256xf32>,
    return
  }
  func.func @transform_0(%arg0: i32) -> (i32, i32, i32, i32) {
    %c0_i32 = arith.constant 0 : i32
    %c0_i32_0 = arith.constant 0 : i32
    %c0_i32_1 = arith.constant 0 : i32
    %c0_i32_2 = arith.constant 0 : i32
    return %arg0, %c0_i32, %c0_i32_0, %c0_i32_1 : i32, i32, i32, i32
  }
  func.func @transform_1(%arg0: i32) -> (i32, i32, i32) {
    %c0_i32 = arith.constant 0 : i32
    %c0_i32_0 = arith.constant 0 : i32
    %c0_i32_1 = arith.constant 0 : i32
    %c0_i32_2 = arith.constant 0 : i32
    return %c0_i32, %c0_i32_0, %c0_i32_1 : i32, i32, i32
  }
  func.func @transform_2(%arg0: i32) -> (i32, i32) {
    %c0_i32 = arith.constant 0 : i32
    %c0_i32_0 = arith.constant 0 : i32
    %c0_i32_1 = arith.constant 0 : i32
    return %c0_i32, %c0_i32_0 : i32, i32
  }
  func.func @transform_3(%arg0: i32) -> (i32, i32, i32) {
    %c0_i32 = arith.constant 0 : i32
    %c0_i32_0 = arith.constant 0 : i32
    %c0_i32_1 = arith.constant 0 : i32
    %c0_i32_2 = arith.constant 0 : i32
    return %c0_i32, %c0_i32_0, %c0_i32_1 : i32, i32, i32
  }
  func.func @transform_4(%arg0: i32) -> (i32, i32) {
    %c0_i32 = arith.constant 0 : i32
    %c0_i32_0 = arith.constant 0 : i32
    %c0_i32_1 = arith.constant 0 : i32
    return %c0_i32, %c0_i32_0 : i32, i32
  }
  func.func @transform_5(%arg0: i32) -> (i32, i32, i32) {
    %c0_i32 = arith.constant 0 : i32
    %c0_i32_0 = arith.constant 0 : i32
    %c0_i32_1 = arith.constant 0 : i32
    return %arg0, %c0_i32, %c0_i32_0 : i32, i32, i32
  }
}

</mosaic_0001>

<bundles_post_ra>
// kernel: _lambda_.1
= control target key start
LH: loop header
LB: loop body
LE: loop exit
PB: predicated region body
PF: predicated region fallthrough
CT: control target
= control target key end

     0   :  { %s9969_s18 = smov 0   ;;  %s12301_s0 = inlined_call_operand.vmem [shape: f32[2,18,18,47], index: 0, kind: input, shape index: {}]   ;;  %s12302_s1 = inlined_call_operand.vmem [shape: bf16[7,47,47], index: 1, kind: input, shape index: {}]   ;;  %s12303_s2 = inlined_call_operand.vmem [shape: f32[1,47], index: 2, kind: input, shape index: {}]   ;;  %s12304_s3 = inlined_call_operand.vmem [shape: bf16[7,47,47], index: 3, kind: input, shape index: {}]   ;;  %s12305_s4 = inlined_call_operand.vmem [shape: f32[1,47], index: 4, kind: input, shape index: {}]   ;;  %s12306_s5 = inlined_call_operand.vmem [shape: f32[2,47,256], index: 5, kind: output, shape index: {}]  }
   0x1 LB: > { %s7818_s19 = sadd.s32 4294967295, %s9935_s18   ;;  %p7822_p0 = scmp.ge.s32.totalorder %s9935_s18, 1  ;;  %s9935_s18 = sphi %s9969_s18, %s15_s18  }
   0x2   : > { %p187_p1 = scmp.lt.s32.totalorder %s9935_s18, 3 }
   0x4   : > { %p188_p2 = pnand %p7822_p0, %p187_p1 }
   0x6   : > { %191 = sbr.rel (%p188_p2) target bundleno = 1535 (0x5ff), region = 40 }
   0xd   : > { %v9793_v0 = vld [vmem:[%s12302_s1 + $0x18] sm:$0xff]   ;;  %vm433_vm0 = vcmask 1046528   ;;  %v9794_v1 = vld [vmem:[%s12302_s1 + $0x20] sm:$0xff]   ;;  %vm434_vm1 = vcmask 1047552   ;;  %v9795_v2 = vld [vmem:[%s12302_s1 + $0x28] sm:$0xff]   ;;  %v9937_v3 = vmov 65535  }
   0xe   : > { %8865 = vmatprep.subr.bf16.mxu0 %v9793_v0  ;;  %v435_v4 = vsel %vm433_vm0, 4294967295, %v9937_v3  ;;  %p215_p3 = scmp.lt.s32.totalorder %s7818_s19, 1  ;;  %v9796_v7 = vld [vmem:[%s12302_s1] sm:$0xff]   ;;  %vm384_vm2 = vcmask 384000   ;;  %v9797_v17 = vld [vmem:[%s12302_s1 + $0x8] sm:$0xff]   ;;  %v9798_v18 = vld [vmem:[%s12302_s1 + $0x10] sm:$0xff]  }
   0xf   : > { %8866 = vmatpush3.bf16.msra.mxu0 %v9793_v0  ;;  %v9986_v5 = vsel %vm434_vm1, %v435_v4, 0  ;;  %v9799_v26 = vld [vmem:[%s12302_s1 + $0x30] sm:$0xff]   ;;  %v9800_v63 = vld [vmem:[%s12302_s1 + $0x38] sm:$0xff]   ;;  %v9801_v0 = vld [vmem:[%s12302_s1 + $0x40] sm:$0xff]   ;;  %vm2742_vm5 = vcmask 379904   ;;  %vm2745_vm6 = vcmask 376832  }
  0x10   : > { %8867 = vmatprep.subr.bf16.mxu0 %v9794_v1  ;;  %v438_v6 = vand.u32 %v9795_v2, %v9986_v5  ;;  %s12342_s19 = smov (!%p215_p3, %s7818_s19), 1  ;;  %v667_v23 = vand.u32 %v9798_v18, %v9986_v5  ;;  %v9802_v2 = vld [vmem:[%s12302_s1 + $0x48] sm:$0xff]   ;;  %v9803_v3 = vld [vmem:[%s12302_s1 + $0x50] sm:$0xff]   ;;  %v9804_v4 = vld [vmem:[%s12302_s1 + $0x58] sm:$0xff]   ;;  %vm3219_vm9 = vsmask.f32 7938 }
  0x11   : > { %s9781_s26 = smul.u32 432, %s12342_s19  ;;  %vm2894_vm12 = vsmask.f32 256  ;;  %vm2895_vm14 = vsmask.f32 4368  ;;  %vm10710_vm15 = vmand %vm2742_vm5, %vm3219_vm9 }
  0x12   : > { %vm10716_vm1 = vmor %vm2894_vm12, %vm2895_vm14  ;;  %s9782_s25 = smul.u32 96, %s12342_s19 }
  0x13   : > { %8868 = vmatpush3.bf16.msra.mxu0 %v9794_v1  ;;  %s9998_s6 = scalar_lea.vmem %s12301_s0, %s9781_s26  ;;  %v952_v1 = vand.u32 %v9801_v0, %v9986_v5 }
  0x14   : > { %8869 = vmatprep.subr.bf16.mxu0 %v438_v6  ;;  %v7825_v8 = vld [vmem:[%s9998_s6 + $0x19] sm:$0xff]  ;;  %v7826_v9 = vld [vmem:[%s9998_s6 + $0x21] sm:$0xff]  ;;  %v7827_v10 = vld [vmem:[%s9998_s6 + $0x31] sm:$0xff]  ;;  %s224_s28 = scalar_lea.vmem %s12306_s5, %s9782_s25 }
  0x15   : > { %v10003_v11 = vpack.c.bf16 %v7826_v9, %v7825_v8  ;;  %v7828_v12 = vld [vmem:[%s9998_s6 + $0x39] sm:$0xff]  ;;  %v7829_v13 = vld [vmem:[%s9998_s6 + $0x49] sm:$0xff]  ;;  %v7830_v14 = vld [vmem:[%s9998_s6 + $0x51] sm:$0xff]  ;;  %v228_v8 = vlaneseq }
  0x16   : > { %v10008_v15 = vpack.c.bf16 %v7828_v12, %v7827_v10  ;;  %v10010_v16 = vpack.c.bf16 %v7830_v14, %v7829_v13  ;;  %v7831_v19 = vld [vmem:[%s9998_s6 + $0x61] sm:$0xff]  ;;  %v7832_v20 = vld [vmem:[%s9998_s6 + $0x69] sm:$0xff]  ;;  %v7833_v21 = vld [vmem:[%s9998_s6 + $0x79] sm:$0xff] }
  0x17   : > { %8870 = vmatpush3.bf16.msra.mxu0 %v438_v6  ;;  %8871 = vmatprep.mubr.msk.bf16.mxu0 %vm384_vm2, %v10003_v11  ;;  %v7834_v22 = vld [vmem:[%s9998_s6 + $0x81] sm:$0xff]  ;;  %v10029_v24 = vpack.c.bf16 %v7832_v20, %v7831_v19  ;;  %v7835_v27 = vld [vmem:[%s9998_s6 + $0x91] sm:$0xff]  ;;  %v7836_v28 = vld [vmem:[%s9998_s6 + $0x99] sm:$0xff]  ;;  %v1336_v6 = vand.u32 %v9804_v4, %v9986_v5  ;;  %v229_v9 = vshrl.u32 %v228_v8, 7 }
  0x18   : > { %8903 = vmatprep.subr.bf16.mxu0 %v9796_v7  ;;  %v10031_v25 = vpack.c.bf16 %v7834_v22, %v7833_v21  ;;  %v7837_v29 = vld [vmem:[%s9998_s6 + $0xa9] sm:$0xff]  ;;  %v7838_v30 = vld [vmem:[%s9998_s6 + $0xb1] sm:$0xff]  ;;  %v10044_v31 = vpack.c.bf16 %v7836_v28, %v7835_v27  ;;  %v7839_v33 = vld [vmem:[%s9998_s6 + $0xc1] sm:$0xff] }
  0x19   : > { %v10046_v32 = vpack.c.bf16 %v7838_v30, %v7837_v29  ;;  %v7840_v34 = vld [vmem:[%s9998_s6 + $0xc9] sm:$0xff]  ;;  %v7841_v35 = vld [vmem:[%s9998_s6 + $0xd9] sm:$0xff]  ;;  %v7842_v36 = vld [vmem:[%s9998_s6 + $0xe1] sm:$0xff]  ;;  %v230_v10 = vadd.s32 8, %v229_v9 }
  0x1a   : > { %8872 = vmatmul.mubr.msk.bf16.vlgmr.msra.gmra.mrb[0].mxu0 %vm384_vm2, %v10008_v15  ;;  %v10056_v37 = vpack.c.bf16 %v7840_v34, %v7839_v33  ;;  %v10058_v38 = vpack.c.bf16 %v7842_v36, %v7841_v35  ;;  %v7843_v39 = vld [vmem:[%s9998_s6 + $0xf1] sm:$0xff]  ;;  %v7844_v40 = vld [vmem:[%s9998_s6 + $0xf9] sm:$0xff]  ;;  %v7845_v41 = vld [vmem:[%s9998_s6 + $0x109] sm:$0xff] }
  0x1b   : > { %8904 = vmatpush3.bf16.msra.mxu0 %v9796_v7  ;;  %8875 = vmatprep.mubr.msk.bf16.mxu0 %vm384_vm2, %v10010_v16  ;;  %v7846_v42 = vld [vmem:[%s9998_s6 + $0x111] sm:$0xff]  ;;  %v10068_v43 = vpack.c.bf16 %v7844_v40, %v7843_v39  ;;  %v7847_v45 = vld [vmem:[%s9998_s6 + $0x121] sm:$0xff]  ;;  %v7848_v46 = vld [vmem:[%s9998_s6 + $0x129] sm:$0xff]  ;;  %v242_v12 = vand.u32 1, %v230_v10 }
  0x1c   : > { %8905 = vmatprep.subr.bf16.mxu0 %v9797_v17  ;;  %v10070_v44 = vpack.c.bf16 %v7846_v42, %v7845_v41  ;;  %v7849_v47 = vld [vmem:[%s9998_s6 + $0x139] sm:$0xff]  ;;  %v7850_v48 = vld [vmem:[%s9998_s6 + $0x141] sm:$0xff]  ;;  %v10080_v49 = vpack.c.bf16 %v7848_v46, %v7847_v45  ;;  %v7851_v51 = vld [vmem:[%s9998_s6 + $0x151] sm:$0xff] }
  0x1d   : > { %v10082_v50 = vpack.c.bf16 %v7850_v48, %v7849_v47  ;;  %v7852_v52 = vld [vmem:[%s9998_s6 + $0x159] sm:$0xff]  ;;  %v7853_v53 = vld [vmem:[%s9998_s6 + $0x169] sm:$0xff]  ;;  %v7854_v54 = vld [vmem:[%s9998_s6 + $0x171] sm:$0xff]  ;;  %vm10185_vm4 = vcmp.eq.s32.totalorder %v242_v12, 1 }
  0x1e   : > { %v357_v55 = vpack.c.bf16 %v7852_v52, %v7851_v51  ;;  %v10092_v56 = vpack.c.bf16 %v7854_v54, %v7853_v53  ;;  %v7855_v57 = vld [vmem:[%s9998_s6 + $0x181] sm:$0xff]  ;;  %v7856_v58 = vld [vmem:[%s9998_s6 + $0x189] sm:$0xff]  ;;  %v7958_v13 = vld [vmem:[%s9998_s6 + $0x18] sm:$0xff] }
  0x1f   : > { %8906 = vmatpush3.bf16.msra.mxu0 %v9797_v17  ;;  %v257_v59 = vld [vmem:[%s9998_s6 + $0x1] sm:$0xff]  ;;  %v258_v60 = vld [vmem:[%s9998_s6 + $0x9] sm:$0xff]  ;;  %v10101_v61 = vpack.c.bf16 %v7856_v58, %v7855_v57  ;;  %v7931_v19 = vld [vmem:[%s9998_s6 + $0x199] sm:$0xff] }
  0x20   : > { %8907 = vmatprep.subr.bf16.mxu0 %v667_v23  ;;  %v289_v62 = vpack.c.bf16 %v258_v60, %v257_v59  ;;  %v9805_v7 = vld [vmem:[%s12302_s1 + $0x60] sm:$0xff]   ;;  %v1180_v18 = vld [vmem:[%s9998_s6 + $0x8] sm:$0xff]  ;;  %v7961_v33 = vld [vmem:[%s9998_s6 + $0x38] sm:$0xff] }
  0x21   : > { %v1179_v17 = vld [vmem:[%s9998_s6] sm:$0xff]  ;;  %v10202_v22 = vld [vmem:[%s9998_s6 + $0x188] sm:$0xff]  ;;  %v7963_v35 = vld [vmem:[%s9998_s6 + $0x50] sm:$0xff] }
  0x22   : > { %8876 = vmatmul.mubr.msk.bf16.gmra.mrb[4].mxu0 %vm384_vm2, %v10029_v24  ;;  %v7932_v20 = vld [vmem:[%s9998_s6 + $0x1a1] sm:$0xff]  ;;  %v1220_v39 = vsel %vm10185_vm4, %v7963_v35, %v7961_v33  ;;  %v9807_v45 = vld [vmem:[%s12302_s1 + $0x70] sm:$0xff]   ;;  %v7966_v46 = vld [vmem:[%s9998_s6 + $0x78] sm:$0xff] }
  0x23   : > { %8879 = vmatprep.mubr.msk.bf16.mxu0 %vm384_vm2, %v10031_v25  ;;  %8908 = vmatpush3.bf16.msra.mxu0 %v667_v23  ;;  %v10197_v21 = vld [vmem:[%s9998_s6 + $0x180] sm:$0xff]  ;;  %v8045_v23 = vld [vmem:[%s9998_s6 + $0x198] sm:$0xff]  ;;  %v878_v30 = vpack.c.bf16 %v7932_v20, %v7931_v19  ;;  %v7962_v34 = vld [vmem:[%s9998_s6 + $0x48] sm:$0xff]  ;;  %v1684_v52 = vand.u32 %v9807_v45, %v9986_v5 }
  0x24   : > { %8941 = vmatprep.subr.bf16.mxu0 %v9799_v26  ;;  %v7964_v42 = vld [vmem:[%s9998_s6 + $0x60] sm:$0xff]  ;;  %v10268_v57 = vld [vmem:[%s12302_s1 + $0x78] sm:$0xff]   ;;  %v7970_v58 = vld [vmem:[%s9998_s6 + $0xa8] sm:$0xff] }
  0x25   : > { %v7967_v47 = vld [vmem:[%s9998_s6 + $0x80] sm:$0xff]  ;;  %v7971_v59 = vld [vmem:[%s9998_s6 + $0xb0] sm:$0xff]  ;;  %v7974_v4 = vld [vmem:[%s9998_s6 + $0xd8] sm:$0xff] }
  0x26   : > { %vm10693_vm7 = vmpackc.low %vm10185_vm4, %vm10185_vm4 }
  0x2a   : > { %8880 = vmatmul.mubr.msk.bf16.gmra.mrb[8].mxu0 %vm384_vm2, %v10044_v31 }
  0x2b   : > { %8883 = vmatprep.mubr.msk.bf16.mxu0 %vm384_vm2, %v10046_v32 }
  0x32   : > { %8884 = vmatmul.mubr.msk.bf16.gmra.mrb[12].mxu0 %vm384_vm2, %v10056_v37 }
  0x33   : > { %8887 = vmatprep.mubr.msk.bf16.mxu0 %vm384_vm2, %v10058_v38 }
  0x3a   : > { %8888 = vmatmul.mubr.msk.bf16.gmra.mrb[16].mxu0 %vm384_vm2, %v10068_v43 }
  0x3b   : > { %8891 = vmatprep.mubr.msk.bf16.mxu0 %vm384_vm2, %v10070_v44 }
  0x42   : > { %8892 = vmatmul.mubr.msk.bf16.gmra.mrb[20].mxu0 %vm384_vm2, %v10080_v49 }
  0x43   : > { %8895 = vmatprep.mubr.msk.bf16.mxu0 %vm384_vm2, %v10082_v50 }
  0x4a   : > { %8896 = vmatmul.mubr.msk.bf16.gmra.mrb[24].mxu0 %vm384_vm2, %v357_v55 }
  0x4b   : > { %8899 = vmatprep.mubr.msk.bf16.mxu0 %vm384_vm2, %v10092_v56 }
  0x52   : > { %8900 = vmatmul.mubr.msk.bf16.gmra.mrb[28].mxu0 %vm384_vm2, %v10101_v61 }
  0x53   : > { %8909 = vmatprep.mubr.msk.bf16.mxu0 %vm384_vm2, %v289_v62 }
  0x5a   : > { %8910 = vmatmul.mubr.msk.bf16.vlgmr.msra.gmra.mrb[0].mxu0 %vm384_vm2, %v10003_v11  ;;  %v235_v11 = vand.u32 1, %v229_v9 }
  0x5b   : > { %8942 = vmatpush3.bf16.msra.mxu0 %v9799_v26  ;;  %8913 = vmatprep.mubr.msk.bf16.mxu0 %vm384_vm2, %v10008_v15 }
  0x5c   : > { %8943 = vmatprep.subr.bf16.mxu0 %v9800_v63  ;;  %vm10181_vm3 = vcmp.eq.s32.totalorder %v235_v11, 1 }
  0x5d   : > { %v1593_v27 = vsel %vm10181_vm3, %v8045_v23, %v10197_v21  ;;  %v1221_v48 = vsel %vm10181_vm3, %v7964_v42, %v7962_v34 }
  0x5f   : > { %8944 = vmatpush3.bf16.msra.mxu0 %v9800_v63 }
  0x60   : > { %8945 = vmatprep.subr.bf16.mxu0 %v952_v1 }
  0x62   : > { %8914 = vmatmul.mubr.msk.bf16.gmra.mrb[4].mxu0 %vm384_vm2, %v10010_v16 }
  0x63   : > { %8917 = vmatprep.mubr.msk.bf16.mxu0 %vm384_vm2, %v10029_v24  ;;  %8946 = vmatpush3.bf16.msra.mxu0 %v952_v1 }
  0x64   : > { %8979 = vmatprep.subr.bf16.mxu0 %v9802_v2 }
  0x6a   : > { %8918 = vmatmul.mubr.msk.bf16.gmra.mrb[8].mxu0 %vm384_vm2, %v10031_v25 }
  0x6b   : > { %8921 = vmatprep.mubr.msk.bf16.mxu0 %vm384_vm2, %v10044_v31 }
  0x72   : > { %8922 = vmatmul.mubr.msk.bf16.gmra.mrb[12].mxu0 %vm384_vm2, %v10046_v32 }
  0x73   : > { %8925 = vmatprep.mubr.msk.bf16.mxu0 %vm384_vm2, %v10056_v37 }
  0x7a   : > { %8926 = vmatmul.mubr.msk.bf16.gmra.mrb[16].mxu0 %vm384_vm2, %v10058_v38 }
  0x7b   : > { %8929 = vmatprep.mubr.msk.bf16.mxu0 %vm384_vm2, %v10068_v43 }
  0x82   : > { %8930 = vmatmul.mubr.msk.bf16.gmra.mrb[20].mxu0 %vm384_vm2, %v10070_v44 }
  0x83   : > { %8933 = vmatprep.mubr.msk.bf16.mxu0 %vm384_vm2, %v10080_v49 }
  0x8a   : > { %8934 = vmatmul.mubr.msk.bf16.gmra.mrb[24].mxu0 %vm384_vm2, %v10082_v50 }
  0x8b   : > { %8937 = vmatprep.mubr.msk.bf16.mxu0 %vm384_vm2, %v357_v55 }
  0x92   : > { %8938 = vmatmul.mubr.msk.bf16.gmra.mrb[28].mxu0 %vm384_vm2, %v10092_v56 }
  0x93   : > { %8947 = vmatprep.mubr.msk.bf16.mxu0 %vm384_vm2, %v10008_v15 }
  0x9a   : > { %8948 = vmatmul.mubr.msk.bf16.vlgmr.msra.gmra.mrb[0].mxu0 %vm384_vm2, %v10010_v16  ;;  %v7959_v16 = vld [vmem:[%s9998_s6 + $0x20] sm:$0xff] }
  0x9b   : > { %8980 = vmatpush3.bf16.msra.mxu0 %v9802_v2  ;;  %8951 = vmatprep.mubr.msk.bf16.mxu0 %vm384_vm2, %v10029_v24  ;;  %v8046_v24 = vld [vmem:[%s9998_s6 + $0x1a0] sm:$0xff]  ;;  %v1216_v26 = vsel %vm10185_vm4, %v7959_v16, %v1180_v18  ;;  %v7979_v18 = vld [vmem:[%s9998_s6 + $0x110] sm:$0xff] }
  0x9c   : > { %8981 = vmatprep.subr.bf16.mxu0 %v9803_v3  ;;  %v1594_v28 = vsel %vm10185_vm4, %v8046_v24, %v10202_v22  ;;  %v7972_v2 = vld [vmem:[%s9998_s6 + $0xc0] sm:$0xff] }
  0x9d   : > { %v10216_v29 = vpack.c.bf16 %v1594_v28, %v1593_v27  ;;  %v1231_v9 = vsel %vm10181_vm3, %v7974_v4, %v7972_v2  ;;  %v7980_v27 = vld [vmem:[%s9998_s6 + $0x120] sm:$0xff]  ;;  %v7981_v28 = vld [vmem:[%s9998_s6 + $0x128] sm:$0xff] }
  0x9f   : > { %8982 = vmatpush3.bf16.msra.mxu0 %v9803_v3  ;;  %v7973_v3 = vld [vmem:[%s9998_s6 + $0xc8] sm:$0xff] }
  0xa0   : > { %8983 = vmatprep.subr.bf16.mxu0 %v1336_v6  ;;  %v1230_v8 = vsel %vm10185_vm4, %v7973_v3, %v7971_v59 }
  0xa2   : > { %8952 = vmatmul.mubr.msk.bf16.gmra.mrb[4].mxu0 %vm384_vm2, %v10031_v25  ;;  %v1215_v25 = vsel %vm10181_vm3, %v7958_v13, %v1179_v17  ;;  %v7978_v17 = vld [vmem:[%s9998_s6 + $0x108] sm:$0xff] }
  0xa3   : > { %8955 = vmatprep.mubr.msk.bf16.mxu0 %vm384_vm2, %v10044_v31  ;;  %8984 = vmatpush3.bf16.msra.mxu0 %v1336_v6  ;;  %v1247_v31 = vpack.c.bf16 %v1216_v26, %v1215_v25  ;;  %v7975_v6 = vld [vmem:[%s9998_s6 + $0xe0] sm:$0xff] }
  0xa4   : > { %9017 = vmatprep.subr.bf16.mxu0 %v9805_v7  ;;  %v1232_v10 = vsel %vm10185_vm4, %v7975_v6, %v7973_v3  ;;  %v8074_v3 = vld [vmem:[%s9998_s6 + $0x32] sm:$0xff] }
  0xa5   : > { %v1255_v12 = vpack.c.bf16 %v1232_v10, %v1231_v9 }
  0xaa   : > { %8956 = vmatmul.mubr.msk.bf16.gmra.mrb[8].mxu0 %vm384_vm2, %v10046_v32  ;;  %v7960_v32 = vld [vmem:[%s9998_s6 + $0x30] sm:$0xff] }
  0xab   : > { %8959 = vmatprep.mubr.msk.bf16.mxu0 %vm384_vm2, %v10056_v37  ;;  %v1217_v36 = vsel %vm10181_vm3, %v7960_v32, %v7958_v13  ;;  %v1218_v37 = vsel %vm10185_vm4, %v7961_v33, %v7959_v16  ;;  %v7976_v13 = vld [vmem:[%s9998_s6 + $0xf0] sm:$0xff]  ;;  %v7977_v16 = vld [vmem:[%s9998_s6 + $0xf8] sm:$0xff]  ;;  %v1238_v33 = vsel %vm10185_vm4, %v7981_v28, %v7979_v18 }
  0xac   : > { %v10232_v40 = vpack.c.bf16 %v1218_v37, %v1217_v36  ;;  %v1233_v19 = vsel %vm10181_vm3, %v7976_v13, %v7974_v4  ;;  %v1234_v20 = vsel %vm10185_vm4, %v7977_v16, %v7975_v6  ;;  %v1235_v23 = vsel %vm10181_vm3, %v7978_v17, %v7976_v13  ;;  %v8075_v4 = vld [vmem:[%s9998_s6 + $0x3a] sm:$0xff]  ;;  %v8076_v6 = vld [vmem:[%s9998_s6 + $0x4a] sm:$0xff] }
  0xad   : > { %v1236_v24 = vsel %vm10185_vm4, %v7979_v18, %v7977_v16  ;;  %v1256_v25 = vpack.c.bf16 %v1234_v20, %v1233_v19  ;;  %v1947_v10 = vsel %vm10181_vm3, %v8076_v6, %v8074_v3  ;;  %v8078_v16 = vld [vmem:[%s9998_s6 + $0x62] sm:$0xff]  ;;  %v8080_v19 = vld [vmem:[%s9998_s6 + $0x7a] sm:$0xff] }
  0xae   : > { %v1257_v26 = vpack.c.bf16 %v1236_v24, %v1235_v23  ;;  %v9813_v18 = vld [vmem:[%s12302_s1 + $0xa0] sm:$0xff]   ;;  %v1949_v23 = vsel %vm10181_vm3, %v8078_v16, %v8076_v6 }
  0xaf   : > { %v8081_v20 = vld [vmem:[%s9998_s6 + $0x82] sm:$0xff] }
  0xb2   : > { %8960 = vmatmul.mubr.msk.bf16.gmra.mrb[12].mxu0 %vm384_vm2, %v10058_v38  ;;  %v1219_v38 = vsel %vm10181_vm3, %v7962_v34, %v7960_v32  ;;  %v1237_v32 = vsel %vm10181_vm3, %v7980_v27, %v7978_v17  ;;  %v9812_v17 = vld [vmem:[%s12302_s1 + $0x98] sm:$0xff]  }
  0xb3   : > { %8963 = vmatprep.mubr.msk.bf16.mxu0 %vm384_vm2, %v10068_v43  ;;  %v10234_v41 = vpack.c.bf16 %v1220_v39, %v1219_v38  ;;  %v7965_v43 = vld [vmem:[%s9998_s6 + $0x68] sm:$0xff]  ;;  %v1258_v36 = vpack.c.bf16 %v1238_v33, %v1237_v32  ;;  %v7984_v38 = vld [vmem:[%s9998_s6 + $0x150] sm:$0xff]  ;;  %v7985_v39 = vld [vmem:[%s9998_s6 + $0x158] sm:$0xff] }
  0xb4   : > { %v1224_v51 = vsel %vm10185_vm4, %v7967_v47, %v7965_v43  ;;  %v8083_v32 = vld [vmem:[%s9998_s6 + $0x9a] sm:$0xff]  ;;  %v8084_v33 = vld [vmem:[%s9998_s6 + $0xaa] sm:$0xff] }
  0xba   : > { %8964 = vmatmul.mubr.msk.bf16.gmra.mrb[16].mxu0 %vm384_vm2, %v10070_v44  ;;  %v9806_v44 = vld [vmem:[%s12302_s1 + $0x68] sm:$0xff]  }
  0xbb   : > { %8967 = vmatprep.mubr.msk.bf16.mxu0 %vm384_vm2, %v10080_v49  ;;  %v1222_v49 = vsel %vm10185_vm4, %v7965_v43, %v7963_v35  ;;  %v7987_v43 = vld [vmem:[%s9998_s6 + $0x170] sm:$0xff] }
  0xbc   : > { %v10259_v53 = vpack.c.bf16 %v1222_v49, %v1221_v48 }
  0xc2   : > { %8968 = vmatmul.mubr.msk.bf16.gmra.mrb[20].mxu0 %vm384_vm2, %v10082_v50  ;;  %v1223_v50 = vsel %vm10181_vm3, %v7966_v46, %v7964_v42  ;;  %v7986_v42 = vld [vmem:[%s9998_s6 + $0x168] sm:$0xff] }
  0xc3   : > { %8971 = vmatprep.mubr.msk.bf16.mxu0 %vm384_vm2, %v357_v55  ;;  %v10261_v54 = vpack.c.bf16 %v1224_v51, %v1223_v50  ;;  %v7968_v55 = vld [vmem:[%s9998_s6 + $0x90] sm:$0xff]  ;;  %v1245_v50 = vsel %vm10181_vm3, %v10197_v21, %v7986_v42  ;;  %v1246_v51 = vsel %vm10185_vm4, %v10202_v22, %v7987_v43 }
  0xc4   : > { %v1225_v60 = vsel %vm10181_vm3, %v7968_v55, %v7966_v46  ;;  %v1227_v62 = vsel %vm10181_vm3, %v7970_v58, %v7968_v55  ;;  %v1243_v46 = vsel %vm10181_vm3, %v7986_v42, %v7984_v38  ;;  %v9809_v55 = vld [vmem:[%s12302_s1 + $0x80] sm:$0xff]   ;;  %v9811_v22 = vld [vmem:[%s12302_s1 + $0x90] sm:$0xff]  }
  0xca   : > { %8972 = vmatmul.mubr.msk.bf16.gmra.mrb[24].mxu0 %vm384_vm2, %v10092_v56  ;;  %v7969_v56 = vld [vmem:[%s9998_s6 + $0x98] sm:$0xff] }
  0xcb   : > { %8975 = vmatprep.mubr.msk.bf16.mxu0 %vm384_vm2, %v10101_v61  ;;  %v1226_v61 = vsel %vm10185_vm4, %v7969_v56, %v7967_v47  ;;  %v1228_v63 = vsel %vm10185_vm4, %v7971_v59, %v7969_v56  ;;  %v1244_v47 = vsel %vm10185_vm4, %v7987_v43, %v7985_v39  ;;  %v9810_v56 = vld [vmem:[%s12302_s1 + $0x88] sm:$0xff]   ;;  %v8159_v59 = vld [vmem:[%s9998_s6 + $0x19a] sm:$0xff] }
  0xcc   : > { %v10285_v0 = vpack.c.bf16 %v1226_v61, %v1225_v60  ;;  %v10287_v1 = vpack.c.bf16 %v1228_v63, %v1227_v62  ;;  %v1261_v49 = vpack.c.bf16 %v1244_v47, %v1243_v46  ;;  %v2064_v21 = vand.u32 %v9810_v56, %v9986_v5  ;;  %v8160_v60 = vld [vmem:[%s9998_s6 + $0x1a2] sm:$0xff]  ;;  %v8091_v56 = vld [vmem:[%s9998_s6 + $0xfa] sm:$0xff] }
  0xcd   : > { %v8086_v43 = vld [vmem:[%s9998_s6 + $0xc2] sm:$0xff] }
  0xce   : > { %v8089_v46 = vld [vmem:[%s9998_s6 + $0xe2] sm:$0xff]  ;;  %v1957_v47 = vsel %vm10181_vm3, %v8086_v43, %v8084_v33 }
  0xd2   : > { %8976 = vmatmul.mubr.msk.bf16.gmra.mrb[28].mxu0 %vm384_vm2, %v878_v30  ;;  %v7982_v30 = vld [vmem:[%s9998_s6 + $0x138] sm:$0xff] }
  0xd3   : > { %8985 = vmatprep.mubr.msk.bf16.mxu0 %vm384_vm2, %v1247_v31  ;;  %v7983_v31 = vld [vmem:[%s9998_s6 + $0x140] sm:$0xff]  ;;  %v1239_v34 = vsel %vm10181_vm3, %v7982_v30, %v7980_v27  ;;  %v2412_v27 = vand.u32 %v9813_v18, %v9986_v5 }
  0xd4   : > { %v1240_v35 = vsel %vm10185_vm4, %v7983_v31, %v7981_v28  ;;  %v1242_v45 = vsel %vm10185_vm4, %v7985_v39, %v7983_v31  ;;  %v8082_v31 = vld [vmem:[%s9998_s6 + $0x92] sm:$0xff] }
  0xd5   : > { %v1259_v37 = vpack.c.bf16 %v1240_v35, %v1239_v34  ;;  %v8085_v34 = vld [vmem:[%s9998_s6 + $0xb2] sm:$0xff]  ;;  %v1953_v35 = vsel %vm10181_vm3, %v8082_v31, %v8080_v19 }
  0xda   : > { %8986 = vmatmul.mubr.msk.bf16.vlgmr.msra.gmra.mrb[0].mxu0 %vm384_vm2, %v10232_v40 }
  0xdb   : > { %9018 = vmatpush3.bf16.msra.mxu0 %v9805_v7  ;;  %8989 = vmatprep.mubr.msk.bf16.mxu0 %vm384_vm2, %v10234_v41  ;;  %v1229_v7 = vsel %vm10181_vm3, %v7972_v2, %v7970_v58  ;;  %v10396_v58 = vld [vmem:[%s9998_s6 + $0x18a] sm:$0xff] }
  0xdc   : > { %9019 = vmatprep.subr.bf16.mxu0 %v9806_v44  ;;  %v1254_v11 = vpack.c.bf16 %v1230_v8, %v1229_v7  ;;  %v8077_v7 = vld [vmem:[%s9998_s6 + $0x52] sm:$0xff] }
  0xdf   : > { %9020 = vmatpush3.bf16.msra.mxu0 %v9806_v44  ;;  %v1241_v44 = vsel %vm10181_vm3, %v7984_v38, %v7982_v30  ;;  %v1956_v38 = vsel %vm10185_vm4, %v8085_v34, %v8083_v32 }
  0xe0   : > { %9021 = vmatprep.subr.bf16.mxu0 %v1684_v52  ;;  %v1260_v48 = vpack.c.bf16 %v1242_v45, %v1241_v44  ;;  %v8087_v44 = vld [vmem:[%s9998_s6 + $0xca] sm:$0xff]  ;;  %v8088_v45 = vld [vmem:[%s9998_s6 + $0xda] sm:$0xff] }
  0xe2   : > { %8990 = vmatmul.mubr.msk.bf16.gmra.mrb[4].mxu0 %vm384_vm2, %v10259_v53 }
  0xe3   : > { %8993 = vmatprep.mubr.msk.bf16.mxu0 %vm384_vm2, %v10261_v54  ;;  %9022 = vmatpush3.bf16.msra.mxu0 %v1684_v52  ;;  %v1262_v52 = vpack.c.bf16 %v1246_v51, %v1245_v50  ;;  %v1960_v50 = vsel %vm10185_vm4, %v8089_v46, %v8087_v44 }
  0xe4   : > { %9055 = vmatprep.subr.bf16.mxu0 %v10268_v57 }
  0xea   : > { %8994 = vmatmul.mubr.msk.bf16.gmra.mrb[8].mxu0 %vm384_vm2, %v10285_v0 }
  0xeb   : > { %8997 = vmatprep.mubr.msk.bf16.mxu0 %vm384_vm2, %v10287_v1 }
  0xf2   : > { %8998 = vmatmul.mubr.msk.bf16.gmra.mrb[12].mxu0 %vm384_vm2, %v1254_v11 }
  0xf3   : > { %9001 = vmatprep.mubr.msk.bf16.mxu0 %vm384_vm2, %v1255_v12 }
  0xfa   : > { %9002 = vmatmul.mubr.msk.bf16.gmra.mrb[16].mxu0 %vm384_vm2, %v1256_v25 }
  0xfb   : > { %9005 = vmatprep.mubr.msk.bf16.mxu0 %vm384_vm2, %v1257_v26 }
 0x102   : > { %9006 = vmatmul.mubr.msk.bf16.gmra.mrb[20].mxu0 %vm384_vm2, %v1258_v36 }
 0x103   : > { %9009 = vmatprep.mubr.msk.bf16.mxu0 %vm384_vm2, %v1259_v37 }
 0x10a   : > { %9010 = vmatmul.mubr.msk.bf16.gmra.mrb[24].mxu0 %vm384_vm2, %v1260_v48 }
 0x10b   : > { %9013 = vmatprep.mubr.msk.bf16.mxu0 %vm384_vm2, %v1261_v49 }
 0x112   : > { %9014 = vmatmul.mubr.msk.bf16.gmra.mrb[28].mxu0 %vm384_vm2, %v1262_v52 }
 0x113   : > { %9023 = vmatprep.mubr.msk.bf16.mxu0 %vm384_vm2, %v10232_v40  ;;  %v8072_v40 = vld [vmem:[%s9998_s6 + $0x1a] sm:$0xff] }
 0x114   : > { %v1945_v8 = vsel %vm10181_vm3, %v8074_v3, %v8072_v40 }
 0x11a   : > { %9024 = vmatmul.mubr.msk.bf16.vlgmr.msra.gmra.mrb[0].mxu0 %vm384_vm2, %v10234_v41  ;;  %v8073_v41 = vld [vmem:[%s9998_s6 + $0x22] sm:$0xff] }
 0x11b   : > { %9056 = vmatpush3.bf16.msra.mxu0 %v10268_v57  ;;  %9027 = vmatprep.mubr.msk.bf16.mxu0 %vm384_vm2, %v10259_v53  ;;  %v1911_v53 = vld [vmem:[%s9998_s6 + $0x2] sm:$0xff]  ;;  %v1946_v9 = vsel %vm10185_vm4, %v8075_v4, %v8073_v41 }
 0x11c   : > { %9057 = vmatprep.subr.bf16.mxu0 %v9809_v55  ;;  %v10392_v57 = vld [vmem:[%s9998_s6 + $0x182] sm:$0xff]  ;;  %v1943_v61 = vsel %vm10181_vm3, %v8072_v40, %v1911_v53 }
 0x11d   : > { %v2321_v63 = vsel %vm10181_vm3, %v8159_v59, %v10392_v57 }
 0x11f   : > { %9058 = vmatpush3.bf16.msra.mxu0 %v9809_v55  ;;  %v8090_v55 = vld [vmem:[%s9998_s6 + $0xf2] sm:$0xff] }
 0x120   : > { %9059 = vmatprep.subr.bf16.mxu0 %v2064_v21  ;;  %v1961_v40 = vsel %vm10181_vm3, %v8090_v55, %v8088_v45 }
 0x122   : > { %9028 = vmatmul.mubr.msk.bf16.gmra.mrb[4].mxu0 %vm384_vm2, %v10261_v54  ;;  %v1912_v54 = vld [vmem:[%s9998_s6 + $0xa] sm:$0xff] }
 0x123   : > { %9031 = vmatprep.mubr.msk.bf16.mxu0 %vm384_vm2, %v10285_v0  ;;  %9060 = vmatpush3.bf16.msra.mxu0 %v2064_v21  ;;  %v1944_v62 = vsel %vm10185_vm4, %v8073_v41, %v1912_v54  ;;  %v2322_v0 = vsel %vm10185_vm4, %v8160_v60, %v10396_v58  ;;  %v8092_v21 = vld [vmem:[%s9998_s6 + $0x10a] sm:$0xff]  ;;  %v1962_v41 = vsel %vm10185_vm4, %v8091_v56, %v8089_v46 }
 0x124   : > { %9093 = vmatprep.subr.bf16.mxu0 %v9811_v22  ;;  %v1975_v2 = vpack.c.bf16 %v1944_v62, %v1943_v61  ;;  %v1963_v53 = vsel %vm10181_vm3, %v8092_v21, %v8090_v55  ;;  %v1984_v59 = vpack.c.bf16 %v1962_v41, %v1961_v40  ;;  %v8094_v61 = vld [vmem:[%s9998_s6 + $0x122] sm:$0xff]  ;;  %v8095_v62 = vld [vmem:[%s9998_s6 + $0x12a] sm:$0xff] }
 0x12a   : > { %9032 = vmatmul.mubr.msk.bf16.gmra.mrb[8].mxu0 %vm384_vm2, %v10287_v1  ;;  %v10410_v1 = vpack.c.bf16 %v2322_v0, %v2321_v63  ;;  %v8096_v63 = vld [vmem:[%s9998_s6 + $0x13a] sm:$0xff]  ;;  %v8097_v0 = vld [vmem:[%s9998_s6 + $0x142] sm:$0xff] }
 0x12b   : > { %9035 = vmatprep.mubr.msk.bf16.mxu0 %vm384_vm2, %v1254_v11  ;;  %v1948_v11 = vsel %vm10185_vm4, %v8077_v7, %v8075_v4  ;;  %v1967_v4 = vsel %vm10181_vm3, %v8096_v63, %v8094_v61  ;;  %v1968_v6 = vsel %vm10185_vm4, %v8097_v0, %v8095_v62 }
 0x12c   : > { %v10429_v13 = vpack.c.bf16 %v1948_v11, %v1947_v10  ;;  %v8099_v10 = vld [vmem:[%s9998_s6 + $0x15a] sm:$0xff]  ;;  %v8100_v11 = vld [vmem:[%s9998_s6 + $0x16a] sm:$0xff] }
 0x132   : > { %9036 = vmatmul.mubr.msk.bf16.gmra.mrb[12].mxu0 %vm384_vm2, %v1255_v12  ;;  %v10427_v12 = vpack.c.bf16 %v1946_v9, %v1945_v8  ;;  %v1987_v8 = vpack.c.bf16 %v1968_v6, %v1967_v4  ;;  %v8098_v9 = vld [vmem:[%s9998_s6 + $0x152] sm:$0xff] }
 0x133   : > { %9039 = vmatprep.mubr.msk.bf16.mxu0 %vm384_vm2, %v1256_v25  ;;  %v1951_v25 = vsel %vm10181_vm3, %v8080_v19, %v8078_v16  ;;  %v8101_v16 = vld [vmem:[%s9998_s6 + $0x172] sm:$0xff]  ;;  %v1971_v18 = vsel %vm10181_vm3, %v8100_v11, %v8098_v9 }
 0x134   : > { %v1972_v19 = vsel %vm10185_vm4, %v8101_v16, %v8099_v10 }
 0x13a   : > { %9040 = vmatmul.mubr.msk.bf16.gmra.mrb[16].mxu0 %vm384_vm2, %v1257_v26 }
 0x13b   : > { %9043 = vmatprep.mubr.msk.bf16.mxu0 %vm384_vm2, %v1258_v36  ;;  %v1954_v36 = vsel %vm10185_vm4, %v8083_v32, %v8081_v20 }
 0x13c   : > { %v1980_v39 = vpack.c.bf16 %v1954_v36, %v1953_v35 }
 0x142   : > { %9044 = vmatmul.mubr.msk.bf16.gmra.mrb[20].mxu0 %vm384_vm2, %v1259_v37  ;;  %v1955_v37 = vsel %vm10181_vm3, %v8084_v33, %v8082_v31 }
 0x143   : > { %9047 = vmatprep.mubr.msk.bf16.mxu0 %vm384_vm2, %v1260_v48  ;;  %v1981_v42 = vpack.c.bf16 %v1956_v38, %v1955_v37  ;;  %v1958_v48 = vsel %vm10185_vm4, %v8087_v44, %v8085_v34 }
 0x144   : > { %v1982_v51 = vpack.c.bf16 %v1958_v48, %v1957_v47 }
 0x14a   : > { %9048 = vmatmul.mubr.msk.bf16.gmra.mrb[24].mxu0 %vm384_vm2, %v1261_v49  ;;  %v1959_v49 = vsel %vm10181_vm3, %v8088_v45, %v8086_v43 }
 0x14b   : > { %9051 = vmatprep.mubr.msk.bf16.mxu0 %vm384_vm2, %v1262_v52  ;;  %v1983_v52 = vpack.c.bf16 %v1960_v50, %v1959_v49 }
 0x152   : > { %9052 = vmatmul.mubr.msk.bf16.gmra.mrb[28].mxu0 %vm384_vm2, %v10216_v29  ;;  %v8079_v29 = vld [vmem:[%s9998_s6 + $0x6a] sm:$0xff] }
 0x153   : > { %9061 = vmatprep.mubr.msk.bf16.mxu0 %vm384_vm2, %v1975_v2  ;;  %v1950_v24 = vsel %vm10185_vm4, %v8079_v29, %v8077_v7  ;;  %v1952_v26 = vsel %vm10185_vm4, %v8081_v20, %v8079_v29  ;;  %v1965_v2 = vsel %vm10181_vm3, %v8094_v61, %v8092_v21  ;;  %v1969_v29 = vsel %vm10181_vm3, %v8098_v9, %v8096_v63 }
 0x154   : > { %v10454_v28 = vpack.c.bf16 %v1950_v24, %v1949_v23  ;;  %v10456_v30 = vpack.c.bf16 %v1952_v26, %v1951_v25  ;;  %v1989_v23 = vpack.c.bf16 %v1972_v19, %v1971_v18  ;;  %v1973_v24 = vsel %vm10181_vm3, %v10392_v57, %v8100_v11 }
 0x155   : > { %v1974_v25 = vsel %vm10185_vm4, %v10396_v58, %v8101_v16  ;;  %v9938_v57 = vmov 0   ;;  %v9814_v58 = vld [vmem:[%s12304_s3 + $0x18] sm:$0xff]  }
 0x156   : > { %v1990_v26 = vpack.c.bf16 %v1974_v25, %v1973_v24  ;;  %2750 = vst.msk [vmem:[#allocation2 + $0x18] sm:$0xf] %vm2742_vm5, %v9938_v57  ;;  %2743 = vst.msk [vmem:[#allocation2] sm:$0xf] %vm2742_vm5, %v9938_v57  ;;  %9131 = vmatprep.subr.bf16.mxu1 %v9814_v58  ;;  %v10703_v15 = vsel %vm10693_vm7, 65537, %v9938_v57 }
 0x157   : > { %2744 = vst.msk [vmem:[#allocation2 + $0x4] sm:$0xf] %vm2742_vm5, %v9938_v57  ;;  %2747 = vst.msk [vmem:[#allocation2 + $0xc] sm:$0xf] %vm2742_vm5, %v9938_v57  ;;  %9132 = vmatpush3.bf16.msra.mxu1 %v9814_v58  ;;  %v6415_v50 = vrot.slane %v10703_v15, 7 }
 0x158   : > { %2748 = vst.msk [vmem:[#allocation2 + $0x10] sm:$0xf] %vm2742_vm5, %v9938_v57  ;;  %2751 = vst.msk [vmem:[#allocation2 + $0x1c] sm:$0xf] %vm2742_vm5, %v9938_v57 }
 0x159   : > { %2753 = vst.msk [vmem:[#allocation2 + $0x24] sm:$0xf] %vm2742_vm5, %v9938_v57  ;;  %2754 = vst.msk [vmem:[#allocation2 + $0x28] sm:$0xf] %vm2742_vm5, %v9938_v57 }
 0x15a   : > { %9062 = vmatmul.mubr.msk.bf16.vlgmr.msra.gmra.mrb[0].mxu0 %vm384_vm2, %v10427_v12  ;;  %2756 = vst.msk [vmem:[#allocation2 + $0x30] sm:$0xf] %vm2742_vm5, %v9938_v57  ;;  %2757 = vst.msk [vmem:[#allocation2 + $0x34] sm:$0xf] %vm2742_vm5, %v9938_v57 }
 0x15b   : > { %9094 = vmatpush3.bf16.msra.mxu0 %v9811_v22  ;;  %9065 = vmatprep.mubr.msk.bf16.mxu0 %vm384_vm2, %v10429_v13  ;;  %v8093_v22 = vld [vmem:[%s9998_s6 + $0x112] sm:$0xff]  ;;  %2759 = vst.msk [vmem:[#allocation2 + $0x3c] sm:$0xf] %vm2742_vm5, %v9938_v57  ;;  %2760 = vst.msk [vmem:[#allocation2 + $0x40] sm:$0xf] %vm2742_vm5, %v9938_v57 }
 0x15c   : > { %9095 = vmatprep.subr.bf16.mxu0 %v9812_v17  ;;  %v1964_v54 = vsel %vm10185_vm4, %v8093_v22, %v8091_v56  ;;  %v1966_v3 = vsel %vm10185_vm4, %v8095_v62, %v8093_v22  ;;  %2762 = vst.msk [vmem:[#allocation2 + $0x48] sm:$0xf] %vm2742_vm5, %v9938_v57  ;;  %2763 = vst.msk [vmem:[#allocation2 + $0x4c] sm:$0xf] %vm2742_vm5, %v9938_v57 }
 0x15d   : > { %v1985_v60 = vpack.c.bf16 %v1964_v54, %v1963_v53  ;;  %v1986_v7 = vpack.c.bf16 %v1966_v3, %v1965_v2  ;;  %2765 = vst.msk [vmem:[#allocation2 + $0x54] sm:$0xf] %vm2742_vm5, %v9938_v57  ;;  %2766 = vst.msk [vmem:[#allocation2 + $0x58] sm:$0xf] %vm2742_vm5, %v9938_v57 }
 0x15e   : > { %2768 = vst.msk [vmem:[#allocation2 + $0x60] sm:$0xf] %vm2742_vm5, %v9938_v57  ;;  %2769 = vst.msk [vmem:[#allocation2 + $0x64] sm:$0xf] %vm2742_vm5, %v9938_v57 }
 0x15f   : > { %9096 = vmatpush3.bf16.msra.mxu0 %v9812_v17  ;;  %v1970_v17 = vsel %vm10185_vm4, %v8099_v10, %v8097_v0  ;;  %2771 = vst.msk [vmem:[#allocation2 + $0x6c] sm:$0xf] %vm2742_vm5, %v9938_v57  ;;  %2772 = vst.msk [vmem:[#allocation2 + $0x70] sm:$0xf] %vm2742_vm5, %v9938_v57  ;;  %v3221_v10 = vld [vmem:[#allocation2 + $0xc] sm:$0xf] }
 0x160   : > { %9097 = vmatprep.subr.bf16.mxu0 %v2412_v27  ;;  %v1988_v20 = vpack.c.bf16 %v1970_v17, %v1969_v29  ;;  %2774 = vst.msk [vmem:[#allocation2 + $0x78] sm:$0xf] %vm2742_vm5, %v9938_v57  ;;  %2775 = vst.msk [vmem:[#allocation2 + $0x7c] sm:$0xf] %vm2742_vm5, %v9938_v57 }
 0x161   : > { %2777 = vst.msk [vmem:[#allocation2 + $0x84] sm:$0xf] %vm2742_vm5, %v9938_v57  ;;  %2778 = vst.msk [vmem:[#allocation2 + $0x88] sm:$0xf] %vm2742_vm5, %v9938_v57 }
 0x162   : > { %9066 = vmatmul.mubr.msk.bf16.gmra.mrb[4].mxu0 %vm384_vm2, %v10454_v28  ;;  %2780 = vst.msk [vmem:[#allocation2 + $0x90] sm:$0xf] %vm2742_vm5, %v9938_v57  ;;  %2781 = vst.msk [vmem:[#allocation2 + $0x94] sm:$0xf] %vm2742_vm5, %v9938_v57 }
 0x163   : > { %9069 = vmatprep.mubr.msk.bf16.mxu0 %vm384_vm2, %v10456_v30  ;;  %9098 = vmatpush3.bf16.msra.mxu0 %v2412_v27  ;;  %2783 = vst.msk [vmem:[#allocation2 + $0x9c] sm:$0xf] %vm2742_vm5, %v9938_v57  ;;  %2784 = vst.msk [vmem:[#allocation2 + $0xa0] sm:$0xf] %vm2742_vm5, %v9938_v57  ;;  %v10681_v27 = vld [vmem:[%s12304_s3] sm:$0xff]  }
 0x164   : > { %2786 = vst.msk [vmem:[#allocation2 + $0xa8] sm:$0xf] %vm2742_vm5, %v9938_v57  ;;  %2787 = vst.msk [vmem:[#allocation2 + $0xac] sm:$0xf] %vm2742_vm5, %v9938_v57 }
 0x165   : > { %2789 = vst.msk [vmem:[#allocation2 + $0xb4] sm:$0xf] %vm2742_vm5, %v9938_v57  ;;  %2790 = vst.msk [vmem:[#allocation2 + $0xb8] sm:$0xf] %vm2742_vm5, %v9938_v57 }
 0x166   : > { %2792 = vst.msk [vmem:[#allocation2 + $0xc0] sm:$0xf] %vm2742_vm5, %v9938_v57  ;;  %2793 = vst.msk [vmem:[#allocation2 + $0xc4] sm:$0xf] %vm2742_vm5, %v9938_v57 }
 0x167   : > { %2795 = vst.msk [vmem:[#allocation2 + $0xcc] sm:$0xf] %vm2742_vm5, %v9938_v57  ;;  %2796 = vst.msk [vmem:[#allocation2 + $0xd0] sm:$0xf] %vm2742_vm5, %v9938_v57 }
 0x168   : > { %2752 = vst.msk [vmem:[#allocation2 + $0x20] sm:$0x1] %vm2745_vm6, %v9938_v57  ;;  %2746 = vst.msk [vmem:[#allocation2 + $0x8] sm:$0x1] %vm2745_vm6, %v9938_v57 }
 0x169   : > { %2749 = vst.msk [vmem:[#allocation2 + $0x14] sm:$0x1] %vm2745_vm6, %v9938_v57  ;;  %2755 = vst.msk [vmem:[#allocation2 + $0x2c] sm:$0x1] %vm2745_vm6, %v9938_v57 }
 0x16a   : > { %9070 = vmatmul.mubr.msk.bf16.gmra.mrb[8].mxu0 %vm384_vm2, %v1980_v39  ;;  %2758 = vst.msk [vmem:[#allocation2 + $0x38] sm:$0x1] %vm2745_vm6, %v9938_v57  ;;  %2761 = vst.msk [vmem:[#allocation2 + $0x44] sm:$0x1] %vm2745_vm6, %v9938_v57 }
 0x16b   : > { %9073 = vmatprep.mubr.msk.bf16.mxu0 %vm384_vm2, %v1981_v42  ;;  %2764 = vst.msk [vmem:[#allocation2 + $0x50] sm:$0x1] %vm2745_vm6, %v9938_v57  ;;  %2767 = vst.msk [vmem:[#allocation2 + $0x5c] sm:$0x1] %vm2745_vm6, %v9938_v57 }
 0x16c   : > { %2770 = vst.msk [vmem:[#allocation2 + $0x68] sm:$0x1] %vm2745_vm6, %v9938_v57  ;;  %2773 = vst.msk [vmem:[#allocation2 + $0x74] sm:$0x1] %vm2745_vm6, %v9938_v57 }
 0x16d   : > { %2776 = vst.msk [vmem:[#allocation2 + $0x80] sm:$0x1] %vm2745_vm6, %v9938_v57  ;;  %2779 = vst.msk [vmem:[#allocation2 + $0x8c] sm:$0x1] %vm2745_vm6, %v9938_v57 }
 0x16e   : > { %2782 = vst.msk [vmem:[#allocation2 + $0x98] sm:$0x1] %vm2745_vm6, %v9938_v57  ;;  %2785 = vst.msk [vmem:[#allocation2 + $0xa4] sm:$0x1] %vm2745_vm6, %v9938_v57 }
 0x16f   : > { %2788 = vst.msk [vmem:[#allocation2 + $0xb0] sm:$0x1] %vm2745_vm6, %v9938_v57  ;;  %2791 = vst.msk [vmem:[#allocation2 + $0xbc] sm:$0x1] %vm2745_vm6, %v9938_v57 }
 0x170   : > { %2794 = vst.msk [vmem:[#allocation2 + $0xc8] sm:$0x1] %vm2745_vm6, %v9938_v57  ;;  %2797 = vst.msk [vmem:[#allocation2 + $0xd4] sm:$0x1] %vm2745_vm6, %v9938_v57  ;;  %v3227_v58 = vld [vmem:[#allocation2 + $0x14] sm:$0x1] }
 0x171   : > { %vm10722_vm4 = vmand %vm2745_vm6, %vm2894_vm12 }
 0x172   : > { %9074 = vmatmul.mubr.msk.bf16.gmra.mrb[12].mxu0 %vm384_vm2, %v1982_v51 }
 0x173   : > { %9077 = vmatprep.mubr.msk.bf16.mxu0 %vm384_vm2, %v1983_v52 }
 0x17a   : > { %9078 = vmatmul.mubr.msk.bf16.gmra.mrb[16].mxu0 %vm384_vm2, %v1984_v59 }
 0x17b   : > { %9081 = vmatprep.mubr.msk.bf16.mxu0 %vm384_vm2, %v1985_v60 }
 0x182   : > { %9082 = vmatmul.mubr.msk.bf16.gmra.mrb[20].mxu0 %vm384_vm2, %v1986_v7 }
 0x183   : > { %9085 = vmatprep.mubr.msk.bf16.mxu0 %vm384_vm2, %v1987_v8 }
 0x18a   : > { %9086 = vmatmul.mubr.msk.bf16.gmra.mrb[24].mxu0 %vm384_vm2, %v1988_v20 }
 0x18b   : > { %9089 = vmatprep.mubr.msk.bf16.mxu0 %vm384_vm2, %v1989_v23 }
 0x192   : > { %9090 = vmatmul.mubr.msk.bf16.gmra.mrb[28].mxu0 %vm384_vm2, %v1990_v26 }
 0x193   : > { %9099 = vmatprep.mubr.msk.bf16.mxu0 %vm384_vm2, %v10427_v12  ;;  %v9816_v12 = vld [vmem:[%s12304_s3 + $0x28] sm:$0xff]  }
 0x19a   : > { %9100 = vmatmul.mubr.msk.bf16.vlgmr.msra.gmra.mrb[0].mxu0 %vm384_vm2, %v10429_v13  ;;  %v4329_v13 = vand.u32 %v9816_v12, %v9986_v5 }
 0x19b   : > { %9103 = vmatprep.mubr.msk.bf16.mxu0 %vm384_vm2, %v10454_v28  ;;  %v10687_v28 = vld [vmem:[%s12303_s2] ss:$0 sm:$0xff] }
 0x1a2   : > { %9104 = vmatmul.mubr.msk.bf16.gmra.mrb[4].mxu0 %vm384_vm2, %v10456_v30 }
 0x1a3   : > { %9107 = vmatprep.mubr.msk.bf16.mxu0 %vm384_vm2, %v1980_v39 }
 0x1aa   : > { %9108 = vmatmul.mubr.msk.bf16.gmra.mrb[8].mxu0 %vm384_vm2, %v1981_v42 }
 0x1ab   : > { %9111 = vmatprep.mubr.msk.bf16.mxu0 %vm384_vm2, %v1982_v51 }
 0x1b2   : > { %9112 = vmatmul.mubr.msk.bf16.gmra.mrb[12].mxu0 %vm384_vm2, %v1983_v52 }
 0x1b3   : > { %9115 = vmatprep.mubr.msk.bf16.mxu0 %vm384_vm2, %v1984_v59 }
 0x1ba   : > { %9116 = vmatmul.mubr.msk.bf16.gmra.mrb[16].mxu0 %vm384_vm2, %v1985_v60  ;;  %v3230_v60 = vld [vmem:[#allocation2 + $0x18] sm:$0xf] }
 0x1bb   : > { %9119 = vmatprep.mubr.msk.bf16.mxu0 %vm384_vm2, %v1986_v7 }
 0x1c2   : > { %9120 = vmatmul.mubr.msk.bf16.gmra.mrb[20].mxu0 %vm384_vm2, %v1987_v8 }
 0x1c3   : > { %9123 = vmatprep.mubr.msk.bf16.mxu0 %vm384_vm2, %v1988_v20  ;;  %v3234_v20 = vld [vmem:[#allocation2 + $0x20] sm:$0x1] }
 0x1ca   : > { %9124 = vmatmul.mubr.msk.bf16.gmra.mrb[24].mxu0 %vm384_vm2, %v1989_v23 }
 0x1cb   : > { %9127 = vmatprep.mubr.msk.bf16.mxu0 %vm384_vm2, %v1990_v26 }
 0x1d2   : > { %9128 = vmatmul.mubr.msk.bf16.gmra.mrb[28].mxu0 %vm384_vm2, %v10410_v1  ;;  %v9815_v1 = vld [vmem:[%s12304_s3 + $0x20] sm:$0xff]  }
 0x1d3   : > { %9133 = vmatprep.subr.bf16.mxu1 %v9815_v1 }
 0x1d4   : > { %9134 = vmatpush3.bf16.msra.mxu1 %v9815_v1 }
 0x1d5   : > { %9135 = vmatprep.subr.bf16.mxu1 %v4329_v13 }
 0x1d8   : > { %9136 = vmatpush3.bf16.msra.mxu1 %v4329_v13 }
 0x1d9   : > { %9169 = vmatprep.subr.bf16.mxu1 %v10681_v27 }
 0x26d   : > { %v9101_v30 = vpop.f32.mrb[0].mxu0 }
 0x26e   : > { %v2616_v31 = vadd.f32 %v9101_v30, %v10687_v28  ;;  %v2448_v32 = vpop.f32.mrb[1].mxu0 }
 0x26f   : > { %v2614_v34 = vadd.f32 %v10687_v28, %v2448_v32  ;;  %v9102_v35 = vpop.f32.mrb[2].mxu0 }
 0x270   : > { %vm2648_vm8 = vcmp.ge.f32.partialorder %v2616_v31, 0.0  ;;  %v2680_v36 = vmul.f32 0.01, %v2616_v31  ;;  %v2617_v37 = vadd.f32 %v9102_v35, %v10687_v28  ;;  %v2451_v38 = vpop.f32.mrb[3].mxu0 }
 0x271   : > { %vm2646_vm10 = vcmp.ge.f32.partialorder %v2614_v34, 0.0  ;;  %v2678_v39 = vmul.f32 0.01, %v2614_v34  ;;  %v2615_v42 = vadd.f32 %v10687_v28, %v2451_v38 }
 0x272   : > { %v2712_v43 = vsel %vm2648_vm8, %v2616_v31, %v2680_v36  ;;  %vm2649_vm11 = vcmp.ge.f32.partialorder %v2617_v37, 0.0  ;;  %v2681_v44 = vmul.f32 0.01, %v2617_v37 }
 0x273   : > { %v8569_v45 = vpack.c.bf16 %v2712_v43, %v2712_v43  ;;  %v2710_v46 = vsel %vm2646_vm10, %v2614_v34, %v2678_v39  ;;  %vm2647_vm13 = vcmp.ge.f32.partialorder %v2615_v42, 0.0  ;;  %v2679_v47 = vmul.f32 0.01, %v2615_v42 }
 0x274   : > { %v8567_v48 = vpack.c.bf16 %v2710_v46, %v2710_v46  ;;  %v2713_v49 = vsel %vm2649_vm11, %v2617_v37, %v2681_v44 }
 0x275   : > { %v2915_v51 = vshrl.u32 %v8569_v45, 16  ;;  %v2918_v52 = vshll.u32 %v8569_v45, 16  ;;  %v8570_v55 = vpack.c.bf16 %v2713_v49, %v2713_v49  ;;  %v2711_v56 = vsel %vm2647_vm13, %v2615_v42, %v2679_v47  ;;  %v9105_v21 = vpop.f32.mrb[4].mxu0 }
 0x276   : > { %v2898_v22 = vshrl.u32 %v8567_v48, 16  ;;  %v2901_v40 = vshll.u32 %v8567_v48, 16  ;;  %v8568_v41 = vpack.c.bf16 %v2711_v56, %v2711_v56  ;;  %v2620_v53 = vadd.f32 %v9105_v21, %v10687_v28  ;;  %v2464_v54 = vpop.f32.mrb[5].mxu0  ;;  %v3244_v21 = vld [vmem:[#allocation2 + $0x30] sm:$0xf] }
 0x277   : > { %v2917_v59 = vrot.slane %v2915_v51, 7  ;;  %v2923_v61 = vshrl.u32 %v8570_v55, 16  ;;  %v2926_v62 = vshll.u32 %v8570_v55, 16  ;;  %v2618_v63 = vadd.f32 %v10687_v28, %v2464_v54  ;;  %v9106_v0 = vpop.f32.mrb[6].mxu0 }
 0x278   : > { %v2900_v3 = vrot.slane %v2898_v22, 7  ;;  %v2906_v4 = vshrl.u32 %v8568_v41, 16  ;;  %v2909_v6 = vshll.u32 %v8568_v41, 16  ;;  %vm2652_vm0 = vcmp.ge.f32.partialorder %v2620_v53, 0.0  ;;  %v2467_v7 = vpop.f32.mrb[7].mxu0 }
 0x279   : > { %v2920_v8 = vor.u32 %v2918_v52, %v2917_v59  ;;  %v2921_v9 = vrot.slane %v2917_v59, 4  ;;  %v2925_v16 = vrot.slane %v2923_v61, 7  ;;  %v2684_v29 = vmul.f32 0.01, %v2620_v53 }
 0x27a   : > { %v2903_v17 = vor.u32 %v2901_v40, %v2900_v3  ;;  %v2904_v18 = vrot.slane %v2900_v3, 4  ;;  %v2908_v23 = vrot.slane %v2906_v4, 7  ;;  %vm2650_vm8 = vcmp.ge.f32.partialorder %v2618_v63, 0.0  ;;  %v3237_v4 = vld [vmem:[#allocation2 + $0x24] sm:$0xf] }
 0x27b   : > { %v3231_v24 = vsel %vm10710_vm15, %v2920_v8, %v3230_v60  ;;  %v2928_v25 = vor.u32 %v2926_v62, %v2925_v16  ;;  %v2930_v26 = vrot.slane %v2925_v16, 4  ;;  %v2716_v1 = vsel %vm2652_vm0, %v2620_v53, %v2684_v29 }
 0x27c   : > { %3232 = vst [vmem:[#allocation2 + $0x18] sm:$0xf] %v3231_v24  ;;  %v3222_v12 = vsel %vm10710_vm15, %v2903_v17, %v3221_v10  ;;  %v2911_v13 = vor.u32 %v2909_v6, %v2908_v23  ;;  %v2913_v30 = vrot.slane %v2908_v23, 4  ;;  %v8573_v31 = vpack.c.bf16 %v2716_v1, %v2716_v1 }
 0x27d   : > { %3223 = vst [vmem:[#allocation2 + $0xc] sm:$0xf] %v3222_v12  ;;  %v2929_v32 = vsel %vm10716_vm1, %v2921_v9, %v2928_v25  ;;  %v3235_v34 = vsel %vm10722_vm4, %v2930_v26, %v3234_v20  ;;  %v2682_v35 = vmul.f32 0.01, %v2618_v63  ;;  %v2621_v36 = vadd.f32 %v9106_v0, %v10687_v28  ;;  %v9109_v37 = vpop.f32.mrb[8].mxu0 }
 0x27e   : > { %3233 = vst.msk [vmem:[#allocation2 + $0x1c] sm:$0xf] %vm2742_vm5, %v2929_v32  ;;  %3236 = vst [vmem:[#allocation2 + $0x20] sm:$0x1] %v3235_v34  ;;  %v2912_v38 = vsel %vm10716_vm1, %v2904_v18, %v2911_v13  ;;  %v3228_v39 = vsel %vm10722_vm4, %v2913_v30, %v3227_v58  ;;  %v2949_v42 = vshrl.u32 %v8573_v31, 16  ;;  %v2952_v43 = vshll.u32 %v8573_v31, 16 }
 0x27f   : > { %v2480_v44 = vpop.f32.mrb[9].mxu0  ;;  %3224 = vst.msk [vmem:[#allocation2 + $0x10] sm:$0xf] %vm2742_vm5, %v2912_v38  ;;  %3229 = vst [vmem:[#allocation2 + $0x14] sm:$0x1] %v3228_v39  ;;  %v2714_v45 = vsel %vm2650_vm8, %v2618_v63, %v2682_v35  ;;  %vm2653_vm6 = vcmp.ge.f32.partialorder %v2621_v36, 0.0  ;;  %v2619_v47 = vadd.f32 %v10687_v28, %v2467_v7  ;;  %v2624_v52 = vadd.f32 %v9109_v37, %v10687_v28 }
 0x280   : > { %v2685_v46 = vmul.f32 0.01, %v2621_v36  ;;  %v9110_v48 = vpop.f32.mrb[10].mxu0  ;;  %v2951_v49 = vrot.slane %v2949_v42, 7  ;;  %v8571_v51 = vpack.c.bf16 %v2714_v45, %v2714_v45  ;;  %v2622_v55 = vadd.f32 %v10687_v28, %v2480_v44  ;;  %v3248_v12 = vld [vmem:[#allocation2 + $0x38] sm:$0x1] }
 0x281   : > { %v10746_v56 = vpop.f32.mrb[11].mxu0  ;;  %vm2651_vm9 = vcmp.ge.f32.partialorder %v2619_v47, 0.0  ;;  %v2683_v40 = vmul.f32 0.01, %v2619_v47  ;;  %v2625_v41 = vadd.f32 %v9110_v48, %v10687_v28  ;;  %vm2656_vm10 = vcmp.ge.f32.partialorder %v2624_v52, 0.0 }
 0x282   : > { %v2717_v22 = vsel %vm2653_vm6, %v2621_v36, %v2685_v46  ;;  %v2954_v53 = vor.u32 %v2952_v43, %v2951_v49  ;;  %v2955_v54 = vrot.slane %v2951_v49, 4  ;;  %v2932_v59 = vshrl.u32 %v8571_v51, 16  ;;  %v3241_v36 = vld [vmem:[#allocation2 + $0x2c] sm:$0x1] }
 0x283   : > { %v2935_v60 = vshll.u32 %v8571_v51, 16  ;;  %v8574_v61 = vpack.c.bf16 %v2717_v22, %v2717_v22  ;;  %v2715_v62 = vsel %vm2651_vm9, %v2619_v47, %v2683_v40  ;;  %v2688_v63 = vmul.f32 0.01, %v2624_v52 }
 0x284   : > { %v3245_v0 = vsel %vm10710_vm15, %v2954_v53, %v3244_v21  ;;  %v2934_v3 = vrot.slane %v2932_v59, 7  ;;  %v8572_v6 = vpack.c.bf16 %v2715_v62, %v2715_v62  ;;  %vm2654_vm11 = vcmp.ge.f32.partialorder %v2622_v55, 0.0  ;;  %v3251_v53 = vld [vmem:[#allocation2 + $0x3c] sm:$0xf] }
 0x285   : > { %3246 = vst [vmem:[#allocation2 + $0x30] sm:$0xf] %v3245_v0  ;;  %v2957_v7 = vshrl.u32 %v8574_v61, 16  ;;  %v2960_v8 = vshll.u32 %v8574_v61, 16  ;;  %v2720_v9 = vsel %vm2656_vm10, %v2624_v52, %v2688_v63  ;;  %v2686_v10 = vmul.f32 0.01, %v2622_v55 }
 0x286   : > { %v9113_v16 = vpop.f32.mrb[12].mxu0  ;;  %v2937_v29 = vor.u32 %v2935_v60, %v2934_v3  ;;  %v2938_v17 = vrot.slane %v2934_v3, 4  ;;  %v2940_v18 = vshrl.u32 %v8572_v6, 16  ;;  %v2943_v20 = vshll.u32 %v8572_v6, 16  ;;  %v3258_v52 = vld [vmem:[#allocation2 + $0x48] sm:$0xf] }
 0x287   : > { %v2496_v23 = vpop.f32.mrb[13].mxu0  ;;  %v2959_v24 = vrot.slane %v2957_v7, 7  ;;  %v8577_v25 = vpack.c.bf16 %v2720_v9, %v2720_v9  ;;  %v2718_v26 = vsel %vm2654_vm11, %v2622_v55, %v2686_v10  ;;  %vm2657_vm12 = vcmp.ge.f32.partialorder %v2625_v41, 0.0  ;;  %v3780_v14 = vld [vmem:[#allocation2 + $0x1c] sm:$0xf] }
 0x288   : > { %v9114_v58 = vpop.f32.mrb[14].mxu0  ;;  %v3238_v1 = vsel %vm10710_vm15, %v2937_v29, %v3237_v4  ;;  %v2942_v13 = vrot.slane %v2940_v18, 7  ;;  %v8575_v30 = vpack.c.bf16 %v2718_v26, %v2718_v26  ;;  %v2689_v31 = vmul.f32 0.01, %v2625_v41 }
 0x289   : > { %v2499_v32 = vpop.f32.mrb[15].mxu0  ;;  %3239 = vst [vmem:[#allocation2 + $0x24] sm:$0xf] %v3238_v1  ;;  %v2962_v34 = vor.u32 %v2960_v8, %v2959_v24  ;;  %v2964_v35 = vrot.slane %v2959_v24, 4  ;;  %v2983_v37 = vshrl.u32 %v8577_v25, 16  ;;  %v2986_v38 = vshll.u32 %v8577_v25, 16 }
 0x28a   : > { %v2945_v39 = vor.u32 %v2943_v20, %v2942_v13  ;;  %v2947_v42 = vrot.slane %v2942_v13, 4  ;;  %v2966_v43 = vshrl.u32 %v8575_v30, 16  ;;  %v2969_v44 = vshll.u32 %v8575_v30, 16 }
 0x28b   : > { %v2963_v45 = vsel %vm10716_vm1, %v2955_v54, %v2962_v34  ;;  %v3249_v46 = vsel %vm10722_vm4, %v2964_v35, %v3248_v12  ;;  %v2985_v47 = vrot.slane %v2983_v37, 7  ;;  %v2721_v48 = vsel %vm2657_vm12, %v2625_v41, %v2689_v31 }
 0x28c   : > { %3247 = vst.msk [vmem:[#allocation2 + $0x34] sm:$0xf] %vm2742_vm5, %v2963_v45  ;;  %3250 = vst [vmem:[#allocation2 + $0x38] sm:$0x1] %v3249_v46  ;;  %v2946_v49 = vsel %vm10716_vm1, %v2938_v17, %v2945_v39  ;;  %v3242_v51 = vsel %vm10722_vm4, %v2947_v42, %v3241_v36  ;;  %v10763_v55 = vrot.slane %v2966_v43, 7  ;;  %v8578_v21 = vpack.c.bf16 %v2721_v48, %v2721_v48 }
 0x28d   : > { %3240 = vst.msk [vmem:[#allocation2 + $0x28] sm:$0xf] %vm2742_vm5, %v2946_v49  ;;  %3243 = vst [vmem:[#allocation2 + $0x2c] sm:$0x1] %v3242_v51  ;;  %v2988_v22 = vor.u32 %v2986_v38, %v2985_v47  ;;  %v2989_v40 = vrot.slane %v2985_v47, 4  ;;  %v2623_v41 = vadd.f32 %v10687_v28, %v10746_v56  ;;  %v2628_v54 = vadd.f32 %v9113_v16, %v10687_v28  ;;  %v9117_v59 = vpop.f32.mrb[16].mxu0 }
 0x28e   : > { %v2971_v60 = vor.u32 %v2969_v44, %v10763_v55  ;;  %v2972_v61 = vrot.slane %v10763_v55, 4  ;;  %v2991_v62 = vshrl.u32 %v8578_v21, 16  ;;  %v2994_v63 = vshll.u32 %v8578_v21, 16  ;;  %v10771_v0 = vpop.f32.mrb[17].mxu0  ;;  %v3262_v16 = vld [vmem:[#allocation2 + $0x50] sm:$0x1] }
 0x28f   : > { %v3259_v3 = vsel %vm10710_vm15, %v2988_v22, %v3258_v52  ;;  %vm2655_vm13 = vcmp.ge.f32.partialorder %v2623_v41, 0.0  ;;  %v2687_v4 = vmul.f32 0.01, %v2623_v41  ;;  %vm2660_vm14 = vcmp.ge.f32.partialorder %v2628_v54, 0.0  ;;  %v10775_v6 = vpop.f32.mrb[18].mxu0 }
 0x290   : > { %3260 = vst [vmem:[#allocation2 + $0x48] sm:$0xf] %v3259_v3  ;;  %v3252_v56 = vsel %vm10710_vm15, %v2971_v60, %v3251_v53  ;;  %v2993_v7 = vrot.slane %v2991_v62, 7  ;;  %v2692_v8 = vmul.f32 0.01, %v2628_v54  ;;  %v2626_v9 = vadd.f32 %v10687_v28, %v2496_v23  ;;  %v10780_v10 = vpop.f32.mrb[19].mxu0 }
 0x291   : > { %3253 = vst [vmem:[#allocation2 + $0x3c] sm:$0xf] %v3252_v56  ;;  %v2719_v29 = vsel %vm2655_vm13, %v2623_v41, %v2687_v4  ;;  %v2629_v17 = vadd.f32 %v9114_v58, %v10687_v28  ;;  %v2627_v18 = vadd.f32 %v10687_v28, %v2499_v32  ;;  %v2632_v20 = vadd.f32 %v9117_v59, %v10687_v28  ;;  %v3255_v32 = vld [vmem:[#allocation2 + $0x44] sm:$0x1]  ;;  %v3272_v52 = vld [vmem:[#allocation2 + $0x60] sm:$0xf] }
 0x292   : > { %v2996_v24 = vor.u32 %v2994_v63, %v2993_v7  ;;  %v2998_v25 = vrot.slane %v2993_v7, 4  ;;  %v8576_v26 = vpack.c.bf16 %v2719_v29, %v2719_v29  ;;  %v2724_v1 = vsel %vm2660_vm14, %v2628_v54, %v2692_v8  ;;  %v3265_v4 = vld [vmem:[#allocation2 + $0x54] sm:$0xf] }
 0x293   : > { %v8581_v12 = vpack.c.bf16 %v2724_v1, %v2724_v1  ;;  %vm2658_vm0 = vcmp.ge.f32.partialorder %v2626_v9, 0.0  ;;  %v2690_v13 = vmul.f32 0.01, %v2626_v9  ;;  %vm2661_vm8 = vcmp.ge.f32.partialorder %v2629_v17, 0.0 }
 0x294   : > { %v2997_v23 = vsel %vm10716_vm1, %v2989_v40, %v2996_v24  ;;  %v3263_v30 = vsel %vm10722_vm4, %v2998_v25, %v3262_v16  ;;  %v2974_v58 = vshrl.u32 %v8576_v26, 16  ;;  %v2977_v31 = vshll.u32 %v8576_v26, 16 }
 0x295   : > { %3261 = vst.msk [vmem:[#allocation2 + $0x4c] sm:$0xf] %vm2742_vm5, %v2997_v23  ;;  %3264 = vst [vmem:[#allocation2 + $0x50] sm:$0x1] %v3263_v30  ;;  %v3017_v34 = vshrl.u32 %v8581_v12, 16  ;;  %v3020_v35 = vshll.u32 %v8581_v12, 16  ;;  %v2722_v36 = vsel %vm2658_vm0, %v2626_v9, %v2690_v13  ;;  %v2630_v25 = vadd.f32 %v10687_v28, %v10771_v0 }
 0x296   : > { %v2693_v37 = vmul.f32 0.01, %v2629_v17  ;;  %v10791_v38 = vpop.f32.mrb[20].mxu0  ;;  %v2976_v39 = vrot.slane %v2974_v58, 7  ;;  %v8579_v42 = vpack.c.bf16 %v2722_v36, %v2722_v36  ;;  %vm2659_vm6 = vcmp.ge.f32.partialorder %v2627_v18, 0.0 }
 0x297   : > { %v2691_v43 = vmul.f32 0.01, %v2627_v18  ;;  %v10793_v44 = vpop.f32.mrb[21].mxu0  ;;  %v3019_v45 = vrot.slane %v3017_v34, 7  ;;  %vm2664_vm9 = vcmp.ge.f32.partialorder %v2632_v20, 0.0  ;;  %v2633_v26 = vadd.f32 %v10775_v6, %v10687_v28 }
 0x298   : > { %v2725_v46 = vsel %vm2661_vm8, %v2629_v17, %v2693_v37  ;;  %v2696_v47 = vmul.f32 0.01, %v2632_v20  ;;  %v10796_v48 = vpop.f32.mrb[22].mxu0  ;;  %v2979_v49 = vor.u32 %v2977_v31, %v2976_v39  ;;  %v2981_v51 = vrot.slane %v2976_v39, 4  ;;  %v3776_v9 = vld [vmem:[#allocation2 + $0xc] sm:$0xf]  ;;  %vm10864_vm8 = vmpackc.low %vm10181_vm3, %vm10181_vm3 }
 0x299   : > { %v3000_v55 = vshrl.u32 %v8579_v42, 16  ;;  %v3003_v21 = vshll.u32 %v8579_v42, 16  ;;  %v10798_v22 = vpop.f32.mrb[23].mxu0  ;;  %v3022_v40 = vor.u32 %v3020_v35, %v3019_v45  ;;  %v3023_v53 = vrot.slane %v3019_v45, 4  ;;  %v3269_v0 = vld [vmem:[#allocation2 + $0x5c] sm:$0x1] }
 0x29a   : > { %v8582_v41 = vpack.c.bf16 %v2725_v46, %v2725_v46  ;;  %v2723_v54 = vsel %vm2659_vm6, %v2627_v18, %v2691_v43  ;;  %v2980_v59 = vsel %vm10716_vm1, %v2972_v61, %v2979_v49  ;;  %v3256_v60 = vsel %vm10722_vm4, %v2981_v51, %v3255_v32  ;;  %v3286_v49 = vld [vmem:[#allocation2 + $0x78] sm:$0xf] }
 0x29b   : > { %v3002_v62 = vrot.slane %v3000_v55, 7  ;;  %v8580_v63 = vpack.c.bf16 %v2723_v54, %v2723_v54  ;;  %3254 = vst.msk [vmem:[#allocation2 + $0x40] sm:$0xf] %vm2742_vm5, %v2980_v59  ;;  %3257 = vst [vmem:[#allocation2 + $0x44] sm:$0x1] %v3256_v60  ;;  %v3273_v3 = vsel %vm10710_vm15, %v3022_v40, %v3272_v52  ;;  %v2728_v8 = vsel %vm2664_vm9, %v2632_v20, %v2696_v47 }
 0x29c   : > { %v3025_v56 = vshrl.u32 %v8582_v41, 16  ;;  %v3028_v7 = vshll.u32 %v8582_v41, 16  ;;  %3274 = vst [vmem:[#allocation2 + $0x60] sm:$0xf] %v3273_v3  ;;  %v8585_v24 = vpack.c.bf16 %v2728_v8, %v2728_v8  ;;  %v3276_v20 = vld [vmem:[#allocation2 + $0x68] sm:$0x1]  ;;  %v2631_v23 = vadd.f32 %v10687_v28, %v10780_v10 }
 0x29d   : > { %v3005_v16 = vor.u32 %v3003_v21, %v3002_v62  ;;  %v3006_v61 = vrot.slane %v3002_v62, 4  ;;  %v3008_v29 = vshrl.u32 %v8580_v63, 16  ;;  %v3011_v17 = vshll.u32 %v8580_v63, 16  ;;  %v10813_v1 = vpop.f32.mrb[24].mxu0  ;;  %v3777_v40 = vld [vmem:[#allocation2 + $0x10] sm:$0xf] }
 0x29e   : > { %v3027_v18 = vrot.slane %v3025_v56, 7  ;;  %v3825_v30 = vshrl.u32 %v3776_v9, 16  ;;  %v10819_v58 = vpop.f32.mrb[25].mxu0  ;;  %v3051_v34 = vshrl.u32 %v8585_v24, 16  ;;  %v3054_v35 = vshll.u32 %v8585_v24, 16 }
 0x29f   : > { %v3266_v12 = vsel %vm10710_vm15, %v3005_v16, %v3265_v4  ;;  %v3010_v13 = vrot.slane %v3008_v29, 7  ;;  %vm3383_vm10 = vsmask.f32 3328  ;;  %v10821_v6 = vpop.f32.mrb[26].mxu0  ;;  %vm2662_vm11 = vcmp.ge.f32.partialorder %v2630_v25, 0.0 }
 0x2a0   : > { %3267 = vst [vmem:[#allocation2 + $0x54] sm:$0xf] %v3266_v12  ;;  %v3030_v31 = vor.u32 %v3028_v7, %v3027_v18  ;;  %v3032_v32 = vrot.slane %v3027_v18, 4  ;;  %v2694_v39 = vmul.f32 0.01, %v2630_v25  ;;  %v10823_v42 = vpop.f32.mrb[27].mxu0 }
 0x2a1   : > { %v3013_v36 = vor.u32 %v3011_v17, %v3010_v13  ;;  %v3015_v37 = vrot.slane %v3010_v13, 4  ;;  %v10829_v45 = vrot.slane %v3051_v34, 7  ;;  %vm2665_vm12 = vcmp.ge.f32.partialorder %v2633_v26, 0.0  ;;  %v3778_v3 = vld [vmem:[#allocation2 + $0x14] sm:$0x1] }
 0x2a2   : > { %v3031_v10 = vsel %vm10716_vm1, %v3023_v53, %v3030_v31  ;;  %v3277_v43 = vsel %vm10722_vm4, %v3032_v32, %v3276_v20  ;;  %v2726_v51 = vsel %vm2662_vm11, %v2630_v25, %v2694_v39  ;;  %v2697_v52 = vmul.f32 0.01, %v2633_v26 }
 0x2a3   : > { %3275 = vst.msk [vmem:[#allocation2 + $0x64] sm:$0xf] %vm2742_vm5, %v3031_v10  ;;  %3278 = vst [vmem:[#allocation2 + $0x68] sm:$0x1] %v3277_v43  ;;  %v3014_v46 = vsel %vm10716_vm1, %v3006_v61, %v3013_v36  ;;  %v3270_v47 = vsel %vm10722_vm4, %v3015_v37, %v3269_v0  ;;  %v3056_v55 = vor.u32 %v3054_v35, %v10829_v45  ;;  %vm2663_vm13 = vcmp.ge.f32.partialorder %v2631_v23, 0.0 }
 0x2a4   : > { %3268 = vst.msk [vmem:[#allocation2 + $0x58] sm:$0xf] %vm2742_vm5, %v3014_v46  ;;  %3271 = vst [vmem:[#allocation2 + $0x5c] sm:$0x1] %v3270_v47  ;;  %v8583_v21 = vpack.c.bf16 %v2726_v51, %v2726_v51  ;;  %vm3384_vm14 = vsmask.f32 7440  ;;  %v2729_v53 = vsel %vm2665_vm12, %v2633_v26, %v2697_v52 }
 0x2a5   : > { %v2695_v41 = vmul.f32 0.01, %v2631_v23  ;;  %v3827_v54 = vrot.slane %v3825_v30, 4  ;;  %v3828_v59 = vshll.u32 %v3776_v9, 16  ;;  %v3287_v60 = vsel %vm10710_vm15, %v3056_v55, %v3286_v49  ;;  %v10844_v56 = vpop.f32.mrb[28].mxu0  ;;  %vm10855_vm0 = vmor %vm3383_vm10, %vm3384_vm14 }
 0x2a6   : > { %v3034_v62 = vshrl.u32 %v8583_v21, 16  ;;  %v8586_v63 = vpack.c.bf16 %v2729_v53, %v2729_v53  ;;  %v10842_v4 = vrot.slane %v6415_v50, 4  ;;  %3288 = vst [vmem:[#allocation2 + $0x78] sm:$0xf] %v3287_v60  ;;  %v3834_v16 = vshll.u32 %v3777_v40, 16  ;;  %v10846_v29 = vpop.f32.mrb[29].mxu0 }
 0x2a7   : > { %v2727_v7 = vsel %vm2663_vm13, %v2631_v23, %v2695_v41  ;;  %v3830_v8 = vrot.slane %v3828_v59, 5  ;;  %v3838_v61 = vshrl.u32 %v3777_v40, 16  ;;  %v3037_v17 = vshll.u32 %v8583_v21, 16  ;;  %v10848_v25 = vpop.f32.mrb[30].mxu0  ;;  %v3279_v26 = vld [vmem:[#allocation2 + $0x6c] sm:$0xf] }
 0x2a8   : > { %v3036_v9 = vrot.slane %v3034_v62, 7  ;;  %v3059_v18 = vshrl.u32 %v8586_v63, 16  ;;  %v8584_v24 = vpack.c.bf16 %v2727_v7, %v2727_v7  ;;  %v3836_v20 = vrot.slane %v3834_v16, 5  ;;  %v10850_v31 = vpop.f32.mrb[31].mxu0  ;;  %v3290_v36 = vld [vmem:[#allocation2 + $0x80] sm:$0x1] }
 0x2a9   : > { %v3831_v12 = vor.u32 %v3830_v8, %v3827_v54  ;;  %v3840_v13 = vrot.slane %v3838_v61, 4  ;;  %v3844_v30 = vshll.u32 %v3778_v3, 16  ;;  %v3062_v0 = vshll.u32 %v8586_v63, 16  ;;  %v3283_v52 = vld [vmem:[#allocation2 + $0x74] sm:$0x1] }
 0x2aa   : > { %v3039_v32 = vor.u32 %v3037_v17, %v3036_v9  ;;  %v3061_v23 = vrot.slane %v3059_v18, 7  ;;  %v3042_v34 = vshrl.u32 %v8584_v24, 16  ;;  %v3057_v35 = vrot.slane %v10829_v45, 4  ;;  %v3779_v53 = vld [vmem:[#allocation2 + $0x18] sm:$0xf]  ;;  %v9830_v45 = vld [vmem:[%s12304_s3 + $0x80] sm:$0xff]  }
 0x2ab   : > { %v3045_v37 = vshll.u32 %v8584_v24, 16  ;;  %v3832_v10 = vrot.slane %v3831_v12, 4  ;;  %v3841_v43 = vor.u32 %v3840_v13, %v3836_v20  ;;  %v3040_v55 = vrot.slane %v3036_v9, 4  ;;  %v3340_v62 = vld [vmem:[#allocation2 + $0x14] sm:$0x1] }
 0x2ac   : > { %v3280_v46 = vsel %vm10710_vm15, %v3039_v32, %v3279_v26  ;;  %v3064_v47 = vor.u32 %v3062_v0, %v3061_v23  ;;  %v3066_v49 = vrot.slane %v3061_v23, 4  ;;  %v3044_v51 = vrot.slane %v3042_v34, 7  ;;  %v3781_v7 = vld [vmem:[#allocation2 + $0x20] sm:$0x1]  ;;  %v4775_v8 = vld [vmem:[#allocation2 + $0x2c] sm:$0x1] }
 0x2ad   : > { %3281 = vst [vmem:[#allocation2 + $0x6c] sm:$0xf] %v3280_v46  ;;  %v3842_v21 = vrot.slane %v3841_v43, 4  ;;  %v3846_v40 = vrot.slane %v3844_v30, 5  ;;  %v3837_v63 = vsel %vm10855_vm0, %v3832_v10, %v3836_v20  ;;  %vm6420_vm3 = vcmp.ne.s16.totalorder %v10842_v4, 0 }
 0x2ae   : > { %v3065_v41 = vsel %vm10716_vm1, %v3057_v35, %v3064_v47  ;;  %v3291_v54 = vsel %vm10722_vm4, %v3066_v49, %v3290_v36  ;;  %v3047_v59 = vor.u32 %v3045_v37, %v3044_v51  ;;  %v3049_v60 = vrot.slane %v3044_v51, 4 }
 0x2af   : > { %3289 = vst.msk [vmem:[#allocation2 + $0x7c] sm:$0xf] %vm2742_vm5, %v3065_v41  ;;  %3292 = vst [vmem:[#allocation2 + $0x80] sm:$0x1] %v3291_v54  ;;  %v3847_v3 = vsel %vm10855_vm0, %v3842_v21, %v3846_v40  ;;  %v10881_v16 = vsel %vm10864_vm8, 65537, %v9938_v57  ;;  %v3849_v18 = vshrl.u32 %v3779_v53, 16  ;;  %v10891_v34 = vsel %vm6420_vm3, %v3781_v7, %v3340_v62 }
 0x2b0   : > { %v3048_v61 = vsel %vm10716_vm1, %v3040_v55, %v3047_v59  ;;  %v3284_v9 = vsel %vm10722_vm4, %v3049_v60, %v3283_v52  ;;  %v8225_v17 = vcombine.low %v3837_v63, %v3847_v3  ;;  %v3430_v24 = vshll.u32 %v3340_v62, 16  ;;  %v3783_v60 = vld [vmem:[#allocation2 + $0x28] sm:$0xf] }
 0x2b1   : > { %3282 = vst.msk [vmem:[#allocation2 + $0x70] sm:$0xf] %vm2742_vm5, %v3048_v61  ;;  %3285 = vst [vmem:[#allocation2 + $0x74] sm:$0x1] %v3284_v9  ;;  %v3852_v26 = vshll.u32 %v3779_v53, 16  ;;  %v3858_v12 = vshll.u32 %v3780_v14, 16  ;;  %v10898_v43 = vsel %vm6420_vm3, %v4775_v8, %v3781_v7  ;;  %v2636_v49 = vadd.f32 %v10791_v38, %v10687_v28 }
 0x2b2   : > { %v3862_v20 = vshrl.u32 %v3780_v14, 16  ;;  %9137 = vmatprep.mubr.msk.bf16.mxu1 %vm384_vm2, %v8225_v17  ;;  %v3851_v13 = vrot.slane %v3849_v18, 4  ;;  %v3868_v57 = vshll.u32 %v3781_v7, 16  ;;  %v4862_v30 = vshll.u32 %v4775_v8, 16  ;;  %v3782_v53 = vld [vmem:[#allocation2 + $0x24] sm:$0xf] }
 0x2b3   : > { %v3854_v32 = vrot.slane %v3852_v26, 5  ;;  %v3860_v23 = vrot.slane %v3858_v12, 5  ;;  %v6413_v35 = vrot.slane %v10881_v16, 7  ;;  %v10894_v36 = vrot.slane %v3430_v24, 5 }
 0x2b4   : > { %v3864_v0 = vrot.slane %v3862_v20, 4  ;;  %v3870_v46 = vrot.slane %v3868_v57, 5  ;;  %v10900_v47 = vrot.slane %v4862_v30, 5  ;;  %v2634_v51 = vadd.f32 %v10687_v28, %v10793_v44 }
 0x2b5   : > { %v3855_v37 = vor.u32 %v3854_v32, %v3851_v13  ;;  %v2637_v21 = vadd.f32 %v10796_v48, %v10687_v28  ;;  %v2635_v40 = vadd.f32 %v10687_v28, %v10798_v22  ;;  %vm2668_vm6 = vcmp.ge.f32.partialorder %v2636_v49, 0.0  ;;  %v9818_v22 = vld [vmem:[%s12304_s3 + $0x8] sm:$0xff]  }
 0x2b6   : > { %v3865_v10 = vor.u32 %v3864_v0, %v3860_v23  ;;  %v2700_v41 = vmul.f32 0.01, %v2636_v49  ;;  %vm2666_vm9 = vcmp.ge.f32.partialorder %v2634_v51, 0.0  ;;  %v2698_v54 = vmul.f32 0.01, %v2634_v51 }
 0x2b7   : > { %v3856_v52 = vrot.slane %v3855_v37, 4  ;;  %vm2669_vm10 = vcmp.ge.f32.partialorder %v2637_v21, 0.0  ;;  %v2701_v44 = vmul.f32 0.01, %v2637_v21  ;;  %vm2667_vm11 = vcmp.ge.f32.partialorder %v2635_v40, 0.0 }
 0x2b8   : > { %v3866_v55 = vrot.slane %v3865_v10, 4  ;;  %v2732_v14 = vsel %vm2668_vm6, %v2636_v49, %v2700_v41  ;;  %v2730_v48 = vsel %vm2666_vm9, %v2634_v51, %v2698_v54  ;;  %v2699_v8 = vmul.f32 0.01, %v2635_v40  ;;  %v3784_v13 = vld [vmem:[#allocation2 + $0x2c] sm:$0x1] }
 0x2b9   : > { %v3861_v59 = vsel %vm10855_vm0, %v3856_v52, %v3860_v23  ;;  %v8589_v63 = vpack.c.bf16 %v2732_v14, %v2732_v14  ;;  %v8587_v3 = vpack.c.bf16 %v2730_v48, %v2730_v48  ;;  %v2733_v7 = vsel %vm2669_vm10, %v2637_v21, %v2701_v44  ;;  %v3300_v37 = vld [vmem:[#allocation2 + $0x90] sm:$0xf]  ;;  %v3293_v51 = vld [vmem:[#allocation2 + $0x84] sm:$0xf] }
 0x2ba   : > { %v3871_v38 = vsel %vm10855_vm0, %v3866_v55, %v3870_v46  ;;  %v8590_v61 = vpack.c.bf16 %v2733_v7, %v2733_v7  ;;  %v3873_v9 = vshrl.u32 %v3782_v53, 16  ;;  %v3876_v17 = vshll.u32 %v3782_v53, 16  ;;  %v3785_v48 = vld [vmem:[#allocation2 + $0x30] sm:$0xf] }
 0x2bb   : > { %v8226_v62 = vcombine.low %v3861_v59, %v3871_v38  ;;  %v3882_v18 = vshll.u32 %v3783_v60, 16  ;;  %v3085_v24 = vshrl.u32 %v8589_v63, 16  ;;  %v3088_v26 = vshll.u32 %v8589_v63, 16  ;;  %v3304_v38 = vld [vmem:[#allocation2 + $0x98] sm:$0x1] }
 0x2bc   : > { %v3068_v12 = vshrl.u32 %v8587_v3, 16  ;;  %v3071_v20 = vshll.u32 %v8587_v3, 16  ;;  %v3093_v57 = vshrl.u32 %v8590_v61, 16  ;;  %v3096_v30 = vshll.u32 %v8590_v61, 16 }
 0x2bd   : > { %9138 = vmatmul.mubr.msk.bf16.vlgmr.msra.gmra.mrb[0].mxu1 %vm384_vm2, %v8226_v62  ;;  %v2731_v32 = vsel %vm2667_vm11, %v2635_v40, %v2699_v8  ;;  %v3875_v23 = vrot.slane %v3873_v9, 4  ;;  %v3087_v0 = vrot.slane %v3085_v24, 7  ;;  %v3878_v49 = vrot.slane %v3876_v17, 5  ;;  %v3786_v8 = vld [vmem:[#allocation2 + $0x34] sm:$0xf] }
 0x2be   : > { %9170 = vmatpush3.bf16.msra.mxu1 %v10681_v27  ;;  %v3070_v10 = vrot.slane %v3068_v12, 7  ;;  %v8588_v46 = vpack.c.bf16 %v2731_v32, %v2731_v32  ;;  %v3095_v52 = vrot.slane %v3093_v57, 7  ;;  %v3884_v55 = vrot.slane %v3882_v18, 5  ;;  %v3297_v18 = vld [vmem:[#allocation2 + $0x8c] sm:$0x1] }
 0x2bf   : > { %9171 = vmatprep.subr.bf16.mxu1 %v9818_v22  ;;  %v3886_v27 = vshrl.u32 %v3783_v60, 16  ;;  %v3892_v21 = vshll.u32 %v3784_v13, 16  ;;  %v3090_v53 = vor.u32 %v3088_v26, %v3087_v0  ;;  %v3091_v41 = vrot.slane %v3087_v0, 4 }
 0x2c0   : > { %v3073_v54 = vor.u32 %v3071_v20, %v3070_v10  ;;  %v3074_v59 = vrot.slane %v3070_v10, 4  ;;  %v3098_v44 = vor.u32 %v3096_v30, %v3095_v52  ;;  %v3100_v40 = vrot.slane %v3095_v52, 4  ;;  %v3787_v30 = vld [vmem:[#allocation2 + $0x38] sm:$0x1] }
 0x2c1   : > { %v3076_v62 = vshrl.u32 %v8588_v46, 16  ;;  %v3079_v14 = vshll.u32 %v8588_v46, 16  ;;  %v3301_v63 = vsel %vm10710_vm15, %v3090_v53, %v3300_v37  ;;  %v3879_v7 = vor.u32 %v3878_v49, %v3875_v23 }
 0x2c2   : > { %9172 = vmatpush3.bf16.msra.mxu1 %v9818_v22  ;;  %v3294_v3 = vsel %vm10710_vm15, %v3073_v54, %v3293_v51  ;;  %v3888_v60 = vrot.slane %v3886_v27, 4  ;;  %3302 = vst [vmem:[#allocation2 + $0x90] sm:$0xf] %v3301_v63  ;;  %v3099_v61 = vsel %vm10716_vm1, %v3091_v41, %v3098_v44  ;;  %v3305_v22 = vsel %vm10722_vm4, %v3100_v40, %v3304_v38  ;;  %v3788_v40 = vld [vmem:[#allocation2 + $0x3c] sm:$0xf] }
 0x2c3   : > { %3295 = vst [vmem:[#allocation2 + $0x84] sm:$0xf] %v3294_v3  ;;  %v3078_v9 = vrot.slane %v3076_v62, 7  ;;  %v3894_v17 = vrot.slane %v3892_v21, 5  ;;  %3303 = vst.msk [vmem:[#allocation2 + $0x94] sm:$0xf] %vm2742_vm5, %v3099_v61  ;;  %v2641_v44 = vadd.f32 %v10821_v6, %v10687_v28 }
 0x2c4   : > { %3306 = vst [vmem:[#allocation2 + $0x98] sm:$0x1] %v3305_v22  ;;  %v3880_v24 = vrot.slane %v3879_v7, 4  ;;  %v3889_v26 = vor.u32 %v3888_v60, %v3884_v55  ;;  %v3897_v12 = vshrl.u32 %v3785_v48, 16  ;;  %v3900_v20 = vshll.u32 %v3785_v48, 16 }
 0x2c5   : > { %v3081_v13 = vor.u32 %v3079_v14, %v3078_v9  ;;  %v3083_v57 = vrot.slane %v3078_v9, 4  ;;  %v3906_v32 = vshll.u32 %v3786_v8, 16  ;;  %v3910_v23 = vshrl.u32 %v3786_v8, 16 }
 0x2c6   : > { %v3885_v0 = vsel %vm10855_vm0, %v3880_v24, %v3884_v55  ;;  %v3890_v37 = vrot.slane %v3889_v26, 4  ;;  %v3899_v10 = vrot.slane %v3897_v12, 4  ;;  %v3902_v46 = vrot.slane %v3900_v20, 5 }
 0x2c7   : > { %v3082_v49 = vsel %vm10716_vm1, %v3074_v59, %v3081_v13  ;;  %v3298_v51 = vsel %vm10722_vm4, %v3083_v57, %v3297_v18  ;;  %v3908_v52 = vrot.slane %v3906_v32, 5  ;;  %v3912_v27 = vrot.slane %v3910_v23, 4  ;;  %v3789_v13 = vld [vmem:[#allocation2 + $0x40] sm:$0xf]  ;;  %v3314_v23 = vld [vmem:[#allocation2 + $0xa8] sm:$0xf] }
 0x2c8   : > { %3296 = vst.msk [vmem:[#allocation2 + $0x88] sm:$0xf] %vm2742_vm5, %v3082_v49  ;;  %3299 = vst [vmem:[#allocation2 + $0x8c] sm:$0x1] %v3298_v51  ;;  %v3895_v21 = vsel %vm10855_vm0, %v3890_v37, %v3894_v17  ;;  %v3903_v53 = vor.u32 %v3902_v46, %v3899_v10  ;;  %v3916_v41 = vshll.u32 %v3787_v30, 16  ;;  %v2640_v55 = vadd.f32 %v10813_v1, %v10687_v28 }
 0x2c9   : > { %v8227_v54 = vcombine.low %v3885_v0, %v3895_v21  ;;  %v3913_v38 = vor.u32 %v3912_v27, %v3908_v52  ;;  %v2638_v59 = vadd.f32 %v10687_v28, %v10819_v58  ;;  %vm2673_vm14 = vcmp.ge.f32.partialorder %v2641_v44, 0.0  ;;  %v3307_v49 = vld [vmem:[#allocation2 + $0x9c] sm:$0xf] }
 0x2ca   : > { %v3904_v62 = vrot.slane %v3903_v53, 4  ;;  %v3918_v14 = vrot.slane %v3916_v41, 5  ;;  %vm2672_vm12 = vcmp.ge.f32.partialorder %v2640_v55, 0.0  ;;  %v2704_v48 = vmul.f32 0.01, %v2640_v55 }
 0x2cb   : > { %9141 = vmatprep.mubr.msk.bf16.mxu1 %vm384_vm2, %v8227_v54  ;;  %v3914_v63 = vrot.slane %v3913_v38, 4  ;;  %vm2670_vm13 = vcmp.ge.f32.partialorder %v2638_v59, 0.0  ;;  %v2702_v3 = vmul.f32 0.01, %v2638_v59  ;;  %v2705_v60 = vmul.f32 0.01, %v2641_v44 }
 0x2cc   : > { %v3909_v1 = vsel %vm10855_vm0, %v3904_v62, %v3908_v52  ;;  %v2736_v7 = vsel %vm2672_vm12, %v2640_v55, %v2704_v48  ;;  %v2639_v58 = vadd.f32 %v10687_v28, %v10823_v42  ;;  %v3921_v22 = vshrl.u32 %v3788_v40, 16  ;;  %v3318_v55 = vld [vmem:[#allocation2 + $0xb0] sm:$0x1] }
 0x2cd   : > { %v3919_v6 = vsel %vm10855_vm0, %v3914_v63, %v3918_v14  ;;  %v8593_v8 = vpack.c.bf16 %v2736_v7, %v2736_v7  ;;  %v2734_v61 = vsel %vm2670_vm13, %v2638_v59, %v2702_v3  ;;  %v2737_v18 = vsel %vm2673_vm14, %v2641_v44, %v2705_v60 }
 0x2ce   : > { %v8228_v9 = vcombine.low %v3909_v1, %v3919_v6  ;;  %v8591_v17 = vpack.c.bf16 %v2734_v61, %v2734_v61  ;;  %vm2671_vm6 = vcmp.ge.f32.partialorder %v2639_v58, 0.0  ;;  %v8594_v12 = vpack.c.bf16 %v2737_v18, %v2737_v18  ;;  %v3791_v1 = vld [vmem:[#allocation2 + $0x48] sm:$0xf] }
 0x2cf   : > { %v3119_v24 = vshrl.u32 %v8593_v8, 16  ;;  %v3122_v26 = vshll.u32 %v8593_v8, 16  ;;  %v2703_v20 = vmul.f32 0.01, %v2639_v58  ;;  %v3923_v28 = vrot.slane %v3921_v22, 4 }
 0x2d0   : > { %9142 = vmatmul.mubr.msk.bf16.gmra.mrb[4].mxu1 %vm384_vm2, %v8228_v9  ;;  %v3102_v57 = vshrl.u32 %v8591_v17, 16  ;;  %v3105_v30 = vshll.u32 %v8591_v17, 16  ;;  %v3924_v42 = vshll.u32 %v3788_v40, 16  ;;  %v3127_v0 = vshrl.u32 %v8594_v12, 16  ;;  %v3790_v40 = vld [vmem:[#allocation2 + $0x44] sm:$0x1] }
 0x2d1   : > { %v3121_v32 = vrot.slane %v3119_v24, 7  ;;  %v3130_v37 = vshll.u32 %v8594_v12, 16  ;;  %v2735_v10 = vsel %vm2671_vm6, %v2639_v58, %v2703_v20  ;;  %v3930_v27 = vshll.u32 %v3789_v13, 16  ;;  %v3792_v8 = vld [vmem:[#allocation2 + $0x4c] sm:$0xf] }
 0x2d2   : > { %v3104_v46 = vrot.slane %v3102_v57, 7  ;;  %v8592_v51 = vpack.c.bf16 %v2735_v10, %v2735_v10  ;;  %v3926_v52 = vrot.slane %v3924_v42, 5  ;;  %v3129_v41 = vrot.slane %v3127_v0, 7  ;;  %v3311_v9 = vld [vmem:[#allocation2 + $0xa4] sm:$0x1] }
 0x2d3   : > { %v3124_v21 = vor.u32 %v3122_v26, %v3121_v32  ;;  %v3125_v53 = vrot.slane %v3121_v32, 4  ;;  %v3934_v54 = vshrl.u32 %v3789_v13, 16  ;;  %v3932_v58 = vrot.slane %v3930_v27, 5  ;;  %v3793_v20 = vld [vmem:[#allocation2 + $0x50] sm:$0x1] }
 0x2d4   : > { %v3107_v38 = vor.u32 %v3105_v30, %v3104_v46  ;;  %v3108_v59 = vrot.slane %v3104_v46, 4  ;;  %v3110_v44 = vshrl.u32 %v8592_v51, 16  ;;  %v3113_v62 = vshll.u32 %v8592_v51, 16  ;;  %v9835_v27 = vld [vmem:[%s12303_s2] ss:$0 sm:$0xff] }
 0x2d5   : > { %v3315_v14 = vsel %vm10710_vm15, %v3124_v21, %v3314_v23  ;;  %v3132_v48 = vor.u32 %v3130_v37, %v3129_v41  ;;  %v3134_v63 = vrot.slane %v3129_v41, 4  ;;  %v3927_v3 = vor.u32 %v3926_v52, %v3923_v28 }
 0x2d6   : > { %3316 = vst [vmem:[#allocation2 + $0xa8] sm:$0xf] %v3315_v14  ;;  %v3308_v7 = vsel %vm10710_vm15, %v3107_v38, %v3307_v49  ;;  %v3112_v60 = vrot.slane %v3110_v44, 7  ;;  %v3936_v6 = vrot.slane %v3934_v54, 4  ;;  %v3940_v18 = vshll.u32 %v3790_v40, 16 }
 0x2d7   : > { %3309 = vst [vmem:[#allocation2 + $0x9c] sm:$0xf] %v3308_v7  ;;  %v3133_v61 = vsel %vm10716_vm1, %v3125_v53, %v3132_v48  ;;  %v3319_v22 = vsel %vm10722_vm4, %v3134_v63, %v3318_v55  ;;  %v3928_v17 = vrot.slane %v3927_v3, 4  ;;  %v3945_v13 = vshrl.u32 %v3791_v1, 16  ;;  %v3794_v44 = vld [vmem:[#allocation2 + $0x54] sm:$0xf] }
 0x2d8   : > { %3317 = vst.msk [vmem:[#allocation2 + $0xac] sm:$0xf] %vm2742_vm5, %v3133_v61  ;;  %3320 = vst [vmem:[#allocation2 + $0xb0] sm:$0x1] %v3319_v22  ;;  %v3115_v24 = vor.u32 %v3113_v62, %v3112_v60  ;;  %v3117_v26 = vrot.slane %v3112_v60, 4  ;;  %v3937_v12 = vor.u32 %v3936_v6, %v3932_v58  ;;  %v3942_v30 = vrot.slane %v3940_v18, 5 }
 0x2d9   : > { %v3933_v57 = vsel %vm10855_vm0, %v3928_v17, %v3932_v58  ;;  %v3948_v28 = vshll.u32 %v3791_v1, 16  ;;  %v3954_v42 = vshll.u32 %v3792_v8, 16  ;;  %v3947_v37 = vrot.slane %v3945_v13, 4 }
 0x2da   : > { %v3116_v32 = vsel %vm10716_vm1, %v3108_v59, %v3115_v24  ;;  %v3312_v23 = vsel %vm10722_vm4, %v3117_v26, %v3311_v9  ;;  %v3938_v0 = vrot.slane %v3937_v12, 4  ;;  %v3958_v49 = vshrl.u32 %v3792_v8, 16  ;;  %v3795_v24 = vld [vmem:[#allocation2 + $0x58] sm:$0xf] }
 0x2db   : > { %3310 = vst.msk [vmem:[#allocation2 + $0xa0] sm:$0xf] %vm2742_vm5, %v3116_v32  ;;  %3313 = vst [vmem:[#allocation2 + $0xa4] sm:$0x1] %v3312_v23  ;;  %v3950_v10 = vrot.slane %v3948_v28, 5  ;;  %v3956_v46 = vrot.slane %v3954_v42, 5  ;;  %v2644_v21 = vadd.f32 %v9835_v27, %v10844_v56  ;;  %v2642_v53 = vadd.f32 %v9835_v27, %v10846_v29 }
 0x2dc   : > { %v3964_v51 = vshll.u32 %v3793_v20, 16  ;;  %v3943_v52 = vsel %vm10855_vm0, %v3938_v0, %v3942_v30  ;;  %v2645_v41 = vadd.f32 %v9835_v27, %v10848_v25  ;;  %v3960_v38 = vrot.slane %v3958_v49, 4  ;;  %v3321_v32 = vld [vmem:[#allocation2 + $0xb4] sm:$0xf] }
 0x2dd   : > { %v8229_v55 = vcombine.low %v3933_v57, %v3943_v52  ;;  %v3951_v54 = vor.u32 %v3950_v10, %v3947_v37  ;;  %vm2676_vm9 = vcmp.ge.f32.partialorder %v2644_v21, 0.0  ;;  %v2708_v62 = vmul.f32 0.01, %v2644_v21  ;;  %v3328_v57 = vld [vmem:[#allocation2 + $0xc0] sm:$0xf] }
 0x2de   : > { %v3966_v59 = vrot.slane %v3964_v51, 5  ;;  %vm2674_vm10 = vcmp.ge.f32.partialorder %v2642_v53, 0.0  ;;  %v2706_v40 = vmul.f32 0.01, %v2642_v53  ;;  %v3961_v48 = vor.u32 %v3960_v38, %v3956_v46 }
 0x2df   : > { %9145 = vmatprep.mubr.msk.bf16.mxu1 %vm384_vm2, %v8229_v55  ;;  %v3952_v14 = vrot.slane %v3951_v54, 4  ;;  %vm2677_vm11 = vcmp.ge.f32.partialorder %v2645_v41, 0.0  ;;  %v2709_v63 = vmul.f32 0.01, %v2645_v41  ;;  %v2740_v56 = vsel %vm2676_vm9, %v2644_v21, %v2708_v62  ;;  %v3796_v55 = vld [vmem:[#allocation2 + $0x5c] sm:$0x1] }
 0x2e0   : > { %v2738_v3 = vsel %vm2674_vm10, %v2642_v53, %v2706_v40  ;;  %v2643_v29 = vadd.f32 %v9835_v27, %v10850_v31  ;;  %v3969_v25 = vshrl.u32 %v3794_v44, 16  ;;  %v3962_v7 = vrot.slane %v3961_v48, 4  ;;  %v3797_v27 = vld [vmem:[#allocation2 + $0x60] sm:$0xf] }
 0x2e1   : > { %v3957_v1 = vsel %vm10855_vm0, %v3952_v14, %v3956_v46  ;;  %v8597_v60 = vpack.c.bf16 %v2740_v56, %v2740_v56  ;;  %v8595_v58 = vpack.c.bf16 %v2738_v3, %v2738_v3  ;;  %v2741_v6 = vsel %vm2677_vm11, %v2645_v41, %v2709_v63  ;;  %v3325_v56 = vld [vmem:[#allocation2 + $0xbc] sm:$0x1] }
 0x2e2   : > { %vm2675_vm12 = vcmp.ge.f32.partialorder %v2643_v29, 0.0  ;;  %v2707_v8 = vmul.f32 0.01, %v2643_v29  ;;  %v3971_v61 = vrot.slane %v3969_v25, 4  ;;  %v3967_v22 = vsel %vm10855_vm0, %v3962_v7, %v3966_v59 }
 0x2e3   : > { %v3153_v9 = vshrl.u32 %v8597_v60, 16  ;;  %v3156_v17 = vshll.u32 %v8597_v60, 16  ;;  %v3136_v18 = vshrl.u32 %v8595_v58, 16  ;;  %v8230_v26 = vcombine.low %v3957_v1, %v3967_v22  ;;  %v3798_v1 = vld [vmem:[#allocation2 + $0x64] sm:$0xf] }
 0x2e4   : > { %v3139_v31 = vshll.u32 %v8595_v58, 16  ;;  %v8598_v12 = vpack.c.bf16 %v2741_v6, %v2741_v6  ;;  %v2739_v20 = vsel %vm2675_vm12, %v2643_v29, %v2707_v8  ;;  %v3972_v42 = vshll.u32 %v3794_v44, 16  ;;  %v3332_v44 = vld [vmem:[#allocation2 + $0xc8] sm:$0x1] }
 0x2e5   : > { %v3155_v13 = vrot.slane %v3153_v9, 7  ;;  %v3138_v30 = vrot.slane %v3136_v18, 7  ;;  %v8596_v28 = vpack.c.bf16 %v2739_v20, %v2739_v20  ;;  %9146 = vmatmul.mubr.msk.bf16.gmra.mrb[8].mxu1 %vm384_vm2, %v8230_v26  ;;  %v3978_v37 = vshll.u32 %v3795_v24, 16  ;;  %v3799_v22 = vld [vmem:[#allocation2 + $0x68] sm:$0x1] }
 0x2e6   : > { %v3161_v23 = vshrl.u32 %v8598_v12, 16  ;;  %v3164_v0 = vshll.u32 %v8598_v12, 16  ;;  %v3982_v10 = vshrl.u32 %v3795_v24, 16  ;;  %v3974_v54 = vrot.slane %v3972_v42, 5  ;;  %v3800_v24 = vld [vmem:[#allocation2 + $0x6c] sm:$0xf] }
 0x2e7   : > { %v3158_v46 = vor.u32 %v3156_v17, %v3155_v13  ;;  %v3159_v49 = vrot.slane %v3155_v13, 4  ;;  %v3141_v51 = vor.u32 %v3139_v31, %v3138_v30  ;;  %v3142_v52 = vrot.slane %v3138_v30, 4  ;;  %v3801_v13 = vld [vmem:[#allocation2 + $0x70] sm:$0xf] }
 0x2e8   : > { %v3163_v21 = vrot.slane %v3161_v23, 7  ;;  %v3144_v53 = vshrl.u32 %v8596_v28, 16  ;;  %v3147_v41 = vshll.u32 %v8596_v28, 16  ;;  %v3980_v62 = vrot.slane %v3978_v37, 5  ;;  %v3803_v37 = vld [vmem:[#allocation2 + $0x78] sm:$0xf] }
 0x2e9   : > { %v3329_v38 = vsel %vm10710_vm15, %v3158_v46, %v3328_v57  ;;  %v3322_v59 = vsel %vm10710_vm15, %v3141_v51, %v3321_v32  ;;  %v3984_v40 = vrot.slane %v3982_v10, 4  ;;  %v3975_v3 = vor.u32 %v3974_v54, %v3971_v61  ;;  %v3802_v32 = vld [vmem:[#allocation2 + $0x74] sm:$0x1] }
 0x2ea   : > { %3330 = vst [vmem:[#allocation2 + $0xc0] sm:$0xf] %v3329_v38  ;;  %3323 = vst [vmem:[#allocation2 + $0xb4] sm:$0xf] %v3322_v59  ;;  %v3166_v14 = vor.u32 %v3164_v0, %v3163_v21  ;;  %v3168_v48 = vrot.slane %v3163_v21, 4  ;;  %v3146_v63 = vrot.slane %v3144_v53, 7 }
 0x2eb   : > { %v3985_v29 = vor.u32 %v3984_v40, %v3980_v62  ;;  %v3988_v25 = vshll.u32 %v3796_v55, 16  ;;  %v3993_v7 = vshrl.u32 %v3797_v27, 16  ;;  %v3996_v60 = vshll.u32 %v3797_v27, 16  ;;  %v3805_v59 = vld [vmem:[#allocation2 + $0x80] sm:$0x1] }
 0x2ec   : > { %v3167_v58 = vsel %vm10716_vm1, %v3159_v49, %v3166_v14  ;;  %v3333_v2 = vsel %vm10722_vm4, %v3168_v48, %v3332_v44  ;;  %v3149_v6 = vor.u32 %v3147_v41, %v3146_v63  ;;  %v3151_v8 = vrot.slane %v3146_v63, 4  ;;  %v3804_v41 = vld [vmem:[#allocation2 + $0x7c] sm:$0xf]  ;;  %v3806_v63 = vld [vmem:[#allocation2 + $0x84] sm:$0xf] }
 0x2ed   : > { %3331 = vst.msk [vmem:[#allocation2 + $0xc4] sm:$0xf] %vm2742_vm5, %v3167_v58  ;;  %3334 = vst [vmem:[#allocation2 + $0xc8] sm:$0x1] %v3333_v2  ;;  %v3976_v9 = vrot.slane %v3975_v3, 4  ;;  %v3986_v17 = vrot.slane %v3985_v29, 4 }
 0x2ee   : > { %v3990_v61 = vrot.slane %v3988_v25, 5  ;;  %v3995_v18 = vrot.slane %v3993_v7, 4  ;;  %v3150_v26 = vsel %vm10716_vm1, %v3142_v52, %v3149_v6  ;;  %v3326_v31 = vsel %vm10722_vm4, %v3151_v8, %v3325_v56 }
 0x2ef   : > { %v3998_v12 = vrot.slane %v3996_v60, 5  ;;  %v4002_v20 = vshll.u32 %v3798_v1, 16  ;;  %3324 = vst.msk [vmem:[#allocation2 + $0xb8] sm:$0xf] %vm2742_vm5, %v3150_v26  ;;  %3327 = vst [vmem:[#allocation2 + $0xbc] sm:$0x1] %v3326_v31  ;;  %v3981_v57 = vsel %vm10855_vm0, %v3976_v9, %v3980_v62 }
 0x2f0   : > { %v3991_v30 = vsel %vm10855_vm0, %v3986_v17, %v3990_v61  ;;  %v4006_v28 = vshrl.u32 %v3798_v1, 16  ;;  %v4012_v42 = vshll.u32 %v3799_v22, 16  ;;  %v4017_v19 = vshrl.u32 %v3800_v24, 16  ;;  %v3807_v22 = vld [vmem:[#allocation2 + $0x88] sm:$0xf] }
 0x2f1   : > { %v8231_v11 = vcombine.low %v3981_v57, %v3991_v30  ;;  %v3999_v23 = vor.u32 %v3998_v12, %v3995_v18  ;;  %v4004_v0 = vrot.slane %v4002_v20, 5  ;;  %v4020_v49 = vshll.u32 %v3800_v24, 16  ;;  %v3808_v26 = vld [vmem:[#allocation2 + $0x8c] sm:$0x1]  ;;  %v3809_v57 = vld [vmem:[#allocation2 + $0x90] sm:$0xf] }
 0x2f2   : > { %v4008_v10 = vrot.slane %v4006_v28, 4  ;;  %v4014_v46 = vrot.slane %v4012_v42, 5  ;;  %v4026_v51 = vshll.u32 %v3801_v13, 16  ;;  %v4019_v27 = vrot.slane %v4017_v19, 4 }
 0x2f3   : > { %9149 = vmatprep.mubr.msk.bf16.mxu1 %vm384_vm2, %v8231_v11  ;;  %v4000_v52 = vrot.slane %v3999_v23, 4  ;;  %v4030_v21 = vshrl.u32 %v3801_v13, 16  ;;  %v4036_v53 = vshll.u32 %v3802_v32, 16  ;;  %v4022_v54 = vrot.slane %v4020_v49, 5 }
 0x2f4   : > { %v4009_v55 = vor.u32 %v4008_v10, %v4004_v0  ;;  %v4028_v38 = vrot.slane %v4026_v51, 5  ;;  %v4041_v44 = vshrl.u32 %v3803_v37, 16  ;;  %v4044_v48 = vshll.u32 %v3803_v37, 16  ;;  %v3810_v37 = vld [vmem:[#allocation2 + $0x94] sm:$0xf] }
 0x2f5   : > { %v4005_v62 = vsel %vm10855_vm0, %v4000_v52, %v4004_v0  ;;  %v4032_v40 = vrot.slane %v4030_v21, 4  ;;  %v4038_v14 = vrot.slane %v4036_v53, 5  ;;  %v4023_v3 = vor.u32 %v4022_v54, %v4019_v27  ;;  %v9819_v52 = vld [vmem:[%s12304_s3 + $0x10] sm:$0xff]  }
 0x2f6   : > { %v4010_v56 = vrot.slane %v4009_v55, 4  ;;  %v4043_v29 = vrot.slane %v4041_v44, 4  ;;  %v4050_v25 = vshll.u32 %v3804_v41, 16  ;;  %v4046_v7 = vrot.slane %v4044_v48, 5 }
 0x2f7   : > { %v4033_v1 = vor.u32 %v4032_v40, %v4028_v38  ;;  %v4054_v60 = vshrl.u32 %v3804_v41, 16  ;;  %v4060_v58 = vshll.u32 %v3805_v59, 16  ;;  %v4024_v6 = vrot.slane %v4023_v3, 4  ;;  %v3811_v41 = vld [vmem:[#allocation2 + $0x98] sm:$0x1] }
 0x2f8   : > { %v4015_v2 = vsel %vm10855_vm0, %v4010_v56, %v4014_v46  ;;  %v4052_v8 = vrot.slane %v4050_v25, 5  ;;  %v4065_v9 = vshrl.u32 %v3806_v63, 16  ;;  %v4047_v18 = vor.u32 %v4046_v7, %v4043_v29  ;;  %v3813_v56 = vld [vmem:[#allocation2 + $0xa0] sm:$0xf]  ;;  %v11023_v7 = vld [vmem:[%s12304_s3 + $0x30] sm:$0xff]  }
 0x2f9   : > { %v8232_v17 = vcombine.low %v4005_v62, %v4015_v2  ;;  %v4034_v61 = vrot.slane %v4033_v1, 4  ;;  %v4056_v24 = vrot.slane %v4054_v60, 4  ;;  %v4029_v31 = vsel %vm10855_vm0, %v4024_v6, %v4028_v38  ;;  %v3812_v62 = vld [vmem:[#allocation2 + $0x9c] sm:$0xf] }
 0x2fa   : > { %v4062_v12 = vrot.slane %v4060_v58, 5  ;;  %v4067_v20 = vrot.slane %v4065_v9, 4  ;;  %v4068_v13 = vshll.u32 %v3806_v63, 16  ;;  %v4048_v28 = vrot.slane %v4047_v18, 4 }
 0x2fb   : > { %9150 = vmatmul.mubr.msk.bf16.gmra.mrb[12].mxu1 %vm384_vm2, %v8232_v17  ;;  %v4039_v30 = vsel %vm10855_vm0, %v4034_v61, %v4038_v14  ;;  %v4057_v42 = vor.u32 %v4056_v24, %v4052_v8  ;;  %v4074_v32 = vshll.u32 %v3807_v22, 16  ;;  %v4078_v0 = vshrl.u32 %v3807_v22, 16  ;;  %v3814_v17 = vld [vmem:[#allocation2 + $0xa4] sm:$0x1] }
 0x2fc   : > { %v8233_v11 = vcombine.low %v4029_v31, %v4039_v30  ;;  %v4070_v23 = vrot.slane %v4068_v13, 5  ;;  %v4084_v19 = vshll.u32 %v3808_v26, 16  ;;  %v4053_v10 = vsel %vm10855_vm0, %v4048_v28, %v4052_v8  ;;  %v3815_v8 = vld [vmem:[#allocation2 + $0xa8] sm:$0xf] }
 0x2fd   : > { %v4058_v46 = vrot.slane %v4057_v42, 4  ;;  %v4076_v49 = vrot.slane %v4074_v32, 5  ;;  %v4089_v51 = vshrl.u32 %v3809_v57, 16  ;;  %v4080_v21 = vrot.slane %v4078_v0, 4 }
 0x2fe   : > { %9153 = vmatprep.mubr.msk.bf16.mxu1 %vm384_vm2, %v8233_v11  ;;  %v4071_v27 = vor.u32 %v4070_v23, %v4067_v20  ;;  %v4086_v53 = vrot.slane %v4084_v19, 5  ;;  %v4092_v55 = vshll.u32 %v3809_v57, 16  ;;  %v4098_v59 = vshll.u32 %v3810_v37, 16  ;;  %v3816_v20 = vld [vmem:[#allocation2 + $0xac] sm:$0xf] }
 0x2ff   : > { %v4063_v54 = vsel %vm10855_vm0, %v4058_v46, %v4062_v12  ;;  %v4091_v38 = vrot.slane %v4089_v51, 4  ;;  %v4102_v44 = vshrl.u32 %v3810_v37, 16  ;;  %v4081_v48 = vor.u32 %v4080_v21, %v4076_v49  ;;  %v3817_v37 = vld [vmem:[#allocation2 + $0xb0] sm:$0x1] }
 0x300   : > { %v8234_v40 = vcombine.low %v4053_v10, %v4063_v54  ;;  %v4072_v14 = vrot.slane %v4071_v27, 4  ;;  %v4094_v63 = vrot.slane %v4092_v55, 5  ;;  %v4100_v3 = vrot.slane %v4098_v59, 5 }
 0x301   : > { %v4104_v29 = vrot.slane %v4102_v44, 4  ;;  %v4108_v25 = vshll.u32 %v3811_v41, 16  ;;  %v4606_v1 = vand.u32 %v9819_v52, %v9986_v5  ;;  %v4082_v58 = vrot.slane %v4081_v48, 4 }
 0x302   : > { %v4077_v60 = vsel %vm10855_vm0, %v4072_v14, %v4076_v49  ;;  %v4095_v2 = vor.u32 %v4094_v63, %v4091_v38  ;;  %v4113_v6 = vshrl.u32 %v3812_v62, 16  ;;  %v4116_v61 = vshll.u32 %v3812_v62, 16  ;;  %v3818_v49 = vld [vmem:[#allocation2 + $0xb4] sm:$0xf] }
 0x303   : > { %9154 = vmatmul.mubr.msk.bf16.gmra.mrb[16].mxu1 %vm384_vm2, %v8234_v40  ;;  %v4105_v22 = vor.u32 %v4104_v29, %v4100_v3  ;;  %v4110_v9 = vrot.slane %v4108_v25, 5  ;;  %9173 = vmatprep.subr.bf16.mxu1 %v4606_v1  ;;  %v4122_v18 = vshll.u32 %v3813_v56, 16  ;;  %v4087_v24 = vsel %vm10855_vm0, %v4082_v58, %v4086_v53  ;;  %v3819_v53 = vld [vmem:[#allocation2 + $0xb8] sm:$0xf]  ;;  %v3821_v29 = vld [vmem:[#allocation2 + $0xc0] sm:$0xf] }
 0x304   : > { %v4096_v26 = vrot.slane %v4095_v2, 4  ;;  %9174 = vmatpush3.bf16.msra.mxu1 %v4606_v1  ;;  %v4115_v31 = vrot.slane %v4113_v6, 4  ;;  %v4126_v12 = vshrl.u32 %v3813_v56, 16  ;;  %v8235_v13 = vcombine.low %v4077_v60, %v4087_v24  ;;  %v3820_v56 = vld [vmem:[#allocation2 + $0xbc] sm:$0x1] }
 0x305   : > { %v4106_v57 = vrot.slane %v4105_v22, 4  ;;  %v4118_v30 = vrot.slane %v4116_v61, 5  ;;  %v4124_v28 = vrot.slane %v4122_v18, 5  ;;  %9207 = vmatprep.subr.bf16.mxu1 %v11023_v7  ;;  %v4132_v11 = vshll.u32 %v3814_v17, 16  ;;  %v3822_v2 = vld [vmem:[#allocation2 + $0xc4] sm:$0xf] }
 0x306   : > { %v4101_v42 = vsel %vm10855_vm0, %v4096_v26, %v4100_v3  ;;  %v4128_v32 = vrot.slane %v4126_v12, 4  ;;  %v4137_v23 = vshrl.u32 %v3815_v8, 16  ;;  %9157 = vmatprep.mubr.msk.bf16.mxu1 %vm384_vm2, %v8235_v13  ;;  %v4140_v10 = vshll.u32 %v3815_v8, 16  ;;  %v3823_v12 = vld [vmem:[#allocation2 + $0xc8] sm:$0x1] }
 0x307   : > { %v4111_v0 = vsel %vm10855_vm0, %v4106_v57, %v4110_v9  ;;  %v4119_v19 = vor.u32 %v4118_v30, %v4115_v31  ;;  %v4146_v46 = vshll.u32 %v3816_v20, 16  ;;  %v4134_v27 = vrot.slane %v4132_v11, 5 }
 0x308   : > { %v8236_v51 = vcombine.low %v4101_v42, %v4111_v0  ;;  %v4129_v52 = vor.u32 %v4128_v32, %v4124_v28  ;;  %v4139_v21 = vrot.slane %v4137_v23, 4  ;;  %v4142_v55 = vrot.slane %v4140_v10, 5  ;;  %v3335_v32 = vld [vmem:[#allocation2] sm:$0xf] }
 0x309   : > { %v4120_v41 = vrot.slane %v4119_v19, 4  ;;  %v4148_v54 = vrot.slane %v4146_v46, 5  ;;  %v4150_v38 = vshrl.u32 %v3816_v20, 16  ;;  %v4156_v44 = vshll.u32 %v3817_v37, 16 }
 0x30a   : > { %v4130_v59 = vrot.slane %v4129_v52, 4  ;;  %v4161_v62 = vshrl.u32 %v3818_v49, 16  ;;  %v4164_v40 = vshll.u32 %v3818_v49, 16  ;;  %v4143_v48 = vor.u32 %v4142_v55, %v4139_v21 }
 0x30b   : > { %9158 = vmatmul.mubr.msk.bf16.gmra.mrb[20].mxu1 %vm384_vm2, %v8236_v51  ;;  %v4125_v14 = vsel %vm10855_vm0, %v4120_v41, %v4124_v28  ;;  %v4152_v63 = vrot.slane %v4150_v38, 4  ;;  %v4170_v3 = vshll.u32 %v3819_v53, 16  ;;  %v4158_v1 = vrot.slane %v4156_v44, 5  ;;  %v3337_v41 = vld [vmem:[#allocation2 + $0x8] sm:$0x1] }
 0x30c   : > { %v4135_v25 = vsel %vm10855_vm0, %v4130_v59, %v4134_v27  ;;  %v4163_v60 = vrot.slane %v4161_v62, 4  ;;  %v4166_v58 = vrot.slane %v4164_v40, 5  ;;  %v4144_v8 = vrot.slane %v4143_v48, 4  ;;  %v3336_v27 = vld [vmem:[#allocation2 + $0x4] sm:$0xf] }
 0x30d   : > { %v8237_v6 = vcombine.low %v4125_v14, %v4135_v25  ;;  %v4153_v22 = vor.u32 %v4152_v63, %v4148_v54  ;;  %v4172_v9 = vrot.slane %v4170_v3, 5  ;;  %v4174_v61 = vshrl.u32 %v3819_v53, 16  ;;  %v3338_v48 = vld [vmem:[#allocation2 + $0xc] sm:$0xf]  ;;  %v3339_v63 = vld [vmem:[#allocation2 + $0x10] sm:$0xf] }
 0x30e   : > { %v4167_v17 = vor.u32 %v4166_v58, %v4163_v60  ;;  %v4180_v18 = vshll.u32 %v3820_v56, 16  ;;  %v4185_v24 = vshrl.u32 %v3821_v29, 16  ;;  %v4149_v26 = vsel %vm10855_vm0, %v4144_v8, %v4148_v54 }
 0x30f   : > { %9161 = vmatprep.mubr.msk.bf16.mxu1 %vm384_vm2, %v8237_v6  ;;  %v4154_v31 = vrot.slane %v4153_v22, 4  ;;  %v4188_v20 = vshll.u32 %v3821_v29, 16  ;;  %v4194_v13 = vshll.u32 %v3822_v2, 16  ;;  %v4176_v30 = vrot.slane %v4174_v61, 4 }
 0x310   : > { %v4168_v57 = vrot.slane %v4167_v17, 4  ;;  %v4182_v28 = vrot.slane %v4180_v18, 5  ;;  %v4187_v42 = vrot.slane %v4185_v24, 4  ;;  %v4198_v19 = vshrl.u32 %v3822_v2, 16  ;;  %v3341_v17 = vld [vmem:[#allocation2 + $0x18] sm:$0xf] }
 0x311   : > { %v4159_v11 = vsel %vm10855_vm0, %v4154_v31, %v4158_v1  ;;  %v4190_v23 = vrot.slane %v4188_v20, 5  ;;  %v4196_v0 = vrot.slane %v4194_v13, 5  ;;  %v4177_v46 = vor.u32 %v4176_v30, %v4172_v9  ;;  %v3342_v31 = vld [vmem:[#allocation2 + $0x1c] sm:$0xf] }
 0x312   : > { %v8238_v37 = vcombine.low %v4149_v26, %v4159_v11  ;;  %v4173_v10 = vsel %vm10855_vm0, %v4168_v57, %v4172_v9  ;;  %v4204_v49 = vshll.u32 %v3823_v12, 16  ;;  %v4200_v52 = vrot.slane %v4198_v19, 4 }
 0x313   : > { %v4191_v51 = vor.u32 %v4190_v23, %v4187_v42  ;;  %v3387_v21 = vshrl.u32 %v3335_v32, 16  ;;  %v3390_v53 = vshll.u32 %v3335_v32, 16  ;;  %v4178_v55 = vrot.slane %v4177_v46, 4  ;;  %v3343_v32 = vld [vmem:[#allocation2 + $0x20] sm:$0x1] }
 0x314   : > { %9162 = vmatmul.mubr.msk.bf16.gmra.mrb[24].mxu1 %vm384_vm2, %v8238_v37  ;;  %v4206_v54 = vrot.slane %v4204_v49, 5  ;;  %v3396_v38 = vshll.u32 %v3336_v27, 16  ;;  %v3400_v59 = vshrl.u32 %v3336_v27, 16  ;;  %v4201_v62 = vor.u32 %v4200_v52, %v4196_v0  ;;  %v3345_v27 = vld [vmem:[#allocation2 + $0x28] sm:$0xf] }
 0x315   : > { %v4192_v44 = vrot.slane %v4191_v51, 4  ;;  %v3389_v40 = vrot.slane %v3387_v21, 4  ;;  %v3392_v14 = vrot.slane %v3390_v53, 5  ;;  %v4183_v56 = vsel %vm10855_vm0, %v4178_v55, %v4182_v28 }
 0x316   : > { %v3398_v3 = vrot.slane %v3396_v38, 5  ;;  %v3402_v29 = vrot.slane %v3400_v59, 4  ;;  %v3406_v25 = vshll.u32 %v3337_v41, 16  ;;  %v8239_v1 = vcombine.low %v4173_v10, %v4183_v56  ;;  %v3344_v10 = vld [vmem:[#allocation2 + $0x24] sm:$0xf] }
 0x317   : > { %v4197_v60 = vsel %vm10855_vm0, %v4192_v44, %v4196_v0  ;;  %v4202_v58 = vrot.slane %v4201_v62, 4  ;;  %v3393_v2 = vor.u32 %v3392_v14, %v3389_v40  ;;  %v3411_v22 = vshrl.u32 %v3338_v48, 16  ;;  %v3347_v56 = vld [vmem:[#allocation2 + $0x30] sm:$0xf] }
 0x318   : > { %v3403_v6 = vor.u32 %v3402_v29, %v3398_v3  ;;  %v3408_v8 = vrot.slane %v3406_v25, 5  ;;  %v3414_v9 = vshll.u32 %v3338_v48, 16  ;;  %9165 = vmatprep.mubr.msk.bf16.mxu1 %vm384_vm2, %v8239_v1  ;;  %v3420_v24 = vshll.u32 %v3339_v63, 16  ;;  %v3346_v48 = vld [vmem:[#allocation2 + $0x2c] sm:$0x1] }
 0x319   : > { %v4207_v61 = vsel %vm10855_vm0, %v4202_v58, %v4206_v54  ;;  %v3394_v18 = vrot.slane %v3393_v2, 4  ;;  %v3424_v26 = vshrl.u32 %v3339_v63, 16  ;;  %v3413_v13 = vrot.slane %v3411_v22, 4  ;;  %v9821_v22 = vld [vmem:[%s12304_s3 + $0x38] sm:$0xff]  }
 0x31a   : > { %v8240_v12 = vcombine.low %v4197_v60, %v4207_v61  ;;  %v3404_v20 = vrot.slane %v3403_v6, 4  ;;  %v3416_v57 = vrot.slane %v3414_v9, 5  ;;  %v3422_v28 = vrot.slane %v3420_v24, 5  ;;  %v3348_v60 = vld [vmem:[#allocation2 + $0x34] sm:$0xf] }
 0x31b   : > { %v3399_v30 = vsel %vm10855_vm0, %v3394_v18, %v3398_v3  ;;  %v3426_v42 = vrot.slane %v3424_v26, 4  ;;  %v3435_v11 = vshrl.u32 %v3341_v17, 16  ;;  %v3438_v19 = vshll.u32 %v3341_v17, 16  ;;  %v3349_v18 = vld [vmem:[#allocation2 + $0x38] sm:$0x1] }
 0x31c   : > { %9166 = vmatmul.mubr.msk.bf16.gmra.mrb[28].mxu1 %vm384_vm2, %v8240_v12  ;;  %v3409_v23 = vsel %vm10855_vm0, %v3404_v20, %v3408_v8  ;;  %v3417_v0 = vor.u32 %v3416_v57, %v3413_v13  ;;  %v3444_v37 = vshll.u32 %v3342_v31, 16  ;;  %v3448_v52 = vshrl.u32 %v3342_v31, 16  ;;  %v3350_v20 = vld [vmem:[#allocation2 + $0x3c] sm:$0xf] }
 0x31d   : > { %v8260_v46 = vcombine.low %v3399_v30, %v3409_v23  ;;  %v3427_v49 = vor.u32 %v3426_v42, %v3422_v28  ;;  %v3437_v51 = vrot.slane %v3435_v11, 4  ;;  %v3440_v53 = vrot.slane %v3438_v19, 5  ;;  %v3351_v42 = vld [vmem:[#allocation2 + $0x40] sm:$0xf] }
 0x31e   : > { %v3418_v21 = vrot.slane %v3417_v0, 4  ;;  %v3446_v41 = vrot.slane %v3444_v37, 5  ;;  %v3454_v55 = vshll.u32 %v3343_v32, 16  ;;  %v3450_v38 = vrot.slane %v3448_v52, 4 }
 0x31f   : > { %9175 = vmatprep.mubr.msk.bf16.mxu1 %vm384_vm2, %v8260_v46  ;;  %v3428_v54 = vrot.slane %v3427_v49, 4  ;;  %v3459_v59 = vshrl.u32 %v3344_v10, 16  ;;  %v3462_v44 = vshll.u32 %v3344_v10, 16  ;;  %v3441_v40 = vor.u32 %v3440_v53, %v3437_v51 }
 0x320   : > { %v3423_v62 = vsel %vm10855_vm0, %v3418_v21, %v3422_v28  ;;  %v3456_v14 = vrot.slane %v3454_v55, 5  ;;  %v3468_v63 = vshll.u32 %v3345_v27, 16  ;;  %v3451_v29 = vor.u32 %v3450_v38, %v3446_v41 }
 0x321   : > { %v3433_v3 = vsel %vm10855_vm0, %v3428_v54, %v10894_v36  ;;  %v3461_v25 = vrot.slane %v3459_v59, 4  ;;  %v3464_v1 = vrot.slane %v3462_v44, 5  ;;  %v3442_v2 = vrot.slane %v3441_v40, 4  ;;  %v3353_v54 = vld [vmem:[#allocation2 + $0x48] sm:$0xf] }
 0x322   : > { %v8261_v58 = vcombine.low %v3423_v62, %v3433_v3  ;;  %v3470_v6 = vrot.slane %v3468_v63, 5  ;;  %v3472_v8 = vshrl.u32 %v3345_v27, 16  ;;  %v3452_v9 = vrot.slane %v3451_v29, 4  ;;  %v3354_v40 = vld [vmem:[#allocation2 + $0x4c] sm:$0xf] }
 0x323   : > { %v3465_v17 = vor.u32 %v3464_v1, %v3461_v25  ;;  %v3478_v61 = vshll.u32 %v3346_v48, 16  ;;  %v3483_v24 = vshrl.u32 %v3347_v56, 16  ;;  %v3447_v36 = vsel %vm10855_vm0, %v3442_v2, %v3446_v41  ;;  %v3355_v25 = vld [vmem:[#allocation2 + $0x50] sm:$0x1] }
 0x324   : > { %9176 = vmatmul.mubr.msk.bf16.vlgmr.msra.gmra.mrb[0].mxu1 %vm384_vm2, %v8261_v58  ;;  %v3474_v26 = vrot.slane %v3472_v8, 4  ;;  %v3486_v31 = vshll.u32 %v3347_v56, 16  ;;  %v3492_v12 = vshll.u32 %v3348_v60, 16  ;;  %v3457_v13 = vsel %vm10855_vm0, %v3452_v9, %v3456_v14 }
 0x325   : > { %9208 = vmatpush3.bf16.msra.mxu1 %v11023_v7  ;;  %v3466_v57 = vrot.slane %v3465_v17, 4  ;;  %v3480_v30 = vrot.slane %v3478_v61, 5  ;;  %v3485_v28 = vrot.slane %v3483_v24, 4  ;;  %v8262_v32 = vcombine.low %v3447_v36, %v3457_v13  ;;  %v3352_v7 = vld [vmem:[#allocation2 + $0x44] sm:$0x1] }
 0x326   : > { %v3475_v11 = vor.u32 %v3474_v26, %v3470_v6  ;;  %v3488_v23 = vrot.slane %v3486_v31, 5  ;;  %v3494_v0 = vrot.slane %v3492_v12, 5  ;;  %9209 = vmatprep.subr.bf16.mxu1 %v9821_v22  ;;  %v3496_v37 = vshrl.u32 %v3348_v60, 16  ;;  %v3357_v12 = vld [vmem:[#allocation2 + $0x58] sm:$0xf] }
 0x327   : > { %v3471_v19 = vsel %vm10855_vm0, %v3466_v57, %v3470_v6  ;;  %v3502_v10 = vshll.u32 %v3349_v18, 16  ;;  %v3507_v46 = vshrl.u32 %v3350_v20, 16  ;;  %9179 = vmatprep.mubr.msk.bf16.mxu1 %vm384_vm2, %v8262_v32  ;;  %v3510_v52 = vshll.u32 %v3350_v20, 16  ;;  %v3356_v18 = vld [vmem:[#allocation2 + $0x54] sm:$0xf] }
 0x328   : > { %v3476_v49 = vrot.slane %v3475_v11, 4  ;;  %v3489_v51 = vor.u32 %v3488_v23, %v3485_v28  ;;  %v3516_v27 = vshll.u32 %v3351_v42, 16  ;;  %v3498_v21 = vrot.slane %v3496_v37, 4  ;;  %v3358_v28 = vld [vmem:[#allocation2 + $0x5c] sm:$0x1] }
 0x329   : > { %v3504_v53 = vrot.slane %v3502_v10, 5  ;;  %v3509_v41 = vrot.slane %v3507_v46, 4  ;;  %v3520_v55 = vshrl.u32 %v3351_v42, 16  ;;  %9210 = vmatpush3.bf16.msra.mxu1 %v9821_v22  ;;  %v3512_v44 = vrot.slane %v3510_v52, 5 }
 0x32a   : > { %v3481_v38 = vsel %vm10855_vm0, %v3476_v49, %v3480_v30  ;;  %v3490_v59 = vrot.slane %v3489_v51, 4  ;;  %v3518_v62 = vrot.slane %v3516_v27, 5  ;;  %v3499_v48 = vor.u32 %v3498_v21, %v3494_v0  ;;  %v3360_v27 = vld [vmem:[#allocation2 + $0x64] sm:$0xf] }
 0x32b   : > { %v8263_v14 = vcombine.low %v3471_v19, %v3481_v38  ;;  %v3522_v63 = vrot.slane %v3520_v55, 4  ;;  %v3526_v56 = vshll.u32 %v3352_v7, 16  ;;  %v3513_v29 = vor.u32 %v3512_v44, %v3509_v41  ;;  %v3361_v55 = vld [vmem:[#allocation2 + $0x68] sm:$0x1] }
 0x32c   : > { %v3495_v3 = vsel %vm10855_vm0, %v3490_v59, %v3494_v0  ;;  %v3531_v1 = vshrl.u32 %v3353_v54, 16  ;;  %v3534_v60 = vshll.u32 %v3353_v54, 16  ;;  %v3500_v58 = vrot.slane %v3499_v48, 4  ;;  %v3359_v0 = vld [vmem:[#allocation2 + $0x60] sm:$0xf] }
 0x32d   : > { %9180 = vmatmul.mubr.msk.bf16.gmra.mrb[4].mxu1 %vm384_vm2, %v8263_v14  ;;  %v3523_v2 = vor.u32 %v3522_v63, %v3518_v62  ;;  %v3528_v6 = vrot.slane %v3526_v56, 5  ;;  %v3540_v8 = vshll.u32 %v3354_v40, 16  ;;  %v3514_v22 = vrot.slane %v3513_v29, 4 }
 0x32e   : > { %v3533_v9 = vrot.slane %v3531_v1, 4  ;;  %v3536_v17 = vrot.slane %v3534_v60, 5  ;;  %v3544_v61 = vshrl.u32 %v3354_v40, 16  ;;  %v3505_v24 = vsel %vm10855_vm0, %v3500_v58, %v3504_v53  ;;  %v3362_v40 = vld [vmem:[#allocation2 + $0x6c] sm:$0xf] }
 0x32f   : > { %v3524_v36 = vrot.slane %v3523_v2, 4  ;;  %v3542_v26 = vrot.slane %v3540_v8, 5  ;;  %v3550_v31 = vshll.u32 %v3355_v25, 16  ;;  %v8264_v20 = vcombine.low %v3495_v3, %v3505_v24  ;;  %v3363_v60 = vld [vmem:[#allocation2 + $0x70] sm:$0xf] }
 0x330   : > { %v3519_v13 = vsel %vm10855_vm0, %v3514_v22, %v3518_v62  ;;  %v3537_v57 = vor.u32 %v3536_v17, %v3533_v9  ;;  %v3546_v30 = vrot.slane %v3544_v61, 4  ;;  %v3555_v11 = vshrl.u32 %v3356_v18, 16  ;;  %v3364_v61 = vld [vmem:[#allocation2 + $0x74] sm:$0x1] }
 0x331   : > { %v3529_v42 = vsel %vm10855_vm0, %v3524_v36, %v3528_v6  ;;  %v3552_v32 = vrot.slane %v3550_v31, 5  ;;  %v3558_v23 = vshll.u32 %v3356_v18, 16  ;;  %9183 = vmatprep.mubr.msk.bf16.mxu1 %vm384_vm2, %v8264_v20  ;;  %v3564_v46 = vshll.u32 %v3357_v12, 16 }
 0x332   : > { %v8265_v19 = vcombine.low %v3519_v13, %v3529_v42  ;;  %v3538_v37 = vrot.slane %v3537_v57, 4  ;;  %v3547_v10 = vor.u32 %v3546_v30, %v3542_v26  ;;  %v3557_v49 = vrot.slane %v3555_v11, 4 }
 0x333   : > { %v3560_v51 = vrot.slane %v3558_v23, 5  ;;  %v3568_v7 = vshrl.u32 %v3357_v12, 16  ;;  %v3574_v52 = vshll.u32 %v3358_v28, 16  ;;  %v3566_v41 = vrot.slane %v3564_v46, 5  ;;  %v3365_v12 = vld [vmem:[#allocation2 + $0x78] sm:$0xf] }
 0x334   : > { %v3543_v21 = vsel %vm10855_vm0, %v3538_v37, %v3542_v26  ;;  %v3548_v53 = vrot.slane %v3547_v10, 4  ;;  %v3579_v54 = vshrl.u32 %v3359_v0, 16  ;;  %v3582_v62 = vshll.u32 %v3359_v0, 16  ;;  %v3366_v28 = vld [vmem:[#allocation2 + $0x7c] sm:$0xf] }
 0x335   : > { %9184 = vmatmul.mubr.msk.bf16.gmra.mrb[8].mxu1 %vm384_vm2, %v8265_v19  ;;  %v3561_v38 = vor.u32 %v3560_v51, %v3557_v49  ;;  %v3570_v59 = vrot.slane %v3568_v7, 4  ;;  %v3576_v44 = vrot.slane %v3574_v52, 5  ;;  %v3588_v63 = vshll.u32 %v3360_v27, 16  ;;  %v3367_v10 = vld [vmem:[#allocation2 + $0x80] sm:$0x1] }
 0x336   : > { %v3553_v14 = vsel %vm10855_vm0, %v3548_v53, %v3552_v32  ;;  %v3581_v48 = vrot.slane %v3579_v54, 4  ;;  %v3592_v56 = vshrl.u32 %v3360_v27, 16  ;;  %v3584_v1 = vrot.slane %v3582_v62, 5  ;;  %v3368_v27 = vld [vmem:[#allocation2 + $0x84] sm:$0xf] }
 0x337   : > { %v8266_v3 = vcombine.low %v3543_v21, %v3553_v14  ;;  %v3562_v29 = vrot.slane %v3561_v38, 4  ;;  %v3571_v25 = vor.u32 %v3570_v59, %v3566_v41  ;;  %v3590_v58 = vrot.slane %v3588_v63, 5  ;;  %v3369_v54 = vld [vmem:[#allocation2 + $0x88] sm:$0xf] }
 0x338   : > { %v3594_v2 = vrot.slane %v3592_v56, 4  ;;  %v3598_v6 = vshll.u32 %v3361_v55, 16  ;;  %v3603_v8 = vshrl.u32 %v3362_v40, 16  ;;  %v3585_v17 = vor.u32 %v3584_v1, %v3581_v48  ;;  %v3371_v56 = vld [vmem:[#allocation2 + $0x90] sm:$0xf] }
 0x339   : > { %9187 = vmatprep.mubr.msk.bf16.mxu1 %vm384_vm2, %v8266_v3  ;;  %v3567_v22 = vsel %vm10855_vm0, %v3562_v29, %v3566_v41  ;;  %v3572_v9 = vrot.slane %v3571_v25, 4  ;;  %v3606_v18 = vshll.u32 %v3362_v40, 16  ;;  %v3612_v31 = vshll.u32 %v3363_v60, 16  ;;  %v3370_v1 = vld [vmem:[#allocation2 + $0x8c] sm:$0x1] }
 0x33a   : > { %v3595_v24 = vor.u32 %v3594_v2, %v3590_v58  ;;  %v3600_v36 = vrot.slane %v3598_v6, 5  ;;  %v3605_v26 = vrot.slane %v3603_v8, 4  ;;  %v3586_v13 = vrot.slane %v3585_v17, 4 }
 0x33b   : > { %v3577_v20 = vsel %vm10855_vm0, %v3572_v9, %v3576_v44  ;;  %v3608_v57 = vrot.slane %v3606_v18, 5  ;;  %v3616_v30 = vshrl.u32 %v3363_v60, 16  ;;  %v3614_v11 = vrot.slane %v3612_v31, 5 }
 0x33c   : > { %v8267_v42 = vcombine.low %v3567_v22, %v3577_v20  ;;  %v3596_v32 = vrot.slane %v3595_v24, 4  ;;  %v3622_v23 = vshll.u32 %v3364_v61, 16  ;;  %v3591_v0 = vsel %vm10855_vm0, %v3586_v13, %v3590_v58  ;;  %v3372_v22 = vld [vmem:[#allocation2 + $0x94] sm:$0xf]  ;;  %v3373_v13 = vld [vmem:[#allocation2 + $0x98] sm:$0x1] }
 0x33d   : > { %v3609_v19 = vor.u32 %v3608_v57, %v3605_v26  ;;  %v3618_v37 = vrot.slane %v3616_v30, 4  ;;  %v3627_v46 = vshrl.u32 %v3365_v12, 16  ;;  %v3630_v7 = vshll.u32 %v3365_v12, 16 }
 0x33e   : > { %9188 = vmatmul.mubr.msk.bf16.gmra.mrb[12].mxu1 %vm384_vm2, %v8267_v42  ;;  %v3601_v49 = vsel %vm10855_vm0, %v3596_v32, %v3600_v36  ;;  %v3624_v51 = vrot.slane %v3622_v23, 5  ;;  %v3636_v52 = vshll.u32 %v3366_v28, 16  ;;  %v3640_v44 = vshrl.u32 %v3366_v28, 16  ;;  %v9822_v28 = vld [vmem:[%s12304_s3 + $0x40] sm:$0xff]  }
 0x33f   : > { %v8268_v21 = vcombine.low %v3591_v0, %v3601_v49  ;;  %v3610_v53 = vrot.slane %v3609_v19, 4  ;;  %v3619_v41 = vor.u32 %v3618_v37, %v3614_v11  ;;  %v3629_v55 = vrot.slane %v3627_v46, 4  ;;  %v3374_v0 = vld [vmem:[#allocation2 + $0x9c] sm:$0xf]  ;;  %v3375_v49 = vld [vmem:[#allocation2 + $0xa0] sm:$0xf] }
 0x340   : > { %v3632_v38 = vrot.slane %v3630_v7, 5  ;;  %v3638_v59 = vrot.slane %v3636_v52, 5  ;;  %v3646_v62 = vshll.u32 %v3367_v10, 16  ;;  %v3651_v48 = vshrl.u32 %v3368_v27, 16 }
 0x341   : > { %9191 = vmatprep.mubr.msk.bf16.mxu1 %vm384_vm2, %v8268_v21  ;;  %v3615_v40 = vsel %vm10855_vm0, %v3610_v53, %v3614_v11  ;;  %v3620_v14 = vrot.slane %v3619_v41, 4  ;;  %v3654_v63 = vshll.u32 %v3368_v27, 16  ;;  %v3642_v29 = vrot.slane %v3640_v44, 4 }
 0x342   : > { %v3633_v3 = vor.u32 %v3632_v38, %v3629_v55  ;;  %v3648_v25 = vrot.slane %v3646_v62, 5  ;;  %v3660_v60 = vshll.u32 %v3369_v54, 16  ;;  %v3653_v2 = vrot.slane %v3651_v48, 4  ;;  %v3376_v55 = vld [vmem:[#allocation2 + $0xa4] sm:$0x1]  ;;  %v11125_v38 = vld [vmem:[%s12304_s3 + $0x48] sm:$0xff]  }
 0x343   : > { %v3625_v58 = vsel %vm10855_vm0, %v3620_v14, %v3624_v51  ;;  %v3656_v6 = vrot.slane %v3654_v63, 5  ;;  %v3664_v8 = vshrl.u32 %v3369_v54, 16  ;;  %v3643_v61 = vor.u32 %v3642_v29, %v3638_v59  ;;  %v3377_v14 = vld [vmem:[#allocation2 + $0xa8] sm:$0xf]  ;;  %v3378_v29 = vld [vmem:[#allocation2 + $0xac] sm:$0xf] }
 0x344   : > { %v8269_v9 = vcombine.low %v3615_v40, %v3625_v58  ;;  %v3634_v17 = vrot.slane %v3633_v3, 4  ;;  %v3662_v18 = vrot.slane %v3660_v60, 5  ;;  %v3670_v26 = vshll.u32 %v3370_v1, 16 }
 0x345   : > { %v3657_v24 = vor.u32 %v3656_v6, %v3653_v2  ;;  %v3666_v36 = vrot.slane %v3664_v8, 4  ;;  %v3675_v31 = vshrl.u32 %v3371_v56, 16  ;;  %v3644_v20 = vrot.slane %v3643_v61, 4  ;;  %v3379_v8 = vld [vmem:[#allocation2 + $0xb0] sm:$0x1] }
 0x346   : > { %9192 = vmatmul.mubr.msk.bf16.gmra.mrb[16].mxu1 %vm384_vm2, %v8269_v9  ;;  %v3639_v12 = vsel %vm10855_vm0, %v3634_v17, %v3638_v59  ;;  %v3678_v57 = vshll.u32 %v3371_v56, 16  ;;  %v3684_v30 = vshll.u32 %v3372_v22, 16  ;;  %v3672_v11 = vrot.slane %v3670_v26, 5 }
 0x347   : > { %v3658_v42 = vrot.slane %v3657_v24, 4  ;;  %v3667_v32 = vor.u32 %v3666_v36, %v3662_v18  ;;  %v3677_v23 = vrot.slane %v3675_v31, 4  ;;  %v3649_v19 = vsel %vm10855_vm0, %v3644_v20, %v3648_v25  ;;  %v3380_v36 = vld [vmem:[#allocation2 + $0xb4] sm:$0xf] }
 0x348   : > { %v3680_v37 = vrot.slane %v3678_v57, 5  ;;  %v3686_v10 = vrot.slane %v3684_v30, 5  ;;  %v3688_v46 = vshrl.u32 %v3372_v22, 16  ;;  %v8270_v51 = vcombine.low %v3639_v12, %v3649_v19 }
 0x349   : > { %v3663_v7 = vsel %vm10855_vm0, %v3658_v42, %v3662_v18  ;;  %v3668_v52 = vrot.slane %v3667_v32, 4  ;;  %v3694_v27 = vshll.u32 %v3373_v13, 16  ;;  %v5323_v41 = vand.u32 %v9822_v28, %v9986_v5  ;;  %v3381_v13 = vld [vmem:[#allocation2 + $0xb8] sm:$0xf] }
 0x34a   : > { %v3681_v21 = vor.u32 %v3680_v37, %v3677_v23  ;;  %v3690_v53 = vrot.slane %v3688_v46, 4  ;;  %v3699_v54 = vshrl.u32 %v3374_v0, 16  ;;  %9195 = vmatprep.mubr.msk.bf16.mxu1 %vm384_vm2, %v8270_v51  ;;  %v3702_v62 = vshll.u32 %v3374_v0, 16 }
 0x34b   : > { %v3673_v59 = vsel %vm10855_vm0, %v3668_v52, %v3672_v11  ;;  %v3696_v44 = vrot.slane %v3694_v27, 5  ;;  %v3708_v40 = vshll.u32 %v3375_v49, 16  ;;  %9211 = vmatprep.subr.bf16.mxu1 %v5323_v41  ;;  %v3712_v60 = vshrl.u32 %v3375_v49, 16 }
 0x34c   : > { %v8271_v48 = vcombine.low %v3663_v7, %v3673_v59  ;;  %v3682_v63 = vrot.slane %v3681_v21, 4  ;;  %v3691_v56 = vor.u32 %v3690_v53, %v3686_v10  ;;  %v3701_v3 = vrot.slane %v3699_v54, 4  ;;  %9212 = vmatpush3.bf16.msra.mxu1 %v5323_v41  ;;  %v4770_v21 = vld [vmem:[#allocation2 + $0x18] sm:$0xf]  ;;  %v4771_v59 = vld [vmem:[#allocation2 + $0x1c] sm:$0xf] }
 0x34d   : > { %v3704_v25 = vrot.slane %v3702_v62, 5  ;;  %v3710_v1 = vrot.slane %v3708_v40, 5  ;;  %v3718_v58 = vshll.u32 %v3376_v55, 16  ;;  %v3723_v22 = vshrl.u32 %v3377_v14, 16  ;;  %9245 = vmatprep.subr.bf16.mxu1 %v11125_v38 }
 0x34e   : > { %9196 = vmatmul.mubr.msk.bf16.gmra.mrb[20].mxu1 %vm384_vm2, %v8271_v48  ;;  %v3687_v2 = vsel %vm10855_vm0, %v3682_v63, %v3686_v10  ;;  %v3692_v6 = vrot.slane %v3691_v56, 4  ;;  %v3726_v9 = vshll.u32 %v3377_v14, 16  ;;  %v3714_v61 = vrot.slane %v3712_v60, 4  ;;  %v3382_v10 = vld [vmem:[#allocation2 + $0xbc] sm:$0x1] }
 0x34f   : > { %v3705_v17 = vor.u32 %v3704_v25, %v3701_v3  ;;  %v3720_v18 = vrot.slane %v3718_v58, 5  ;;  %v3732_v24 = vshll.u32 %v3378_v29, 16  ;;  %v3725_v31 = vrot.slane %v3723_v22, 4  ;;  %v4772_v48 = vld [vmem:[#allocation2 + $0x20] sm:$0x1] }
 0x350   : > { %v3697_v26 = vsel %vm10855_vm0, %v3692_v6, %v3696_v44  ;;  %v3728_v12 = vrot.slane %v3726_v9, 5  ;;  %v3736_v20 = vshrl.u32 %v3378_v29, 16  ;;  %v3715_v28 = vor.u32 %v3714_v61, %v3710_v1  ;;  %v4774_v6 = vld [vmem:[#allocation2 + $0x28] sm:$0xf] }
 0x351   : > { %v8272_v57 = vcombine.low %v3687_v2, %v3697_v26  ;;  %v3706_v30 = vrot.slane %v3705_v17, 4  ;;  %v3734_v42 = vrot.slane %v3732_v24, 5  ;;  %v3742_v23 = vshll.u32 %v3379_v8, 16  ;;  %v4773_v2 = vld [vmem:[#allocation2 + $0x24] sm:$0xf] }
 0x352   : > { %v3729_v32 = vor.u32 %v3728_v12, %v3725_v31  ;;  %v3738_v11 = vrot.slane %v3736_v20, 4  ;;  %v3747_v0 = vshrl.u32 %v3380_v36, 16  ;;  %v3716_v37 = vrot.slane %v3715_v28, 4 }
 0x353   : > { %9199 = vmatprep.mubr.msk.bf16.mxu1 %vm384_vm2, %v8272_v57  ;;  %v3711_v19 = vsel %vm10855_vm0, %v3706_v30, %v3710_v1  ;;  %v3750_v46 = vshll.u32 %v3380_v36, 16  ;;  %v3756_v49 = vshll.u32 %v3381_v13, 16  ;;  %v3744_v52 = vrot.slane %v3742_v23, 5 }
 0x354   : > { %v3730_v51 = vrot.slane %v3729_v32, 4  ;;  %v3739_v7 = vor.u32 %v3738_v11, %v3734_v42  ;;  %v3749_v27 = vrot.slane %v3747_v0, 4  ;;  %v3721_v53 = vsel %vm10855_vm0, %v3716_v37, %v3720_v18 }
 0x355   : > { %v3752_v41 = vrot.slane %v3750_v46, 5  ;;  %v3758_v55 = vrot.slane %v3756_v49, 5  ;;  %v3760_v54 = vshrl.u32 %v3381_v13, 16  ;;  %v8273_v44 = vcombine.low %v3711_v19, %v3721_v53  ;;  %v4777_v19 = vld [vmem:[#allocation2 + $0x34] sm:$0xf] }
 0x356   : > { %v3735_v62 = vsel %vm10855_vm0, %v3730_v51, %v3734_v42  ;;  %v3740_v40 = vrot.slane %v3739_v7, 4  ;;  %v3766_v14 = vshll.u32 %v3382_v10, 16  ;;  %v4819_v3 = vshrl.u32 %v4770_v21, 16  ;;  %v4776_v42 = vld [vmem:[#allocation2 + $0x30] sm:$0xf] }
 0x357   : > { %v3753_v63 = vor.u32 %v3752_v41, %v3749_v27  ;;  %v3762_v56 = vrot.slane %v3760_v54, 4  ;;  %v4822_v29 = vshll.u32 %v4770_v21, 16  ;;  %9200 = vmatmul.mubr.msk.bf16.gmra.mrb[24].mxu1 %vm384_vm2, %v8273_v44  ;;  %v4828_v60 = vshll.u32 %v4771_v59, 16 }
 0x358   : > { %v3745_v25 = vsel %vm10855_vm0, %v3740_v40, %v3744_v52  ;;  %v3768_v1 = vrot.slane %v3766_v14, 5  ;;  %v4832_v58 = vshrl.u32 %v4771_v59, 16  ;;  %v4821_v17 = vrot.slane %v4819_v3, 4  ;;  %v4778_v52 = vld [vmem:[#allocation2 + $0x38] sm:$0x1] }
 0x359   : > { %v8274_v8 = vcombine.low %v3735_v62, %v3745_v25  ;;  %v3754_v22 = vrot.slane %v3753_v63, 4  ;;  %v3763_v9 = vor.u32 %v3762_v56, %v3758_v55  ;;  %v4824_v61 = vrot.slane %v4822_v29, 5  ;;  %v4779_v59 = vld [vmem:[#allocation2 + $0x3c] sm:$0xf] }
 0x35a   : > { %v4830_v18 = vrot.slane %v4828_v60, 5  ;;  %v4834_v24 = vrot.slane %v4832_v58, 4  ;;  %v4838_v36 = vshll.u32 %v4772_v48, 16  ;;  %v4843_v12 = vshrl.u32 %v4773_v2, 16  ;;  %v4780_v48 = vld [vmem:[#allocation2 + $0x40] sm:$0xf] }
 0x35b   : > { %9203 = vmatprep.mubr.msk.bf16.mxu1 %vm384_vm2, %v8274_v8  ;;  %v3759_v26 = vsel %vm10855_vm0, %v3754_v22, %v3758_v55  ;;  %v3764_v31 = vrot.slane %v3763_v9, 4  ;;  %v4846_v20 = vshll.u32 %v4773_v2, 16  ;;  %v4825_v13 = vor.u32 %v4824_v61, %v4821_v17  ;;  %v4781_v22 = vld [vmem:[#allocation2 + $0x44] sm:$0x1]  ;;  %v4782_v17 = vld [vmem:[#allocation2 + $0x48] sm:$0xf] }
 0x35c   : > { %v4835_v57 = vor.u32 %v4834_v24, %v4830_v18  ;;  %v4840_v30 = vrot.slane %v4838_v36, 5  ;;  %v4852_v28 = vshll.u32 %v4774_v6, 16  ;;  %v4845_v11 = vrot.slane %v4843_v12, 4 }
 0x35d   : > { %v3769_v32 = vsel %vm10855_vm0, %v3764_v31, %v3768_v1  ;;  %v4848_v23 = vrot.slane %v4846_v20, 5  ;;  %v4856_v0 = vshrl.u32 %v4774_v6, 16  ;;  %v4826_v10 = vrot.slane %v4825_v13, 4 }
 0x35e   : > { %v8275_v37 = vcombine.low %v3759_v26, %v3769_v32  ;;  %v4836_v46 = vrot.slane %v4835_v57, 4  ;;  %v4854_v49 = vrot.slane %v4852_v28, 5  ;;  %v4867_v27 = vshrl.u32 %v4776_v42, 16  ;;  %v4783_v26 = vld [vmem:[#allocation2 + $0x4c] sm:$0xf]  ;;  %v9824_v57 = vld [vmem:[%s12304_s3 + $0x50] sm:$0xff]  }
 0x35f   : > { %v4849_v51 = vor.u32 %v4848_v23, %v4845_v11  ;;  %v4858_v7 = vrot.slane %v4856_v0, 4  ;;  %v4870_v21 = vshll.u32 %v4776_v42, 16  ;;  %v4831_v53 = vsel %vm10855_vm0, %v4826_v10, %v4830_v18  ;;  %v4784_v23 = vld [vmem:[#allocation2 + $0x50] sm:$0x1] }
 0x360   : > { %9204 = vmatmul.mubr.msk.bf16.gmra.mrb[28].mxu1 %vm384_vm2, %v8275_v37  ;;  %v4841_v41 = vsel %vm10855_vm0, %v4836_v46, %v4840_v30  ;;  %v4876_v55 = vshll.u32 %v4777_v19, 16  ;;  %v4880_v54 = vshrl.u32 %v4777_v19, 16  ;;  %v4869_v14 = vrot.slane %v4867_v27, 4  ;;  %v4785_v37 = vld [vmem:[#allocation2 + $0x54] sm:$0xf] }
 0x361   : > { %v8301_v44 = vcombine.low %v4831_v53, %v4841_v41  ;;  %v4850_v62 = vrot.slane %v4849_v51, 4  ;;  %v4859_v40 = vor.u32 %v4858_v7, %v4854_v49  ;;  %v4872_v63 = vrot.slane %v4870_v21, 5  ;;  %v4786_v7 = vld [vmem:[#allocation2 + $0x58] sm:$0xf] }
 0x362   : > { %v4878_v56 = vrot.slane %v4876_v55, 5  ;;  %v4882_v3 = vrot.slane %v4880_v54, 4  ;;  %v4886_v29 = vshll.u32 %v4778_v52, 16  ;;  %v4891_v60 = vshrl.u32 %v4779_v59, 16 }
 0x363   : > { %9213 = vmatprep.mubr.msk.bf16.mxu1 %vm384_vm2, %v8301_v44  ;;  %v4855_v25 = vsel %vm10855_vm0, %v4850_v62, %v4854_v49  ;;  %v4860_v1 = vrot.slane %v4859_v40, 4  ;;  %v4894_v58 = vshll.u32 %v4779_v59, 16  ;;  %v4873_v2 = vor.u32 %v4872_v63, %v4869_v14  ;;  %v4788_v44 = vld [vmem:[#allocation2 + $0x60] sm:$0xf]  ;;  %v4787_v40 = vld [vmem:[#allocation2 + $0x5c] sm:$0x1] }
 0x364   : > { %v4883_v6 = vor.u32 %v4882_v3, %v4878_v56  ;;  %v4888_v8 = vrot.slane %v4886_v29, 5  ;;  %v4900_v9 = vshll.u32 %v4780_v48, 16  ;;  %v4893_v18 = vrot.slane %v4891_v60, 4 }
 0x365   : > { %v4865_v61 = vsel %vm10855_vm0, %v4860_v1, %v10900_v47  ;;  %v4896_v24 = vrot.slane %v4894_v58, 5  ;;  %v4904_v36 = vshrl.u32 %v4780_v48, 16  ;;  %v4874_v12 = vrot.slane %v4873_v2, 4  ;;  %v4789_v2 = vld [vmem:[#allocation2 + $0x64] sm:$0xf] }
 0x366   : > { %v8302_v31 = vcombine.low %v4855_v25, %v4865_v61  ;;  %v4884_v20 = vrot.slane %v4883_v6, 4  ;;  %v4902_v13 = vrot.slane %v4900_v9, 5  ;;  %v4910_v42 = vshll.u32 %v4781_v22, 16 }
 0x367   : > { %v4897_v30 = vor.u32 %v4896_v24, %v4893_v18  ;;  %v4906_v28 = vrot.slane %v4904_v36, 4  ;;  %v4915_v32 = vshrl.u32 %v4782_v17, 16  ;;  %v4879_v47 = vsel %vm10855_vm0, %v4874_v12, %v4878_v56  ;;  %v4790_v24 = vld [vmem:[#allocation2 + $0x68] sm:$0x1] }
 0x368   : > { %9214 = vmatmul.mubr.msk.bf16.vlgmr.msra.gmra.mrb[0].mxu1 %vm384_vm2, %v8302_v31  ;;  %v4889_v11 = vsel %vm10855_vm0, %v4884_v20, %v4888_v8  ;;  %v4918_v0 = vshll.u32 %v4782_v17, 16  ;;  %v4924_v19 = vshll.u32 %v4783_v26, 16  ;;  %v4912_v51 = vrot.slane %v4910_v42, 5 }
 0x369   : > { %v8303_v10 = vcombine.low %v4879_v47, %v4889_v11  ;;  %9246 = vmatpush3.bf16.msra.mxu1 %v11125_v38  ;;  %v4898_v46 = vrot.slane %v4897_v30, 4  ;;  %v4907_v49 = vor.u32 %v4906_v28, %v4902_v13  ;;  %v4917_v52 = vrot.slane %v4915_v32, 4  ;;  %v4792_v32 = vld [vmem:[#allocation2 + $0x70] sm:$0xf] }
 0x36a   : > { %v4920_v27 = vrot.slane %v4918_v0, 5  ;;  %v4926_v21 = vrot.slane %v4924_v19, 5  ;;  %v4928_v53 = vshrl.u32 %v4783_v26, 16  ;;  %9247 = vmatprep.subr.bf16.mxu1 %v9824_v57  ;;  %v4934_v54 = vshll.u32 %v4784_v23, 16 }
 0x36b   : > { %9217 = vmatprep.mubr.msk.bf16.mxu1 %vm384_vm2, %v8303_v10  ;;  %v4903_v41 = vsel %vm10855_vm0, %v4898_v46, %v4902_v13  ;;  %v4908_v55 = vrot.slane %v4907_v49, 4  ;;  %v4939_v59 = vshrl.u32 %v4785_v37, 16  ;;  %v4942_v14 = vshll.u32 %v4785_v37, 16  ;;  %v4791_v13 = vld [vmem:[#allocation2 + $0x6c] sm:$0xf] }
 0x36c   : > { %v4921_v62 = vor.u32 %v4920_v27, %v4917_v52  ;;  %v4930_v38 = vrot.slane %v4928_v53, 4  ;;  %v4948_v48 = vshll.u32 %v4786_v7, 16  ;;  %v4936_v56 = vrot.slane %v4934_v54, 5  ;;  %v4793_v46 = vld [vmem:[#allocation2 + $0x74] sm:$0x1] }
 0x36d   : > { %v4913_v63 = vsel %vm10855_vm0, %v4908_v55, %v4912_v51  ;;  %v4941_v3 = vrot.slane %v4939_v59, 4  ;;  %v4952_v29 = vshrl.u32 %v4786_v7, 16  ;;  %9248 = vmatpush3.bf16.msra.mxu1 %v9824_v57  ;;  %v4944_v58 = vrot.slane %v4942_v14, 5  ;;  %v4795_v59 = vld [vmem:[#allocation2 + $0x7c] sm:$0xf] }
 0x36e   : > { %v8304_v25 = vcombine.low %v4903_v41, %v4913_v63  ;;  %v4922_v1 = vrot.slane %v4921_v62, 4  ;;  %v4931_v60 = vor.u32 %v4930_v38, %v4926_v21  ;;  %v4950_v6 = vrot.slane %v4948_v48, 5  ;;  %v4796_v63 = vld [vmem:[#allocation2 + $0x80] sm:$0x1] }
 0x36f   : > { %v4954_v8 = vrot.slane %v4952_v29, 4  ;;  %v4958_v22 = vshll.u32 %v4787_v40, 16  ;;  %v4963_v9 = vshrl.u32 %v4788_v44, 16  ;;  %v4945_v18 = vor.u32 %v4944_v58, %v4941_v3  ;;  %v4797_v58 = vld [vmem:[#allocation2 + $0x84] sm:$0xf] }
 0x370   : > { %9218 = vmatmul.mubr.msk.bf16.gmra.mrb[4].mxu1 %vm384_vm2, %v8304_v25  ;;  %v4927_v17 = vsel %vm10855_vm0, %v4922_v1, %v4926_v21  ;;  %v4932_v61 = vrot.slane %v4931_v60, 4  ;;  %v4966_v36 = vshll.u32 %v4788_v44, 16  ;;  %v4972_v20 = vshll.u32 %v4789_v2, 16  ;;  %v4794_v21 = vld [vmem:[#allocation2 + $0x78] sm:$0xf] }
 0x371   : > { %v4955_v26 = vor.u32 %v4954_v8, %v4950_v6  ;;  %v4960_v31 = vrot.slane %v4958_v22, 5  ;;  %v4965_v12 = vrot.slane %v4963_v9, 4  ;;  %v4946_v30 = vrot.slane %v4945_v18, 4  ;;  %v4798_v9 = vld [vmem:[#allocation2 + $0x88] sm:$0xf] }
 0x372   : > { %v4937_v57 = vsel %vm10855_vm0, %v4932_v61, %v4936_v56  ;;  %v4968_v28 = vrot.slane %v4966_v36, 5  ;;  %v4976_v42 = vshrl.u32 %v4789_v2, 16  ;;  %v4974_v23 = vrot.slane %v4972_v20, 5 }
 0x373   : > { %v8305_v47 = vcombine.low %v4927_v17, %v4937_v57  ;;  %v4956_v11 = vrot.slane %v4955_v26, 4  ;;  %v4982_v0 = vshll.u32 %v4790_v24, 16  ;;  %v4951_v19 = vsel %vm10855_vm0, %v4946_v30, %v4950_v6  ;;  %v4799_v57 = vld [vmem:[#allocation2 + $0x8c] sm:$0x1] }
 0x374   : > { %v4969_v37 = vor.u32 %v4968_v28, %v4965_v12  ;;  %v4978_v10 = vrot.slane %v4976_v42, 4  ;;  %v4987_v49 = vshrl.u32 %v4791_v13, 16  ;;  %v4990_v52 = vshll.u32 %v4791_v13, 16 }
 0x375   : > { %9221 = vmatprep.mubr.msk.bf16.mxu1 %vm384_vm2, %v8305_v47  ;;  %v4961_v51 = vsel %vm10855_vm0, %v4956_v11, %v4960_v31  ;;  %v4984_v7 = vrot.slane %v4982_v0, 5  ;;  %v4996_v27 = vshll.u32 %v4792_v32, 16  ;;  %v5000_v38 = vshrl.u32 %v4792_v32, 16 }
 0x376   : > { %v8306_v53 = vcombine.low %v4951_v19, %v4961_v51  ;;  %v4970_v41 = vrot.slane %v4969_v37, 4  ;;  %v4979_v55 = vor.u32 %v4978_v10, %v4974_v23  ;;  %v4989_v54 = vrot.slane %v4987_v49, 4 }
 0x377   : > { %v4992_v44 = vrot.slane %v4990_v52, 5  ;;  %v4998_v62 = vrot.slane %v4996_v27, 5  ;;  %v5006_v40 = vshll.u32 %v4793_v46, 16  ;;  %v5011_v56 = vshrl.u32 %v4794_v21, 16  ;;  %v4801_v46 = vld [vmem:[#allocation2 + $0x94] sm:$0xf] }
 0x378   : > { %9222 = vmatmul.mubr.msk.bf16.gmra.mrb[8].mxu1 %vm384_vm2, %v8306_v53  ;;  %v4975_v14 = vsel %vm10855_vm0, %v4970_v41, %v4974_v23  ;;  %v4980_v48 = vrot.slane %v4979_v55, 4  ;;  %v5014_v3 = vshll.u32 %v4794_v21, 16  ;;  %v5002_v25 = vrot.slane %v5000_v38, 4  ;;  %v4800_v23 = vld [vmem:[#allocation2 + $0x90] sm:$0xf] }
 0x379   : > { %v4993_v29 = vor.u32 %v4992_v44, %v4989_v54  ;;  %v5008_v1 = vrot.slane %v5006_v40, 5  ;;  %v5020_v60 = vshll.u32 %v4795_v59, 16  ;;  %v5013_v6 = vrot.slane %v5011_v56, 4  ;;  %v4802_v53 = vld [vmem:[#allocation2 + $0x98] sm:$0x1] }
 0x37a   : > { %v4985_v2 = vsel %vm10855_vm0, %v4980_v48, %v4984_v7  ;;  %v5016_v8 = vrot.slane %v5014_v3, 5  ;;  %v5024_v22 = vshrl.u32 %v4795_v59, 16  ;;  %v5003_v18 = vor.u32 %v5002_v25, %v4998_v62  ;;  %v4803_v38 = vld [vmem:[#allocation2 + $0x9c] sm:$0xf]  ;;  %v4804_v56 = vld [vmem:[#allocation2 + $0xa0] sm:$0xf] }
 0x37b   : > { %v8307_v17 = vcombine.low %v4975_v14, %v4985_v2  ;;  %v4994_v61 = vrot.slane %v4993_v29, 4  ;;  %v5022_v24 = vrot.slane %v5020_v60, 5  ;;  %v5030_v31 = vshll.u32 %v4796_v63, 16 }
 0x37c   : > { %v5017_v36 = vor.u32 %v5016_v8, %v5013_v6  ;;  %v5026_v26 = vrot.slane %v5024_v22, 4  ;;  %v5035_v12 = vshrl.u32 %v4797_v58, 16  ;;  %v5004_v13 = vrot.slane %v5003_v18, 4  ;;  %v4806_v18 = vld [vmem:[#allocation2 + $0xa8] sm:$0xf] }
 0x37d   : > { %9225 = vmatprep.mubr.msk.bf16.mxu1 %vm384_vm2, %v8307_v17  ;;  %v4999_v20 = vsel %vm10855_vm0, %v4994_v61, %v4998_v62  ;;  %v5038_v30 = vshll.u32 %v4797_v58, 16  ;;  %v5044_v28 = vshll.u32 %v4798_v9, 16  ;;  %v5032_v47 = vrot.slane %v5030_v31, 5  ;;  %v4805_v17 = vld [vmem:[#allocation2 + $0xa4] sm:$0x1] }
 0x37e   : > { %v5018_v42 = vrot.slane %v5017_v36, 4  ;;  %v5027_v32 = vor.u32 %v5026_v26, %v5022_v24  ;;  %v5037_v11 = vrot.slane %v5035_v12, 4  ;;  %v5009_v0 = vsel %vm10855_vm0, %v5004_v13, %v5008_v1  ;;  %v4807_v12 = vld [vmem:[#allocation2 + $0xac] sm:$0xf] }
 0x37f   : > { %v5040_v19 = vrot.slane %v5038_v30, 5  ;;  %v5046_v37 = vrot.slane %v5044_v28, 5  ;;  %v5048_v10 = vshrl.u32 %v4798_v9, 16  ;;  %v8308_v49 = vcombine.low %v4999_v20, %v5009_v0 }
 0x380   : > { %v5023_v51 = vsel %vm10855_vm0, %v5018_v42, %v5022_v24  ;;  %v5028_v7 = vrot.slane %v5027_v32, 4  ;;  %v5054_v52 = vshll.u32 %v4799_v57, 16  ;;  %v5059_v41 = vshrl.u32 %v4800_v23, 16 }
 0x381   : > { %v5041_v27 = vor.u32 %v5040_v19, %v5037_v11  ;;  %v5050_v21 = vrot.slane %v5048_v10, 4  ;;  %v5062_v55 = vshll.u32 %v4800_v23, 16  ;;  %9226 = vmatmul.mubr.msk.bf16.gmra.mrb[12].mxu1 %vm384_vm2, %v8308_v49  ;;  %v5068_v44 = vshll.u32 %v4801_v46, 16  ;;  %v9825_v11 = vld [vmem:[%s12304_s3 + $0x58] sm:$0xff]   ;;  %v4808_v19 = vld [vmem:[#allocation2 + $0xb0] sm:$0x1] }
 0x382   : > { %v5033_v54 = vsel %vm10855_vm0, %v5028_v7, %v5032_v47  ;;  %v5056_v59 = vrot.slane %v5054_v52, 5  ;;  %v5072_v62 = vshrl.u32 %v4801_v46, 16  ;;  %v5061_v63 = vrot.slane %v5059_v41, 4  ;;  %v4809_v52 = vld [vmem:[#allocation2 + $0xb4] sm:$0xf] }
 0x383   : > { %v8309_v40 = vcombine.low %v5023_v51, %v5033_v54  ;;  %v5042_v14 = vrot.slane %v5041_v27, 4  ;;  %v5051_v48 = vor.u32 %v5050_v21, %v5046_v37  ;;  %v5064_v3 = vrot.slane %v5062_v55, 5  ;;  %v4810_v55 = vld [vmem:[#allocation2 + $0xb8] sm:$0xf] }
 0x384   : > { %v5070_v29 = vrot.slane %v5068_v44, 5  ;;  %v5074_v25 = vrot.slane %v5072_v62, 4  ;;  %v5078_v1 = vshll.u32 %v4802_v53, 16  ;;  %v5083_v2 = vshrl.u32 %v4803_v38, 16 }
 0x385   : > { %9229 = vmatprep.mubr.msk.bf16.mxu1 %vm384_vm2, %v8309_v40  ;;  %v5047_v60 = vsel %vm10855_vm0, %v5042_v14, %v5046_v37  ;;  %v5052_v58 = vrot.slane %v5051_v48, 4  ;;  %v5086_v6 = vshll.u32 %v4803_v38, 16  ;;  %v5065_v8 = vor.u32 %v5064_v3, %v5061_v63  ;;  %v11221_v38 = vld [vmem:[%s12304_s3 + $0x60] sm:$0xff]   ;;  %v4811_v48 = vld [vmem:[#allocation2 + $0xbc] sm:$0x1] }
 0x386   : > { %v5075_v22 = vor.u32 %v5074_v25, %v5070_v29  ;;  %v5080_v9 = vrot.slane %v5078_v1, 5  ;;  %v5092_v61 = vshll.u32 %v4804_v56, 16  ;;  %v5085_v36 = vrot.slane %v5083_v2, 4 }
 0x387   : > { %v5057_v24 = vsel %vm10855_vm0, %v5052_v58, %v5056_v59  ;;  %v5088_v26 = vrot.slane %v5086_v6, 5  ;;  %v5096_v31 = vshrl.u32 %v4804_v56, 16  ;;  %v5066_v13 = vrot.slane %v5065_v8, 4 }
 0x388   : > { %v8310_v20 = vcombine.low %v5047_v60, %v5057_v24  ;;  %v5076_v57 = vrot.slane %v5075_v22, 4  ;;  %v5094_v30 = vrot.slane %v5092_v61, 5  ;;  %v5102_v32 = vshll.u32 %v4805_v17, 16  ;;  %v4812_v60 = vld [vmem:[#allocation2 + $0xc0] sm:$0xf] }
 0x389   : > { %v5089_v28 = vor.u32 %v5088_v26, %v5085_v36  ;;  %v5098_v42 = vrot.slane %v5096_v31, 4  ;;  %v5107_v47 = vshrl.u32 %v4806_v18, 16  ;;  %v5071_v23 = vsel %vm10855_vm0, %v5066_v13, %v5070_v29  ;;  %v4813_v22 = vld [vmem:[#allocation2 + $0xc4] sm:$0xf] }
 0x38a   : > { %9230 = vmatmul.mubr.msk.bf16.gmra.mrb[16].mxu1 %vm384_vm2, %v8310_v20  ;;  %v5081_v0 = vsel %vm10855_vm0, %v5076_v57, %v5080_v9  ;;  %v5110_v37 = vshll.u32 %v4806_v18, 16  ;;  %v5116_v10 = vshll.u32 %v4807_v12, 16  ;;  %v5104_v7 = vrot.slane %v5102_v32, 5  ;;  %v4814_v57 = vld [vmem:[#allocation2 + $0xc8] sm:$0x1] }
 0x38b   : > { %v8311_v46 = vcombine.low %v5071_v23, %v5081_v0  ;;  %v5090_v49 = vrot.slane %v5089_v28, 4  ;;  %v5099_v51 = vor.u32 %v5098_v42, %v5094_v30  ;;  %v5109_v27 = vrot.slane %v5107_v47, 4  ;;  %v4815_v28 = vld [vmem:[#allocation2 + $0xcc] sm:$0xf] }
 0x38c   : > { %v5112_v21 = vrot.slane %v5110_v37, 5  ;;  %v5118_v53 = vrot.slane %v5116_v10, 5  ;;  %v5120_v41 = vshrl.u32 %v4807_v12, 16  ;;  %v5126_v44 = vshll.u32 %v4808_v19, 16 }
 0x38d   : > { %9233 = vmatprep.mubr.msk.bf16.mxu1 %vm384_vm2, %v8311_v46  ;;  %v5095_v54 = vsel %vm10855_vm0, %v5090_v49, %v5094_v30  ;;  %v5100_v59 = vrot.slane %v5099_v51, 4  ;;  %v5769_v62 = vand.u32 %v9825_v11, %v9986_v5  ;;  %vm6410_vm5 = vcmask 1040384   ;;  %v4816_v51 = vld [vmem:[#allocation2 + $0xd0] sm:$0xf] }
 0x38e   : > { %vm6411_vm15 = vcmask 1044484   ;;  %v5113_v40 = vor.u32 %v5112_v21, %v5109_v27  ;;  %v5122_v14 = vrot.slane %v5120_v41, 4  ;;  %v5131_v63 = vshrl.u32 %v4809_v52, 16 }
 0x38f   : > { %v5134_v56 = vshll.u32 %v4809_v52, 16  ;;  %v5105_v3 = vsel %vm10855_vm0, %v5100_v59, %v5104_v7  ;;  %v5128_v29 = vrot.slane %v5126_v44, 5  ;;  %9249 = vmatprep.subr.bf16.mxu1 %v5769_v62  ;;  %v5140_v25 = vshll.u32 %v4810_v55, 16  ;;  %vm6412_vm1 = vmor %vm6410_vm5, %vm6411_vm15  ;;  %v4817_v44 = vld [vmem:[#allocation2 + $0xd4] sm:$0x1] }
 0x390   : > { %v5144_v1 = vshrl.u32 %v4810_v55, 16  ;;  %v8312_v58 = vcombine.low %v5095_v54, %v5105_v3  ;;  %v5114_v2 = vrot.slane %v5113_v40, 4  ;;  %v5123_v6 = vor.u32 %v5122_v14, %v5118_v53  ;;  %9250 = vmatpush3.bf16.msra.mxu1 %v5769_v62 }
 0x391   : > { %v5133_v8 = vrot.slane %v5131_v63, 4  ;;  %v5136_v9 = vrot.slane %v5134_v56, 5  ;;  %v5142_v17 = vrot.slane %v5140_v25, 5  ;;  %v5150_v18 = vshll.u32 %v4811_v48, 16  ;;  %9283 = vmatprep.subr.bf16.mxu1 %v11221_v38 }
 0x392   : > { %v5146_v61 = vrot.slane %v5144_v1, 4  ;;  %9234 = vmatmul.mubr.msk.bf16.gmra.mrb[20].mxu1 %vm384_vm2, %v8312_v58  ;;  %v5119_v24 = vsel %vm10855_vm0, %v5114_v2, %v5118_v53  ;;  %v5124_v36 = vrot.slane %v5123_v6, 4  ;;  %v5155_v26 = vshrl.u32 %v4812_v60, 16 }
 0x393   : > { %v5158_v31 = vshll.u32 %v4812_v60, 16  ;;  %v5137_v12 = vor.u32 %v5136_v9, %v5133_v8  ;;  %v5152_v13 = vrot.slane %v5150_v18, 5  ;;  %v5164_v30 = vshll.u32 %v4813_v22, 16  ;;  %v11249_v9 = vld [vmem:[#allocation2 + $0x10] sm:$0xf] }
 0x394   : > { %v5147_v20 = vor.u32 %v5146_v61, %v5142_v17  ;;  %v5129_v42 = vsel %vm10855_vm0, %v5124_v36, %v5128_v29  ;;  %v5157_v32 = vrot.slane %v5155_v26, 4  ;;  %v5168_v11 = vshrl.u32 %v4813_v22, 16  ;;  %v5518_v61 = vld [vmem:[#allocation2 + $0xc] sm:$0xf]  ;;  %v5550_v18 = vld [vmem:[#allocation2] sm:$0xf] }
 0x395   : > { %v5160_v47 = vrot.slane %v5158_v31, 5  ;;  %v8313_v23 = vcombine.low %v5119_v24, %v5129_v42  ;;  %v5138_v0 = vrot.slane %v5137_v12, 4  ;;  %v5166_v37 = vrot.slane %v5164_v30, 5  ;;  %v11260_v26 = vld [vmem:[#allocation2 + $0x1c] sm:$0xf] }
 0x396   : > { %v5148_v19 = vrot.slane %v5147_v20, 4  ;;  %v5170_v46 = vrot.slane %v5168_v11, 4  ;;  %v5174_v49 = vshll.u32 %v4814_v57, 16  ;;  %v5179_v7 = vshrl.u32 %v4815_v28, 16  ;;  %v5520_v20 = vld [vmem:[#allocation2 + $0x18] sm:$0xf] }
 0x397   : > { %v5161_v10 = vor.u32 %v5160_v47, %v5157_v32  ;;  %9237 = vmatprep.mubr.msk.bf16.mxu1 %vm384_vm2, %v8313_v23  ;;  %v5143_v52 = vsel %vm10855_vm0, %v5138_v0, %v5142_v17  ;;  %v5182_v21 = vshll.u32 %v4815_v28, 16  ;;  %v5188_v53 = vshll.u32 %v4816_v51, 16  ;;  %v5551_v17 = vld [vmem:[#allocation2 + $0x4] sm:$0xf]  ;;  %v5553_v57 = vld [vmem:[#allocation2 + $0x10] sm:$0xf] }
 0x398   : > { %v5153_v27 = vsel %vm10855_vm0, %v5148_v19, %v5152_v13  ;;  %v6414_v41 = vrot.slane %v6413_v35, 4  ;;  %v5171_v59 = vor.u32 %v5170_v46, %v5166_v37  ;;  %v5181_v62 = vrot.slane %v5179_v7, 4  ;;  %v5552_v13 = vld [vmem:[#allocation2 + $0xc] sm:$0xf]  ;;  %v11264_v30 = vld [vmem:[#allocation2 + $0x28] sm:$0xf] }
 0x399   : > { %v8314_v55 = vcombine.low %v5143_v52, %v5153_v27  ;;  %v5162_v54 = vrot.slane %v5161_v10, 4  ;;  %v5184_v40 = vrot.slane %v5182_v21, 5  ;;  %v5190_v14 = vrot.slane %v5188_v53, 5  ;;  %v11266_v28 = vld [vmem:[#allocation2 + $0x1c] sm:$0xf] }
 0x39a   : > { %v5192_v48 = vshrl.u32 %v4816_v51, 16  ;;  %v5172_v63 = vrot.slane %v5171_v59, 4  ;;  %v5176_v56 = vrot.slane %v5174_v49, 5  ;;  %v5198_v3 = vshll.u32 %v4817_v44, 16  ;;  %v9837_v42 = vld [vmem:[#allocation2 + $0x10] sm:$0xf] }
 0x39b   : > { %9238 = vmatmul.mubr.msk.bf16.gmra.mrb[24].mxu1 %vm384_vm2, %v8314_v55  ;;  %v5185_v29 = vor.u32 %v5184_v40, %v5181_v62  ;;  %v11243_v1 = vsel %vm6412_vm1, %v6414_v41, %v6415_v50  ;;  %v5167_v60 = vsel %vm10855_vm0, %v5162_v54, %v5166_v37  ;;  %v5585_v24 = vsel %vm10693_vm7, %v11249_v9, %v5551_v17  ;;  %v11273_v47 = vld [vmem:[#allocation2 + $0x34] sm:$0xf]  ;;  %v5557_v11 = vld [vmem:[#allocation2 + $0x28] sm:$0xf]  ;;  %v11275_v23 = vld [vmem:[#allocation2 + $0x40] sm:$0xf] }
 0x39c   : > { %v5194_v25 = vrot.slane %v5192_v48, 4  ;;  %v5177_v58 = vsel %vm10855_vm0, %v5172_v63, %v5176_v56  ;;  %v5200_v22 = vrot.slane %v5198_v3, 5  ;;  %vm6419_vm4 = vcmp.ne.s16.totalorder %v11243_v1, 0  ;;  %v5522_v0 = vld [vmem:[#allocation2 + $0x24] sm:$0xf]  ;;  %v9828_v41 = vld [vmem:[%s12304_s3 + $0x70] sm:$0xff]  }
 0x39d   : > { %v8315_v2 = vcombine.low %v5167_v60, %v5177_v58  ;;  %v5186_v6 = vrot.slane %v5185_v29, 4  ;;  %v5584_v12 = vsel %vm10864_vm8, %v5518_v61, %v5550_v18  ;;  %v11271_v32 = vsel %vm6419_vm4, %v11266_v28, %v9837_v42  ;;  %v5554_v19 = vld [vmem:[#allocation2 + $0x18] sm:$0xf]  ;;  %v5555_v37 = vld [vmem:[#allocation2 + $0x1c] sm:$0xf] }
 0x39e   : > { %v5195_v8 = vor.u32 %v5194_v25, %v5190_v14  ;;  %v8342_v39 = vcombine.low %v5584_v12, %v5585_v24  ;;  %v11278_v10 = vld [vmem:[#allocation2 + $0x30] sm:$0xf]  ;;  %v5587_v46 = vsel %vm10693_vm7, %v11260_v26, %v5553_v57  ;;  %v5589_v49 = vsel %vm10693_vm7, %v11264_v30, %v5555_v37  ;;  %v5556_v51 = vld [vmem:[#allocation2 + $0x24] sm:$0xf]  ;;  %v11287_v7 = vld [vmem:[#allocation2 + $0x3c] sm:$0xf] }
 0x39f   : > { %9241 = vmatprep.mubr.msk.bf16.mxu1 %vm384_vm2, %v8315_v2  ;;  %v5191_v15 = vsel %vm10855_vm0, %v5186_v6, %v5190_v14  ;;  %v5559_v52 = vld [vmem:[#allocation2 + $0x34] sm:$0xf]  ;;  %v6529_v27 = vrot.slane %v11271_v32, 5  ;;  %v5591_v21 = vsel %vm10693_vm7, %v11273_v47, %v5557_v11  ;;  %v5964_v55 = vld [vmem:[#allocation2 + $0x18] sm:$0xf]  ;;  %v5586_v59 = vsel %vm10864_vm8, %v5520_v20, %v5552_v13 }
 0x3a0   : > { %v5196_v50 = vrot.slane %v5195_v8, 4  ;;  %v5593_v53 = vsel %vm10693_vm7, %v11275_v23, %v5559_v52  ;;  %v5965_v54 = vld [vmem:[#allocation2 + $0x1c] sm:$0xf]  ;;  %v5588_v44 = vsel %vm10864_vm8, %v5522_v0, %v5554_v19  ;;  %v5558_v62 = vld [vmem:[#allocation2 + $0x30] sm:$0xf]  ;;  %v8343_v48 = vcombine.low %v5586_v59, %v5587_v46 }
 0x3a1   : > { %v5966_v40 = vld [vmem:[#allocation2 + $0x24] sm:$0xf]  ;;  %v5967_v14 = vld [vmem:[#allocation2 + $0x28] sm:$0xf]  ;;  %v8344_v63 = vcombine.low %v5588_v44, %v5589_v49  ;;  %v5590_v56 = vsel %vm10864_vm8, %v11278_v10, %v5556_v51  ;;  %v5592_v3 = vsel %vm10864_vm8, %v11287_v7, %v5558_v62  ;;  %v5968_v29 = vld [vmem:[#allocation2 + $0x30] sm:$0xf]  ;;  %v5997_v17 = vsel %vm10693_vm7, %v5965_v54, %v11249_v9 }
 0x3a2   : > { %v5201_v36 = vsel %vm10855_vm0, %v5196_v50, %v5200_v22  ;;  %v5969_v25 = vld [vmem:[#allocation2 + $0x34] sm:$0xf]  ;;  %v5970_v60 = vld [vmem:[#allocation2 + $0x3c] sm:$0xf]  ;;  %v11309_v58 = vcombine.low %v5590_v56, %v5591_v21  ;;  %v11311_v2 = vcombine.low %v5592_v3, %v5593_v53  ;;  %v11315_v8 = vld [vmem:[#allocation2 + $0x58] sm:$0xf]  ;;  %v5996_v22 = vsel %vm10864_vm8, %v5964_v55, %v5518_v61 }
 0x3a3   : > { %v8316_v31 = vcombine.low %v5191_v15, %v5201_v36  ;;  %v11313_v6 = vld [vmem:[#allocation2 + $0x54] sm:$0xf]  ;;  %v5971_v15 = vld [vmem:[#allocation2 + $0x40] sm:$0xf]  ;;  %v5972_v50 = vld [vmem:[#allocation2 + $0x48] sm:$0xf]  ;;  %v11332_v12 = vand.u32 %v9828_v41, %v9986_v5  ;;  %v11334_v61 = vcombine.low %v5996_v22, %v5997_v17  ;;  %v5998_v9 = vsel %vm10864_vm8, %v5966_v40, %v5520_v20 }
 0x3a4   : > { %v5973_v18 = vld [vmem:[#allocation2 + $0x4c] sm:$0xf]  ;;  %v11322_v24 = vld [vmem:[#allocation2 + $0x48] sm:$0xf]  ;;  %v5999_v13 = vsel %vm10693_vm7, %v5967_v14, %v11260_v26  ;;  %v5974_v57 = vld [vmem:[#allocation2 + $0x54] sm:$0xf]  ;;  %v6000_v46 = vsel %vm10864_vm8, %v5968_v29, %v5522_v0  ;;  %v6001_v20 = vsel %vm10693_vm7, %v5969_v25, %v11264_v30  ;;  %v6002_v26 = vsel %vm10864_vm8, %v5970_v60, %v11278_v10 }
 0x3a5   : > { %9242 = vmatmul.mubr.msk.bf16.gmra.mrb[28].mxu1 %vm384_vm2, %v8316_v31  ;;  %v11327_v36 = vld [vmem:[%s12304_s3 + $0x68] sm:$0xff]   ;;  %v5975_v42 = vld [vmem:[#allocation2 + $0x58] sm:$0xf]  ;;  %v11343_v11 = vld [vmem:[#allocation2 + $0x60] sm:$0xf]  ;;  %v11347_v37 = vcombine.low %v5998_v9, %v5999_v13  ;;  %v11364_v0 = vcombine.low %v6000_v46, %v6001_v20  ;;  %v6003_v30 = vsel %vm10693_vm7, %v5971_v15, %v11273_v47  ;;  %v6004_v10 = vsel %vm10864_vm8, %v5972_v50, %v11287_v7 }
 0x3a6   : > { %9251 = vmatprep.mubr.msk.bf16.mxu1 %vm384_vm2, %v8342_v39  ;;  %v11329_v31 = vld [vmem:[#allocation2 + $0x6c] sm:$0xf]  ;;  %v11345_v19 = vld [vmem:[#allocation2 + $0x70] sm:$0xf]  ;;  %v5976_v49 = vld [vmem:[#allocation2 + $0x60] sm:$0xf]  ;;  %v6005_v55 = vsel %vm10693_vm7, %v5973_v18, %v11275_v23  ;;  %v11381_v40 = vcombine.low %v6002_v26, %v6003_v30  ;;  %v6006_v7 = vsel %vm10864_vm8, %v5974_v57, %v11322_v24 }
 0x3a7   : > { %v11341_v39 = vld [vmem:[#allocation2 + $0x4c] sm:$0xf]  ;;  %v5977_v51 = vld [vmem:[#allocation2 + $0x64] sm:$0xf]  ;;  %v11362_v41 = vld [vmem:[#allocation2 + $0x88] sm:$0xf]  ;;  %v11383_v47 = vcombine.low %v6004_v10, %v6005_v55  ;;  %v6008_v3 = vsel %vm10864_vm8, %v5976_v49, %v11313_v6 }
 0x3a8   : > { %v5978_v52 = vld [vmem:[#allocation2 + $0x6c] sm:$0xf]  ;;  %v11358_v21 = vld [vmem:[#allocation2 + $0x64] sm:$0xf]  ;;  %v5979_v54 = vld [vmem:[#allocation2 + $0x70] sm:$0xf]  ;;  %v6007_v56 = vsel %vm10693_vm7, %v5975_v42, %v11341_v39  ;;  %v6009_v29 = vsel %vm10693_vm7, %v5977_v51, %v11315_v8 }
 0x3a9   : > { %v11360_v53 = vld [vmem:[#allocation2 + $0x84] sm:$0xf]  ;;  %v5980_v59 = vld [vmem:[#allocation2 + $0x78] sm:$0xf]  ;;  %v11379_v62 = vld [vmem:[#allocation2 + $0x7c] sm:$0xf]  ;;  %v6010_v25 = vsel %vm10864_vm8, %v5978_v52, %v11343_v11  ;;  %v11413_v9 = vcombine.low %v6006_v7, %v6007_v56  ;;  %v11415_v13 = vcombine.low %v6008_v3, %v6009_v29  ;;  %v6011_v57 = vsel %vm10693_vm7, %v5979_v54, %v11358_v21 }
 0x3aa   : > { %v11377_v44 = vld [vmem:[#allocation2 + $0x78] sm:$0xf]  ;;  %v5981_v14 = vld [vmem:[#allocation2 + $0x7c] sm:$0xf]  ;;  %v5982_v23 = vld [vmem:[#allocation2 + $0x84] sm:$0xf]  ;;  %v6012_v42 = vsel %vm10864_vm8, %v5980_v59, %v11329_v31  ;;  %v11425_v49 = vcombine.low %v6010_v25, %v6011_v57 }
 0x3ab   : > { %v5984_v60 = vld [vmem:[#allocation2 + $0x90] sm:$0xf]  ;;  %v5985_v22 = vld [vmem:[#allocation2 + $0x94] sm:$0xf]  ;;  %v11411_v18 = vld [vmem:[#allocation2 + $0xb8] sm:$0xf]  ;;  %v6013_v51 = vsel %vm10693_vm7, %v5981_v14, %v11345_v19  ;;  %v6014_v52 = vsel %vm10864_vm8, %v5982_v23, %v11377_v44 }
 0x3ac   : > { %v11405_v17 = vld [vmem:[#allocation2 + $0x90] sm:$0xf]  ;;  %v11407_v15 = vld [vmem:[#allocation2 + $0x94] sm:$0xf]  ;;  %v5986_v46 = vld [vmem:[#allocation2 + $0x9c] sm:$0xf]  ;;  %v11437_v59 = vcombine.low %v6012_v42, %v6013_v51  ;;  %v6016_v14 = vsel %vm10864_vm8, %v5984_v60, %v11360_v53  ;;  %v6017_v23 = vsel %vm10693_vm7, %v5985_v22, %v11362_v41 }
 0x3ad   : > { %9252 = vmatmul.mubr.msk.bf16.vlgmr.msra.gmra.mrb[0].mxu1 %vm384_vm2, %v8343_v48  ;;  %v5983_v48 = vld [vmem:[#allocation2 + $0x88] sm:$0xf]  ;;  %v11409_v50 = vld [vmem:[#allocation2 + $0xb4] sm:$0xf]  ;;  %v5987_v20 = vld [vmem:[#allocation2 + $0xa0] sm:$0xf]  ;;  %v11457_v57 = vcombine.low %v6016_v14, %v6017_v23  ;;  %v6018_v60 = vsel %vm10864_vm8, %v5986_v46, %v11405_v17 }
 0x3ae   : > { %9255 = vmatprep.mubr.msk.bf16.mxu1 %vm384_vm2, %v8344_v63  ;;  %9284 = vmatpush3.bf16.msra.mxu1 %v11221_v38  ;;  %v11389_v63 = vld [vmem:[#allocation2 + $0x9c] sm:$0xf]  ;;  %v11391_v38 = vld [vmem:[#allocation2 + $0xa0] sm:$0xf]  ;;  %v11423_v26 = vld [vmem:[#allocation2 + $0xa8] sm:$0xf]  ;;  %v6015_v30 = vsel %vm10693_vm7, %v5983_v48, %v11379_v62  ;;  %v6019_v22 = vsel %vm10693_vm7, %v5987_v20, %v11407_v15 }
 0x3af   : > { %9285 = vmatprep.subr.bf16.mxu1 %v11327_v36  ;;  %v5988_v10 = vld [vmem:[#allocation2 + $0xa8] sm:$0xf]  ;;  %v5989_v55 = vld [vmem:[#allocation2 + $0xac] sm:$0xf]  ;;  %v5990_v54 = vld [vmem:[#allocation2 + $0xb4] sm:$0xf]  ;;  %v11439_v7 = vcombine.low %v6014_v52, %v6015_v30  ;;  %v11473_v52 = vcombine.low %v6018_v60, %v6019_v22 }
 0x3b0   : > { %v5991_v56 = vld [vmem:[#allocation2 + $0xb8] sm:$0xf]  ;;  %v5992_v3 = vld [vmem:[#allocation2 + $0xc0] sm:$0xf]  ;;  %v5993_v48 = vld [vmem:[#allocation2 + $0xc4] sm:$0xf]  ;;  %v6020_v30 = vsel %vm10864_vm8, %v5988_v10, %v11389_v63  ;;  %v6021_v46 = vsel %vm10693_vm7, %v5989_v55, %v11391_v38  ;;  %v6022_v16 = vsel %vm10864_vm8, %v5990_v54, %v11423_v26 }
 0x3b1   : > { %v11448_v29 = vld [vmem:[#allocation2 + $0xac] sm:$0xf]  ;;  %v11455_v25 = vld [vmem:[%s12304_s3 + $0x78] sm:$0xff]   ;;  %vm11467_vm0 = vcmp.ne.s16.totalorder %v6413_v35, 0  ;;  %v11471_v51 = vld [vmem:[#allocation2 + $0xc4] sm:$0xf]  ;;  %v11486_v23 = vcombine.low %v6020_v30, %v6021_v46  ;;  %v6024_v55 = vsel %vm10864_vm8, %v5992_v3, %v11409_v50  ;;  %v6025_v54 = vsel %vm10693_vm7, %v5993_v48, %v11411_v18 }
 0x3b2   : > { %9286 = vmatpush3.bf16.msra.mxu1 %v11327_v36  ;;  %v11450_v36 = vld [vmem:[#allocation2 + $0xc0] sm:$0xf]  ;;  %v5994_v35 = vld [vmem:[#allocation2 + $0xcc] sm:$0xf]  ;;  %v5995_v20 = vld [vmem:[#allocation2 + $0xd0] sm:$0xf]  ;;  %v6023_v10 = vsel %vm10693_vm7, %v5991_v56, %v11448_v29  ;;  %v11504_v30 = vcombine.low %v6024_v55, %v6025_v54 }
 0x3b3   : > { %9287 = vmatprep.subr.bf16.mxu1 %v11332_v12  ;;  %v5561_v14 = vld [vmem:[#allocation2 + $0x40] sm:$0xf]  ;;  %v11497_v60 = vld [vmem:[#allocation2 + $0x18] sm:$0xe]  ;;  %v6393_v22 = vld [vmem:[#allocation2 + $0xc] sm:$0xe]  ;;  %v6026_v3 = vsel %vm10864_vm8, %v5994_v35, %v11450_v36  ;;  %v6027_v48 = vsel %vm10693_vm7, %v5995_v20, %v11471_v51 }
 0x3b4   : > { %vm6517_vm13 = vcmask 1042432   ;;  %v5560_v56 = vld [vmem:[#allocation2 + $0x3c] sm:$0xf]  ;;  %vm6518_vm14 = vcmask 1046532   ;;  %v11516_v46 = vcombine.low %v6026_v3, %v6027_v48  ;;  %v6424_v35 = vsel %vm11467_vm0, %v11497_v60, %v6393_v22  ;;  %v5562_v54 = vld [vmem:[#allocation2 + $0x48] sm:$0xf] }
 0x3b5   : > { %9256 = vmatmul.mubr.msk.bf16.gmra.mrb[4].mxu1 %vm384_vm2, %v11309_v58  ;;  %v11502_v58 = vcombine.low %v6022_v16, %v6023_v10  ;;  %vm11518_vm6 = vmor %vm6517_vm13, %vm6518_vm14  ;;  %v6532_v10 = vrot.slane %v10891_v34, 5  ;;  %v8419_v55 = vrot.slane %v6424_v35, 9  ;;  %v5596_v22 = vsel %vm10864_vm8, %v11313_v6, %v5562_v54  ;;  %v5564_v6 = vld [vmem:[#allocation2 + $0x54] sm:$0xf]  ;;  %v5566_v35 = vld [vmem:[#allocation2 + $0x60] sm:$0xf] }
 0x3b6   : > { %9259 = vmatprep.mubr.msk.bf16.mxu1 %vm384_vm2, %v11311_v2  ;;  %9288 = vmatpush3.bf16.msra.mxu1 %v11332_v12  ;;  %v5595_v2 = vsel %vm10693_vm7, %v11341_v39, %v5561_v14  ;;  %v5563_v12 = vld [vmem:[#allocation2 + $0x4c] sm:$0xf]  ;;  %v6531_v39 = vrot.slane %v6529_v27, 4  ;;  %v5594_v14 = vsel %vm10864_vm8, %v11322_v24, %v5560_v56  ;;  %v5565_v56 = vld [vmem:[#allocation2 + $0x58] sm:$0xf] }
 0x3b7   : > { %9321 = vmatprep.subr.bf16.mxu1 %v11455_v25  ;;  %v5597_v20 = vsel %vm10693_vm7, %v11315_v8, %v5563_v12  ;;  %v8347_v3 = vcombine.low %v5594_v14, %v5595_v2  ;;  %v11541_v34 = vsel %vm11518_vm6, %v8419_v55, %v6529_v27  ;;  %v5599_v32 = vsel %vm10693_vm7, %v11358_v21, %v5565_v56  ;;  %v5567_v27 = vld [vmem:[#allocation2 + $0x64] sm:$0xf]  ;;  %v5568_v21 = vld [vmem:[#allocation2 + $0x6c] sm:$0xf]  ;;  %v5571_v14 = vld [vmem:[#allocation2 + $0x7c] sm:$0xf] }
 0x3b8   : > { %v11545_v8 = vsel %vm11518_vm6, %v6531_v39, %v6532_v10  ;;  %v8348_v48 = vcombine.low %v5596_v22, %v5597_v20  ;;  %v5601_v2 = vsel %vm10693_vm7, %v11345_v19, %v5567_v27  ;;  %v5598_v12 = vsel %vm10864_vm8, %v11343_v11, %v5564_v6  ;;  %v5569_v39 = vld [vmem:[#allocation2 + $0x70] sm:$0xf]  ;;  %v5570_v54 = vld [vmem:[#allocation2 + $0x78] sm:$0xf]  ;;  %v5573_v56 = vld [vmem:[#allocation2 + $0x88] sm:$0xf] }
 0x3b9   : > { %v8441_v24 = vcombine.low %v11541_v34, %v11545_v8  ;;  %v8349_v10 = vcombine.low %v5598_v12, %v5599_v32  ;;  %v5600_v20 = vsel %vm10864_vm8, %v11329_v31, %v5566_v35  ;;  %v5603_v19 = vsel %vm10693_vm7, %v11379_v62, %v5569_v39  ;;  %v5572_v62 = vld [vmem:[#allocation2 + $0x84] sm:$0xf]  ;;  %v5575_v6 = vld [vmem:[#allocation2 + $0x94] sm:$0xf]  ;;  %v5574_v32 = vld [vmem:[#allocation2 + $0x90] sm:$0xf] }
 0x3ba   : > { %v8350_v55 = vcombine.low %v5600_v20, %v5601_v2  ;;  %v5605_v11 = vsel %vm10693_vm7, %v11362_v41, %v5571_v14  ;;  %v5602_v31 = vsel %vm10864_vm8, %v11377_v44, %v5568_v21  ;;  %v5604_v22 = vsel %vm10864_vm8, %v11360_v53, %v5570_v54  ;;  %v5577_v35 = vld [vmem:[#allocation2 + $0xa0] sm:$0xf]  ;;  %v5579_v20 = vld [vmem:[#allocation2 + $0xac] sm:$0xf]  ;;  %v5578_v39 = vld [vmem:[#allocation2 + $0xa8] sm:$0xf] }
 0x3bb   : > { %v5607_v41 = vsel %vm10693_vm7, %v11407_v15, %v5573_v56  ;;  %v5609_v44 = vsel %vm10693_vm7, %v11391_v38, %v5575_v6  ;;  %v5606_v53 = vsel %vm10864_vm8, %v11405_v17, %v5572_v62  ;;  %v5608_v2 = vsel %vm10864_vm8, %v11389_v63, %v5574_v32  ;;  %v5576_v15 = vld [vmem:[#allocation2 + $0x9c] sm:$0xf]  ;;  %v11605_v21 = vld [vmem:[#allocation2 + $0xc] sm:$0xe]  ;;  %v9839_v54 = vld [vmem:[#allocation2 + $0x14] sm:$0x1] }
 0x3bc   : > { %v8353_v27 = vcombine.low %v5606_v53, %v5607_v41  ;;  %v8354_v12 = vcombine.low %v5608_v2, %v5609_v44  ;;  %v5611_v17 = vsel %vm10693_vm7, %v11448_v29, %v5577_v35  ;;  %v5613_v63 = vsel %vm10693_vm7, %v11411_v18, %v5579_v20  ;;  %v6949_v29 = vld [vmem:[#allocation2 + $0x24] sm:$0xe]  ;;  %v9842_v56 = vld [vmem:[#allocation2 + $0x1c] sm:$0xf]  ;;  %v5580_v44 = vld [vmem:[#allocation2 + $0xb4] sm:$0xf] }
 0x3bd   : > { %9260 = vmatmul.mubr.msk.bf16.gmra.mrb[8].mxu1 %vm384_vm2, %v8347_v3  ;;  %v8351_v3 = vcombine.low %v5602_v31, %v5603_v19  ;;  %v6948_v19 = vld [vmem:[#allocation2 + $0x18] sm:$0xe]  ;;  %v6967_v41 = vsel %vm11467_vm0, %v6949_v29, %v11497_v60  ;;  %v7072_v6 = vrot.slane %v10898_v43, 5  ;;  %v5614_v43 = vsel %vm10864_vm8, %v11450_v36, %v5580_v44  ;;  %v9831_v36 = vld [vmem:[%s12304_s3 + $0x88] sm:$0xff]   ;;  %v11719_v29 = vld [vmem:[#allocation2 + $0x34] sm:$0xf] }
 0x3be   : > { %9263 = vmatprep.mubr.msk.bf16.mxu1 %vm384_vm2, %v8348_v48  ;;  %v8352_v48 = vcombine.low %v5604_v22, %v5605_v11  ;;  %v6964_v22 = vsel %vm11467_vm0, %v6948_v19, %v11605_v21  ;;  %v8476_v53 = vrot.slane %v6967_v41, 9  ;;  %v6753_v20 = vand.u32 %v9831_v36, %v9986_v5  ;;  %v9848_v19 = vld [vmem:[#allocation2 + $0x20] sm:$0x1]  ;;  %v11735_v41 = vld [vmem:[#allocation2 + $0x30] sm:$0xe] }
 0x3bf   : > { %v9856_v36 = vld [vmem:[#allocation2 + $0x38] sm:$0x1]  ;;  %v12207_v42 = vld [vmem:[%s12305_s4] ss:$0 sm:$0xff] }
 0x3c5   : > { %9264 = vmatmul.mubr.msk.bf16.gmra.mrb[12].mxu1 %vm384_vm2, %v8349_v10  ;;  %v9838_v10 = vld [vmem:[#allocation2 + $0x28] sm:$0xf] }
 0x3c6   : > { %9267 = vmatprep.mubr.msk.bf16.mxu1 %vm384_vm2, %v8350_v55  ;;  %v6968_v38 = vsel %vm6419_vm4, %v9838_v10, %v11266_v28  ;;  %v5610_v55 = vsel %vm10864_vm8, %v11423_v26, %v5576_v15  ;;  %v5612_v28 = vsel %vm10864_vm8, %v11409_v50, %v5578_v39  ;;  %v5581_v26 = vld [vmem:[#allocation2 + $0xb8] sm:$0xf] }
 0x3c7   : > { %v7069_v14 = vrot.slane %v6968_v38, 5  ;;  %v8355_v11 = vcombine.low %v5610_v55, %v5611_v17  ;;  %v8356_v31 = vcombine.low %v5612_v28, %v5613_v63  ;;  %v5615_v2 = vsel %vm10693_vm7, %v11471_v51, %v5581_v26  ;;  %v11710_v55 = vld [vmem:[#allocation2 + $0x24] sm:$0xe]  ;;  %v9852_v26 = vld [vmem:[#allocation2 + $0x34] sm:$0xf] }
 0x3c8   : > { %v8357_v38 = vcombine.low %v5614_v43, %v5615_v2  ;;  %v11744_v2 = vld [vmem:[#allocation2 + $0x3c] sm:$0xe]  ;;  %v11946_v51 = vld [vmem:[#allocation2 + $0xa8] sm:$0xe] }
 0x3c9   : > { %v7071_v32 = vrot.slane %v7069_v14, 4  ;;  %v11628_v15 = vsel %vm11518_vm6, %v8476_v53, %v7069_v14  ;;  %v11739_v53 = vld [vmem:[#allocation2 + $0x38] sm:$0x1]  ;;  %12332 = vst [vmem:[#allocation4_spill] sm:$0xff] %v11946_v51  ;;  %v6405_v17 = vld [vmem:[#allocation2 + $0x9c] sm:$0xe] }
 0x3cb   : > { %v11632_v10 = vsel %vm11518_vm6, %v7071_v32, %v7072_v6  ;;  %v6395_v6 = vld [vmem:[#allocation2 + $0x24] sm:$0xe]  ;;  %v9854_v32 = vld [vmem:[#allocation2 + $0x2c] sm:$0x1] }
 0x3cd   : > { %9268 = vmatmul.mubr.msk.bf16.gmra.mrb[16].mxu1 %vm384_vm2, %v8351_v3  ;;  %v9840_v3 = vld [vmem:[#allocation2 + $0x20] sm:$0x1] }
 0x3ce   : > { %9271 = vmatprep.mubr.msk.bf16.mxu1 %vm384_vm2, %v8352_v48  ;;  %v6966_v18 = vsel %vm6420_vm3, %v9840_v3, %v9839_v54  ;;  %v9841_v48 = vld [vmem:[#allocation2 + $0x10] sm:$0xf] }
 0x3cf   : > { %v6965_v62 = vsel %vm6419_vm4, %v9842_v56, %v9841_v48 }
 0x3d0   : > { %v7062_v50 = vrot.slane %v6965_v62, 5 }
 0x3d2   : > { %v7064_v35 = vrot.slane %v7062_v50, 4 }
 0x3d5   : > { %9272 = vmatmul.mubr.msk.bf16.gmra.mrb[20].mxu1 %vm384_vm2, %v8353_v27  ;;  %v7065_v27 = vrot.slane %v6966_v18, 5  ;;  %v11728_v18 = vld [vmem:[#allocation2 + $0x40] sm:$0xf] }
 0x3d6   : > { %9275 = vmatprep.mubr.msk.bf16.mxu1 %vm384_vm2, %v8354_v12  ;;  %v8475_v12 = vrot.slane %v6964_v22, 9 }
 0x3d7   : > { %v11643_v33 = vsel %vm11518_vm6, %v7064_v35, %v7065_v27  ;;  %v6432_v27 = vsel %vm6420_vm3, %v11739_v53, %v9854_v32  ;;  %v9834_v35 = vld [vmem:[%s12304_s3 + $0xa0] sm:$0xff]   ;;  %v9866_v32 = vld [vmem:[#allocation2 + $0x58] sm:$0xf] }
 0x3d8   : > { %v11639_v60 = vsel %vm11518_vm6, %v8475_v12, %v7062_v50  ;;  %v9833_v12 = vld [vmem:[%s12304_s3 + $0x98] sm:$0xff]   ;;  %v6546_v34 = vrot.slane %v6432_v27, 5 }
 0x3dd   : > { %9276 = vmatmul.mubr.msk.bf16.gmra.mrb[24].mxu1 %vm384_vm2, %v8355_v11  ;;  %v6394_v11 = vld [vmem:[#allocation2 + $0x18] sm:$0xe] }
 0x3de   : > { %9279 = vmatprep.mubr.msk.bf16.mxu1 %vm384_vm2, %v8356_v31  ;;  %v9850_v31 = vld [vmem:[#allocation2 + $0x28] sm:$0xf]  ;;  %v6427_v3 = vsel %vm11467_vm0, %v11710_v55, %v6394_v11 }
 0x3df   : > { %v8420_v56 = vrot.slane %v6427_v3, 9  ;;  %v11795_v3 = vld [vmem:[#allocation2 + $0x54] sm:$0xe] }
 0x3e5   : > { %9280 = vmatmul.mubr.msk.bf16.gmra.mrb[28].mxu1 %vm384_vm2, %v8357_v38 }
 0x3e6   : > { %9289 = vmatprep.mubr.msk.bf16.mxu1 %vm384_vm2, %v11334_v61  ;;  %v11667_v61 = vld [vmem:[%s12304_s3 + $0x90] sm:$0xff]  }
 0x3ed   : > { %9290 = vmatmul.mubr.msk.bf16.vlgmr.msra.gmra.mrb[0].mxu1 %vm384_vm2, %v11347_v37  ;;  %v9843_v37 = vld [vmem:[#allocation2 + $0x4] sm:$0xf] }
 0x3ee   : > { %9293 = vmatprep.mubr.msk.bf16.mxu1 %vm384_vm2, %v11364_v0  ;;  %9322 = vmatpush3.bf16.msra.mxu1 %v11455_v25  ;;  %v6422_v0 = vsel %vm6419_vm4, %v9841_v48, %v9843_v37  ;;  %v9846_v25 = vld [vmem:[#allocation2 + $0x1c] sm:$0xf]  ;;  %v6430_v37 = vsel %vm11467_vm0, %v11735_v41, %v6395_v6 }
 0x3ef   : > { %9323 = vmatprep.subr.bf16.mxu1 %v9830_v45 }
 0x3f2   : > { %9324 = vmatpush3.bf16.msra.mxu1 %v9830_v45  ;;  %v11752_v45 = vld [vmem:[#allocation2 + $0x44] sm:$0x1] }
 0x3f3   : > { %9325 = vmatprep.subr.bf16.mxu1 %v6753_v20 }
 0x3f5   : > { %9294 = vmatmul.mubr.msk.bf16.gmra.mrb[4].mxu1 %vm384_vm2, %v11381_v40  ;;  %v6522_v40 = vrot.slane %v6422_v0, 5  ;;  %v6396_v0 = vld [vmem:[#allocation2 + $0x30] sm:$0xe] }
 0x3f6   : > { %9297 = vmatprep.mubr.msk.bf16.mxu1 %vm384_vm2, %v11383_v47  ;;  %9326 = vmatpush3.bf16.msra.mxu1 %v6753_v20  ;;  %v6392_v47 = vld [vmem:[#allocation2] sm:$0xe]  ;;  %v6435_v20 = vsel %vm6420_vm3, %v11752_v45, %v9856_v36  ;;  %v6433_v8 = vsel %vm11467_vm0, %v11744_v2, %v6396_v0 }
 0x3f7   : > { %9359 = vmatprep.subr.bf16.mxu1 %v11667_v61 }
 0x3fd   : > { %9298 = vmatmul.mubr.msk.bf16.gmra.mrb[8].mxu1 %vm384_vm2, %v11413_v9  ;;  %v9844_v9 = vld [vmem:[#allocation2 + $0x8] sm:$0x1] }
 0x3fe   : > { %9301 = vmatprep.mubr.msk.bf16.mxu1 %vm384_vm2, %v11415_v13  ;;  %v6423_v13 = vsel %vm6420_vm3, %v9839_v54, %v9844_v9  ;;  %v6431_v54 = vsel %vm6419_vm4, %v11719_v29, %v9850_v31  ;;  %v9858_v9 = vld [vmem:[#allocation2 + $0x40] sm:$0xf]  ;;  %v9862_v31 = vld [vmem:[#allocation2 + $0x44] sm:$0x1] }
 0x3ff   : > { %v6543_v48 = vrot.slane %v6431_v54, 5 }
 0x401   : > { %v6545_v38 = vrot.slane %v6543_v48, 4 }
 0x405   : > { %9302 = vmatmul.mubr.msk.bf16.gmra.mrb[12].mxu1 %vm384_vm2, %v11425_v49  ;;  %v6524_v49 = vrot.slane %v6522_v40, 4 }
 0x406   : > { %9305 = vmatprep.mubr.msk.bf16.mxu1 %vm384_vm2, %v11437_v59  ;;  %v6421_v59 = vsel %vm11467_vm0, %v11605_v21, %v6392_v47  ;;  %v11712_v21 = vld [vmem:[#allocation2 + $0x2c] sm:$0x1] }
 0x407   : > { %v6429_v14 = vsel %vm6420_vm3, %v11712_v21, %v9848_v19  ;;  %v11764_v47 = vld [vmem:[#allocation2 + $0x4c] sm:$0xf]  ;;  %v11786_v19 = vld [vmem:[#allocation2 + $0x48] sm:$0xe] }
 0x408   : > { %v6539_v22 = vrot.slane %v6429_v14, 5  ;;  %v6397_v14 = vld [vmem:[#allocation2 + $0x3c] sm:$0xe] }
 0x40d   : > { %9306 = vmatmul.mubr.msk.bf16.gmra.mrb[16].mxu1 %vm384_vm2, %v11439_v7  ;;  %v11701_v7 = vld [vmem:[#allocation2 + $0x28] sm:$0xf] }
 0x40e   : > { %9309 = vmatprep.mubr.msk.bf16.mxu1 %vm384_vm2, %v11457_v57  ;;  %v6428_v57 = vsel %vm6419_vm4, %v11701_v7, %v9846_v25  ;;  %v6553_v25 = vrot.slane %v6435_v20, 5 }
 0x40f   : > { %v6536_v63 = vrot.slane %v6428_v57, 5  ;;  %v7293_v57 = vand.u32 %v9834_v35, %v9986_v5 }
 0x411   : > { %v6538_v28 = vrot.slane %v6536_v63, 4  ;;  %v6537_v44 = vsel %vm11518_vm6, %v8420_v56, %v6536_v63 }
 0x413   : > { %v6540_v62 = vsel %vm11518_vm6, %v6538_v28, %v6539_v22  ;;  %v11790_v28 = vld [vmem:[#allocation2 + $0x50] sm:$0x1]  ;;  %v11797_v22 = vld [vmem:[#allocation2 + $0x5c] sm:$0x1] }
 0x414   : > { %v8442_v43 = vcombine.low %v6537_v44, %v6540_v62  ;;  %v6438_v54 = vsel %vm6420_vm3, %v11790_v28, %v9862_v31  ;;  %v6436_v62 = vsel %vm11467_vm0, %v11786_v19, %v6397_v14  ;;  %v11806_v44 = vld [vmem:[#allocation2 + $0x64] sm:$0xf]  ;;  %v6400_v31 = vld [vmem:[#allocation2 + $0x60] sm:$0xe] }
 0x415   : > { %9310 = vmatmul.mubr.msk.bf16.gmra.mrb[20].mxu1 %vm384_vm2, %v11473_v52  ;;  %v6525_v52 = vrot.slane %v6423_v13, 5  ;;  %v6437_v13 = vsel %vm6419_vm4, %v11764_v47, %v9858_v9  ;;  %v6443_v27 = vsel %vm6419_vm4, %v11806_v44, %v9866_v32 }
 0x416   : > { %9313 = vmatprep.mubr.msk.bf16.mxu1 %vm384_vm2, %v11486_v23  ;;  %v8418_v23 = vrot.slane %v6421_v59, 9 }
 0x41d   : > { %9314 = vmatmul.mubr.msk.bf16.gmra.mrb[24].mxu1 %vm384_vm2, %v11502_v58  ;;  %v6526_v58 = vsel %vm11518_vm6, %v6524_v49, %v6525_v52  ;;  %v9860_v49 = vld [vmem:[#allocation2 + $0x4c] sm:$0xf]  ;;  %v8421_v52 = vrot.slane %v6430_v37, 9  ;;  %v8423_v37 = vrot.slane %v6436_v62, 9 }
 0x41e   : > { %9317 = vmatprep.mubr.msk.bf16.mxu1 %vm384_vm2, %v11504_v30  ;;  %v6523_v30 = vsel %vm11518_vm6, %v8418_v23, %v6522_v40  ;;  %v6557_v23 = vrot.slane %v6437_v13, 5 }
 0x41f   : > { %v8440_v39 = vcombine.low %v6523_v30, %v6526_v58  ;;  %v8422_v58 = vrot.slane %v6433_v8, 9 }
 0x420   : > { %v6558_v8 = vsel %vm11518_vm6, %v8423_v37, %v6557_v23 }
 0x425   : > { %9318 = vmatmul.mubr.msk.bf16.gmra.mrb[28].mxu1 %vm384_vm2, %v11516_v46  ;;  %v6434_v46 = vsel %vm6419_vm4, %v11728_v18, %v9852_v26 }
 0x426   : > { %9327 = vmatprep.mubr.msk.bf16.mxu1 %vm384_vm2, %v8440_v39  ;;  %v6550_v50 = vrot.slane %v6434_v46, 5  ;;  %v6544_v39 = vsel %vm11518_vm6, %v8421_v52, %v6543_v48  ;;  %v6559_v46 = vrot.slane %v6557_v23, 4  ;;  %v9864_v48 = vld [vmem:[#allocation2 + $0x50] sm:$0x1]  ;;  %v11830_v52 = vld [vmem:[#allocation2 + $0x68] sm:$0x1] }
 0x427   : > { %v6441_v56 = vsel %vm6420_vm3, %v11797_v22, %v9864_v48  ;;  %v9872_v23 = vld [vmem:[#allocation2 + $0x68] sm:$0x1] }
 0x428   : > { %v6552_v40 = vrot.slane %v6550_v50, 4  ;;  %v6551_v5 = vsel %vm11518_vm6, %v8422_v58, %v6550_v50  ;;  %v6398_v50 = vld [vmem:[#allocation2 + $0x48] sm:$0xe]  ;;  %v6567_v20 = vrot.slane %v6441_v56, 5 }
 0x429   : > { %v6439_v35 = vsel %vm11467_vm0, %v11795_v3, %v6398_v50  ;;  %v11855_v50 = vld [vmem:[#allocation2 + $0x88] sm:$0xf] }
 0x42a   : > { %v6554_v63 = vsel %vm11518_vm6, %v6552_v40, %v6553_v25  ;;  %v6571_v40 = vrot.slane %v6443_v27, 5  ;;  %v8424_v9 = vrot.slane %v6439_v35, 9 }
 0x42b   : > { %v8444_v26 = vcombine.low %v6551_v5, %v6554_v63  ;;  %v11835_v63 = vld [vmem:[#allocation2 + $0x6c] sm:$0xe] }
 0x42c   : > { %v6573_v14 = vrot.slane %v6571_v40, 4  ;;  %v6445_v62 = vsel %vm11467_vm0, %v11835_v63, %v6400_v31 }
 0x42d   : > { %9328 = vmatmul.mubr.msk.bf16.vlgmr.msra.gmra.mrb[0].mxu1 %vm384_vm2, %v8441_v24  ;;  %v11774_v24 = vld [vmem:[#allocation2 + $0x58] sm:$0xf] }
 0x42e   : > { %9331 = vmatprep.mubr.msk.bf16.mxu1 %vm384_vm2, %v8442_v43  ;;  %9360 = vmatpush3.bf16.msra.mxu1 %v11667_v61  ;;  %v6440_v59 = vsel %vm6419_vm4, %v11774_v24, %v9860_v49  ;;  %v6547_v61 = vsel %vm11518_vm6, %v6545_v38, %v6546_v34  ;;  %v11815_v43 = vld [vmem:[#allocation2 + $0x70] sm:$0xf]  ;;  %v9868_v38 = vld [vmem:[#allocation2 + $0x64] sm:$0xf]  ;;  %v11826_v49 = vld [vmem:[#allocation2 + $0x60] sm:$0xe] }
 0x42f   : > { %9361 = vmatprep.subr.bf16.mxu1 %v9833_v12  ;;  %v6564_v30 = vrot.slane %v6440_v59, 5  ;;  %v8443_v11 = vcombine.low %v6544_v39, %v6547_v61  ;;  %v6446_v36 = vsel %vm6419_vm4, %v11815_v43, %v9868_v38  ;;  %v6399_v59 = vld [vmem:[#allocation2 + $0x54] sm:$0xe]  ;;  %v9870_v61 = vld [vmem:[#allocation2 + $0x5c] sm:$0x1] }
 0x430   : > { %v6578_v34 = vrot.slane %v6446_v36, 5  ;;  %v6444_v58 = vsel %vm6420_vm3, %v11830_v52, %v9870_v61  ;;  %v8426_v36 = vrot.slane %v6445_v62, 9 }
 0x431   : > { %v6566_v6 = vrot.slane %v6564_v30, 4  ;;  %v6574_v56 = vrot.slane %v6444_v58, 5  ;;  %v11875_v58 = vld [vmem:[#allocation2 + $0x84] sm:$0xe] }
 0x432   : > { %9362 = vmatpush3.bf16.msra.mxu1 %v9833_v12  ;;  %v6560_v12 = vrot.slane %v6438_v54, 5  ;;  %v6580_v54 = vrot.slane %v6578_v34, 4 }
 0x433   : > { %9363 = vmatprep.subr.bf16.mxu1 %v7293_v57  ;;  %v6568_v13 = vsel %vm11518_vm6, %v6566_v6, %v6567_v20  ;;  %v9876_v6 = vld [vmem:[#allocation2 + $0x7c] sm:$0xf]  ;;  %v6575_v35 = vsel %vm11518_vm6, %v6573_v14, %v6574_v56 }
 0x434   : > { %v6561_v0 = vsel %vm11518_vm6, %v6559_v46, %v6560_v12  ;;  %v9874_v46 = vld [vmem:[#allocation2 + $0x70] sm:$0xf]  ;;  %v6452_v32 = vsel %vm6419_vm4, %v11855_v50, %v9876_v6  ;;  %v11895_v6 = vld [vmem:[#allocation2 + $0xa0] sm:$0xf] }
 0x435   : > { %9332 = vmatmul.mubr.msk.bf16.gmra.mrb[4].mxu1 %vm384_vm2, %v8443_v11  ;;  %v8445_v25 = vcombine.low %v6558_v8, %v6561_v0  ;;  %v11837_v11 = vld [vmem:[#allocation2 + $0x74] sm:$0x1]  ;;  %v6592_v37 = vrot.slane %v6452_v32, 5 }
 0x436   : > { %9335 = vmatprep.mubr.msk.bf16.mxu1 %vm384_vm2, %v8444_v26  ;;  %9364 = vmatpush3.bf16.msra.mxu1 %v7293_v57  ;;  %v6565_v57 = vsel %vm11518_vm6, %v8424_v9, %v6564_v30  ;;  %v6447_v5 = vsel %vm6420_vm3, %v11837_v11, %v9872_v23  ;;  %v6442_v30 = vsel %vm11467_vm0, %v11826_v49, %v6399_v59  ;;  %v11846_v26 = vld [vmem:[#allocation2 + $0x7c] sm:$0xf]  ;;  %v11866_v9 = vld [vmem:[#allocation2 + $0x78] sm:$0xe]  ;;  %v11877_v23 = vld [vmem:[#allocation2 + $0x8c] sm:$0x1] }
 0x437   : > { %v8446_v39 = vcombine.low %v6565_v57, %v6568_v13  ;;  %v6449_v48 = vsel %vm6419_vm4, %v11846_v26, %v9874_v46  ;;  %v6581_v27 = vrot.slane %v6447_v5, 5  ;;  %v8425_v12 = vrot.slane %v6442_v30, 9  ;;  %v6401_v13 = vld [vmem:[#allocation2 + $0x6c] sm:$0xe]  ;;  %v9878_v57 = vld [vmem:[#allocation2 + $0x74] sm:$0x1] }
 0x438   : > { %v6585_v38 = vrot.slane %v6449_v48, 5  ;;  %v6579_v59 = vsel %vm11518_vm6, %v8426_v36, %v6578_v34  ;;  %v6448_v34 = vsel %vm11467_vm0, %v11866_v9, %v6401_v13  ;;  %v6402_v30 = vld [vmem:[#allocation2 + $0x78] sm:$0xe]  ;;  %v6594_v31 = vrot.slane %v6592_v37, 4  ;;  %v9882_v46 = vld [vmem:[#allocation2 + $0x88] sm:$0xf] }
 0x439   : > { %v6582_v20 = vsel %vm11518_vm6, %v6580_v54, %v6581_v27  ;;  %v6572_v0 = vsel %vm11518_vm6, %v8425_v12, %v6571_v40  ;;  %v9880_v40 = vld [vmem:[#allocation2 + $0x80] sm:$0x1]  ;;  %v11886_v54 = vld [vmem:[#allocation2 + $0x94] sm:$0xf]  ;;  %v6451_v62 = vsel %vm11467_vm0, %v11875_v58, %v6402_v30  ;;  %v11915_v30 = vld [vmem:[#allocation2 + $0x9c] sm:$0xe] }
 0x43a   : > { %v8447_v8 = vcombine.low %v6572_v0, %v6575_v35  ;;  %v6587_v14 = vrot.slane %v6585_v38, 4  ;;  %v6453_v5 = vsel %vm6420_vm3, %v11877_v23, %v9880_v40  ;;  %v6455_v48 = vsel %vm6419_vm4, %v11886_v54, %v9882_v46  ;;  %v9884_v32 = vld [vmem:[#allocation2 + $0x94] sm:$0xf]  ;;  %12331 = vst [vmem:[#allocation3_spill] sm:$0xff] %v11915_v30 }
 0x43b   : > { %v6458_v27 = vsel %vm6419_vm4, %v11895_v6, %v9884_v32  ;;  %v6595_v12 = vrot.slane %v6453_v5, 5  ;;  %v8427_v35 = vrot.slane %v6448_v34, 9  ;;  %v8428_v0 = vrot.slane %v6451_v62, 9  ;;  %v11910_v5 = vld [vmem:[#allocation2 + $0x98] sm:$0x1] }
 0x43c   : > { %v9886_v34 = vld [vmem:[#allocation2 + $0x8c] sm:$0x1]  ;;  %v6404_v62 = vld [vmem:[#allocation2 + $0x90] sm:$0xe] }
 0x43d   : > { %9336 = vmatmul.mubr.msk.bf16.gmra.mrb[8].mxu1 %vm384_vm2, %v8445_v25  ;;  %v11870_v25 = vld [vmem:[#allocation2 + $0x80] sm:$0x1]  ;;  %v6596_v13 = vsel %vm11518_vm6, %v6594_v31, %v6595_v12  ;;  %v6593_v40 = vsel %vm11518_vm6, %v8428_v0, %v6592_v37  ;;  %v6457_v0 = vsel %vm11467_vm0, %v11915_v30, %v6404_v62 }
 0x43e   : > { %9339 = vmatprep.mubr.msk.bf16.mxu1 %vm384_vm2, %v8446_v39  ;;  %v6450_v61 = vsel %vm6420_vm3, %v11870_v25, %v9878_v57  ;;  %v8448_v39 = vcombine.low %v6579_v59, %v6582_v20  ;;  %v6599_v20 = vrot.slane %v6455_v48, 5  ;;  %v6586_v59 = vsel %vm11518_vm6, %v8427_v35, %v6585_v38  ;;  %v11906_v57 = vld [vmem:[#allocation2 + $0x90] sm:$0xe]  ;;  %v11917_v48 = vld [vmem:[#allocation2 + $0xa4] sm:$0x1] }
 0x43f   : > { %v6588_v56 = vrot.slane %v6450_v61, 5  ;;  %v6403_v61 = vld [vmem:[#allocation2 + $0x84] sm:$0xe]  ;;  %v8450_v31 = vcombine.low %v6593_v40, %v6596_v13  ;;  %v9888_v38 = vld [vmem:[#allocation2 + $0x98] sm:$0x1] }
 0x440   : > { %v6601_v46 = vrot.slane %v6599_v20, 4  ;;  %v6454_v37 = vsel %vm11467_vm0, %v11906_v57, %v6403_v61  ;;  %v9890_v12 = vld [vmem:[#allocation2 + $0xa0] sm:$0xf]  ;;  %v11935_v13 = vld [vmem:[#allocation2 + $0xb8] sm:$0xf] }
 0x441   : > { %v6589_v36 = vsel %vm11518_vm6, %v6587_v14, %v6588_v56  ;;  %v6456_v14 = vsel %vm6420_vm3, %v11910_v5, %v9886_v34  ;;  %v6459_v56 = vsel %vm6420_vm3, %v11917_v48, %v9888_v38  ;;  %v8429_v40 = vrot.slane %v6454_v37, 9  ;;  %v11950_v37 = vld [vmem:[#allocation2 + $0xb0] sm:$0x1] }
 0x443   : > { %v6600_v62 = vsel %vm11518_vm6, %v8429_v40, %v6599_v20  ;;  %v9896_v20 = vld [vmem:[#allocation2 + $0xb0] sm:$0x1] }
 0x445   : > { %9340 = vmatmul.mubr.msk.bf16.gmra.mrb[12].mxu1 %vm384_vm2, %v8447_v8  ;;  %v6606_v8 = vrot.slane %v6458_v27, 5  ;;  %v11926_v27 = vld [vmem:[#allocation2 + $0xac] sm:$0xf] }
 0x446   : > { %9343 = vmatprep.mubr.msk.bf16.mxu1 %vm384_vm2, %v8448_v39  ;;  %v8449_v39 = vcombine.low %v6586_v59, %v6589_v36  ;;  %v6461_v35 = vsel %vm6419_vm4, %v11926_v27, %v9890_v12  ;;  %v6602_v36 = vrot.slane %v6456_v14, 5  ;;  %v9892_v59 = vld [vmem:[#allocation2 + $0xac] sm:$0xf]  ;;  %v8430_v12 = vrot.slane %v6457_v0, 9  ;;  %v11957_v0 = vld [vmem:[#allocation2 + $0xbc] sm:$0x1] }
 0x447   : > { %v6608_v32 = vrot.slane %v6606_v8, 4  ;;  %v6464_v61 = vsel %vm6419_vm4, %v11935_v13, %v9892_v59  ;;  %v6613_v38 = vrot.slane %v6461_v35, 5  ;;  %v9894_v59 = vld [vmem:[#allocation2 + $0xa4] sm:$0x1]  ;;  %v11955_v35 = vld [vmem:[#allocation2 + $0xb4] sm:$0xe] }
 0x448   : > { %v6603_v34 = vsel %vm11518_vm6, %v6601_v46, %v6602_v36  ;;  %v6462_v46 = vsel %vm6420_vm3, %v11950_v37, %v9894_v59  ;;  %12333 = vst [vmem:[#allocation5_spill] sm:$0xff] %v11957_v0 }
 0x449   : > { %v8451_v30 = vcombine.low %v6600_v62, %v6603_v34  ;;  %v6615_v36 = vrot.slane %v6613_v38, 4  ;;  %v11966_v34 = vld [vmem:[#allocation2 + $0xc4] sm:$0xf]  ;;  %v6616_v62 = vrot.slane %v6462_v46, 5  ;;  %v6407_v46 = vld [vmem:[#allocation2 + $0xb4] sm:$0xe] }
 0x44a   : > { %12334 = vst [vmem:[#allocation6_spill] sm:$0xff] %v11966_v34 }
 0x44d   : > { %9344 = vmatmul.mubr.msk.bf16.gmra.mrb[16].mxu1 %vm384_vm2, %v8449_v39  ;;  %v6609_v39 = vrot.slane %v6459_v56, 5  ;;  %v6607_v56 = vsel %vm11518_vm6, %v8430_v12, %v6606_v8  ;;  %v6460_v8 = vsel %vm11467_vm0, %v11946_v51, %v6405_v17  ;;  %v9898_v12 = vld [vmem:[#allocation2 + $0xb8] sm:$0xf]  ;;  %v6617_v17 = vsel %vm11518_vm6, %v6615_v36, %v6616_v62 }
 0x44e   : > { %9347 = vmatprep.mubr.msk.bf16.mxu1 %vm384_vm2, %v8450_v31  ;;  %v6620_v31 = vrot.slane %v6464_v61, 5  ;;  %v6465_v61 = vsel %vm6420_vm3, %v11957_v0, %v9896_v20  ;;  %v8431_v59 = vrot.slane %v6460_v8, 9  ;;  %v9900_v8 = vld [vmem:[#allocation2 + $0xbc] sm:$0x1] }
 0x44f   : > { %v6610_v14 = vsel %vm11518_vm6, %v6608_v32, %v6609_v39  ;;  %v6406_v39 = vld [vmem:[#allocation2 + $0xa8] sm:$0xe] }
 0x450   : > { %v8452_v32 = vcombine.low %v6607_v56, %v6610_v14  ;;  %v6622_v40 = vrot.slane %v6620_v31, 4  ;;  %v6467_v14 = vsel %vm6419_vm4, %v11966_v34, %v9898_v12  ;;  %v6623_v56 = vrot.slane %v6465_v61, 5  ;;  %v11981_v34 = vld [vmem:[#allocation2 + $0xc0] sm:$0xe]  ;;  %v11985_v61 = vld [vmem:[#allocation2 + $0xc8] sm:$0x1] }
 0x451   : > { %v6627_v20 = vrot.slane %v6467_v14, 5  ;;  %v6614_v12 = vsel %vm11518_vm6, %v8431_v59, %v6613_v38  ;;  %v6468_v36 = vsel %vm6420_vm3, %v11985_v61, %v9900_v8  ;;  %v6466_v38 = vsel %vm11467_vm0, %v11981_v34, %v6407_v46  ;;  %v9903_v8 = vld [vmem:[#allocation2 + $0x40] sm:$0xf] }
 0x452   : > { %v6624_v0 = vsel %vm11518_vm6, %v6622_v40, %v6623_v56  ;;  %v6630_v40 = vrot.slane %v6468_v36, 5  ;;  %v12335_v36 = vcombine.low %v11639_v60, %v11643_v33  ;;  %v9905_v33 = vld [vmem:[#allocation2 + $0x44] sm:$0x1] }
 0x453   : > { %v6629_v62 = vrot.slane %v6627_v20, 4 }
 0x455   : > { %9348 = vmatmul.mubr.msk.bf16.gmra.mrb[20].mxu1 %vm384_vm2, %v8451_v30  ;;  %v6463_v30 = vsel %vm11467_vm0, %v11955_v35, %v6406_v39  ;;  %v6631_v56 = vsel %vm11518_vm6, %v6629_v62, %v6630_v40 }
 0x456   : > { %9351 = vmatprep.mubr.msk.bf16.mxu1 %vm384_vm2, %v8452_v32  ;;  %v8432_v51 = vrot.slane %v6463_v30, 9  ;;  %v8453_v32 = vcombine.low %v6614_v12, %v6617_v17  ;;  %v9901_v30 = vld [vmem:[#allocation2 + $0x34] sm:$0xf]  ;;  %v6950_v12 = vld [vmem:[#allocation2 + $0x30] sm:$0xe] }
 0x458   : > { %v6621_v39 = vsel %vm11518_vm6, %v8432_v51, %v6620_v31  ;;  %v6971_v51 = vsel %vm6419_vm4, %v9901_v30, %v11701_v7  ;;  %v8433_v31 = vrot.slane %v6466_v38, 9  ;;  %v6974_v7 = vsel %vm6419_vm4, %v9903_v8, %v11719_v29 }
 0x459   : > { %v8454_v14 = vcombine.low %v6621_v39, %v6624_v0  ;;  %v7076_v0 = vrot.slane %v6971_v51, 5  ;;  %v7083_v38 = vrot.slane %v6974_v7, 5  ;;  %v6951_v51 = vld [vmem:[#allocation2 + $0x3c] sm:$0xe] }
 0x45a   : > { %v6628_v59 = vsel %vm11518_vm6, %v8433_v31, %v6627_v20  ;;  %v6970_v20 = vsel %vm11467_vm0, %v6950_v12, %v11710_v55  ;;  %v6975_v55 = vsel %vm6420_vm3, %v9905_v33, %v11739_v53  ;;  %v6952_v31 = vld [vmem:[#allocation2 + $0x48] sm:$0xe]  ;;  %v12336_v12 = vcombine.low %v11628_v15, %v11632_v10  ;;  %v9908_v15 = vld [vmem:[#allocation2 + $0x64] sm:$0xf] }
 0x45b   : > { %v8455_v17 = vcombine.low %v6628_v59, %v6631_v56  ;;  %v7078_v39 = vrot.slane %v7076_v0, 4  ;;  %v8477_v40 = vrot.slane %v6970_v20, 9  ;;  %v7085_v59 = vrot.slane %v7083_v38, 4 }
 0x45c   : > { %v6983_v10 = vsel %vm6419_vm4, %v9908_v15, %v11774_v24  ;;  %v9909_v24 = vld [vmem:[#allocation2 + $0x5c] sm:$0x1] }
 0x45d   : > { %9352 = vmatmul.mubr.msk.bf16.gmra.mrb[24].mxu1 %vm384_vm2, %v8453_v32  ;;  %v9902_v32 = vld [vmem:[#allocation2 + $0x38] sm:$0x1]  ;;  %v7077_v60 = vsel %vm11518_vm6, %v8477_v40, %v7076_v0  ;;  %v6973_v0 = vsel %vm11467_vm0, %v6951_v51, %v11735_v41  ;;  %v6954_v51 = vld [vmem:[#allocation2 + $0x60] sm:$0xe] }
 0x45e   : > { %9355 = vmatprep.mubr.msk.bf16.mxu1 %vm384_vm2, %v8454_v14  ;;  %v6972_v46 = vsel %vm6420_vm3, %v9902_v32, %v11712_v21  ;;  %v9904_v14 = vld [vmem:[#allocation2 + $0x4c] sm:$0xf]  ;;  %v8478_v41 = vrot.slane %v6973_v0, 9 }
 0x45f   : > { %v6977_v21 = vsel %vm6419_vm4, %v9904_v14, %v11728_v18  ;;  %v7079_v62 = vrot.slane %v6972_v46, 5  ;;  %v9906_v18 = vld [vmem:[#allocation2 + $0x50] sm:$0x1]  ;;  %v9907_v46 = vld [vmem:[#allocation2 + $0x58] sm:$0xf]  ;;  %v7104_v14 = vrot.slane %v6983_v10, 5 }
 0x460   : > { %v7090_v30 = vrot.slane %v6977_v21, 5  ;;  %v6980_v53 = vsel %vm6419_vm4, %v9907_v46, %v11764_v47  ;;  %v7084_v21 = vsel %vm11518_vm6, %v8478_v41, %v7083_v38 }
 0x461   : > { %v7080_v29 = vsel %vm11518_vm6, %v7078_v39, %v7079_v62  ;;  %v7086_v39 = vrot.slane %v6975_v55, 5  ;;  %v9910_v55 = vld [vmem:[#allocation2 + $0x68] sm:$0x1] }
 0x462   : > { %v8499_v56 = vcombine.low %v7077_v60, %v7080_v29  ;;  %v7092_v32 = vrot.slane %v7090_v30, 4  ;;  %v6981_v29 = vsel %vm6420_vm3, %v9909_v24, %v11790_v28 }
 0x463   : > { %v7087_v7 = vsel %vm11518_vm6, %v7085_v59, %v7086_v39  ;;  %v7100_v59 = vrot.slane %v6981_v29, 5 }
 0x464   : > { %v8500_v62 = vcombine.low %v7084_v21, %v7087_v7  ;;  %v9915_v21 = vld [vmem:[#allocation2 + $0x88] sm:$0xf] }
 0x465   : > { %9356 = vmatmul.mubr.msk.bf16.gmra.mrb[28].mxu1 %vm384_vm2, %v8455_v17  ;;  %v6978_v17 = vsel %vm6420_vm3, %v9906_v18, %v11752_v45  ;;  %v6976_v45 = vsel %vm11467_vm0, %v6952_v31, %v11744_v2  ;;  %v6953_v2 = vld [vmem:[#allocation2 + $0x54] sm:$0xe]  ;;  %v6984_v31 = vsel %vm6420_vm3, %v9910_v55, %v11797_v22  ;;  %v6982_v18 = vsel %vm11467_vm0, %v6954_v51, %v11795_v3  ;;  %v9912_v22 = vld [vmem:[#allocation2 + $0x7c] sm:$0xf]  ;;  %v6955_v3 = vld [vmem:[#allocation2 + $0x6c] sm:$0xe] }
 0x466   : > { %9365 = vmatprep.mubr.msk.bf16.mxu1 %vm384_vm2, %v12335_v36  ;;  %v7093_v8 = vrot.slane %v6978_v17, 5  ;;  %v7097_v36 = vrot.slane %v6980_v53, 5  ;;  %v8479_v20 = vrot.slane %v6976_v45, 9  ;;  %v6979_v38 = vsel %vm11467_vm0, %v6953_v2, %v11786_v19 }
 0x467   : > { %v6989_v17 = vsel %vm6419_vm4, %v9912_v22, %v11815_v43  ;;  %v8480_v19 = vrot.slane %v6979_v38, 9  ;;  %v8481_v46 = vrot.slane %v6982_v18, 9  ;;  %v9913_v43 = vld [vmem:[#allocation2 + $0x74] sm:$0x1]  ;;  %v9918_v18 = vld [vmem:[#allocation2 + $0x98] sm:$0x1] }
 0x468   : > { %v7094_v47 = vsel %vm11518_vm6, %v7092_v32, %v7093_v8  ;;  %v7091_v40 = vsel %vm11518_vm6, %v8479_v20, %v7090_v30  ;;  %v7099_v33 = vrot.slane %v7097_v36, 4  ;;  %v7106_v30 = vrot.slane %v7104_v14, 4  ;;  %v6956_v8 = vld [vmem:[#allocation2 + $0x78] sm:$0xe]  ;;  %v9914_v20 = vld [vmem:[#allocation2 + $0x80] sm:$0x1] }
 0x469   : > { %v8501_v60 = vcombine.low %v7091_v40, %v7094_v47  ;;  %v7118_v53 = vrot.slane %v6989_v17, 5  ;;  %v7098_v39 = vsel %vm11518_vm6, %v8480_v19, %v7097_v36  ;;  %v7105_v15 = vsel %vm11518_vm6, %v8481_v46, %v7104_v14  ;;  %v9919_v19 = vld [vmem:[#allocation2 + $0xa0] sm:$0xf] }
 0x46a   : > { %v7101_v0 = vsel %vm11518_vm6, %v7099_v33, %v7100_v59  ;;  %v6987_v10 = vsel %vm6420_vm3, %v9913_v43, %v11830_v52  ;;  %v6990_v47 = vsel %vm6420_vm3, %v9914_v20, %v11837_v11  ;;  %v6985_v36 = vsel %vm11467_vm0, %v6955_v3, %v11826_v49  ;;  %v9916_v11 = vld [vmem:[#allocation2 + $0x94] sm:$0xf] }
 0x46b   : > { %v8502_v45 = vcombine.low %v7098_v39, %v7101_v0  ;;  %v7120_v14 = vrot.slane %v7118_v53, 4  ;;  %v6992_v52 = vsel %vm6419_vm4, %v9915_v21, %v11846_v26  ;;  %v7114_v2 = vrot.slane %v6987_v10, 5 }
 0x46c   : > { %v6995_v40 = vsel %vm6419_vm4, %v9916_v11, %v11855_v50  ;;  %v7121_v24 = vrot.slane %v6990_v47, 5  ;;  %v8482_v49 = vrot.slane %v6985_v36, 9  ;;  %v7125_v51 = vrot.slane %v6992_v52, 5  ;;  %v9917_v50 = vld [vmem:[#allocation2 + $0x8c] sm:$0x1] }
 0x46d   : > { %9366 = vmatmul.mubr.msk.bf16.vlgmr.msra.gmra.mrb[0].mxu1 %vm384_vm2, %v12336_v12  ;;  %v7107_v12 = vrot.slane %v6984_v31, 5  ;;  %v7132_v33 = vrot.slane %v6995_v40, 5  ;;  %v6996_v22 = vsel %vm6420_vm3, %v9918_v18, %v11877_v23  ;;  %v9920_v23 = vld [vmem:[#allocation2 + $0xac] sm:$0xf]  ;;  %v9922_v47 = vld [vmem:[#allocation2 + $0xb0] sm:$0x1] }
 0x46e   : > { %9369 = vmatprep.mubr.msk.bf16.mxu1 %vm384_vm2, %v8499_v56  ;;  %v9911_v56 = vld [vmem:[#allocation2 + $0x70] sm:$0xf]  ;;  %v7122_v26 = vsel %vm11518_vm6, %v7120_v14, %v7121_v24  ;;  %v7127_v59 = vrot.slane %v7125_v51, 4  ;;  %v7001_v46 = vsel %vm6419_vm4, %v9920_v23, %v11895_v6  ;;  %v9921_v6 = vld [vmem:[#allocation2 + $0xa4] sm:$0x1]  ;;  %v7002_v36 = vsel %vm6420_vm3, %v9922_v47, %v11917_v48 }
 0x46f   : > { %v6986_v28 = vsel %vm6419_vm4, %v9911_v56, %v11806_v44  ;;  %v7108_v44 = vsel %vm11518_vm6, %v7106_v30, %v7107_v12  ;;  %v6993_v30 = vsel %vm6420_vm3, %v9917_v50, %v11870_v25  ;;  %v6958_v56 = vld [vmem:[#allocation2 + $0x90] sm:$0xe]  ;;  %v7134_v12 = vrot.slane %v7132_v33, 4  ;;  %v9923_v52 = vld [vmem:[#allocation2 + $0xb8] sm:$0xf]  ;;  %v12339_v18 = vld [vmem:[#allocation4_spill] sm:$0xff] }
 0x470   : > { %v7111_v32 = vrot.slane %v6986_v28, 5  ;;  %v8503_v41 = vcombine.low %v7105_v15, %v7108_v44  ;;  %v6998_v25 = vsel %vm6419_vm4, %v9919_v19, %v11886_v54  ;;  %v7128_v0 = vrot.slane %v6993_v30, 5  ;;  %v9924_v48 = vld [vmem:[#allocation2 + $0xc4] sm:$0xf]  ;;  %v12340_v19 = vld [vmem:[#allocation6_spill] sm:$0xff] }
 0x471   : > { %v7135_v44 = vrot.slane %v6996_v22, 5  ;;  %v7139_v39 = vrot.slane %v6998_v25, 5  ;;  %v7007_v40 = vsel %vm6419_vm4, %v9924_v48, %v11935_v13  ;;  %v7149_v24 = vrot.slane %v7002_v36, 5  ;;  %v9925_v13 = vld [vmem:[#allocation2 + $0xbc] sm:$0x1] }
 0x472   : > { %v7113_v7 = vrot.slane %v7111_v32, 4  ;;  %v7112_v55 = vsel %vm11518_vm6, %v8482_v49, %v7111_v32  ;;  %v6994_v32 = vsel %vm11467_vm0, %v6958_v56, %v11875_v58  ;;  %v6959_v58 = vld [vmem:[#allocation2 + $0x9c] sm:$0xe]  ;;  %v9926_v56 = vld [vmem:[#allocation2 + $0xc8] sm:$0x1] }
 0x473   : > { %v8485_v3 = vrot.slane %v6994_v32, 9  ;;  %v7136_v54 = vsel %vm11518_vm6, %v7134_v12, %v7135_v44  ;;  %v7141_v20 = vrot.slane %v7139_v39, 4  ;;  %v6997_v14 = vsel %vm11467_vm0, %v6959_v58, %v11906_v57  ;;  %v9927_v12 = vld [vmem:[#allocation2 + $0xd0] sm:$0xf] }
 0x474   : > { %v7115_v29 = vsel %vm11518_vm6, %v7113_v7, %v7114_v2  ;;  %v8486_v57 = vrot.slane %v6997_v14, 9  ;;  %v8534_v14 = vld [vmem:[%s9998_s6 + $0x21] sm:$0xff] }
 0x475   : > { %9370 = vmatmul.mubr.msk.bf16.gmra.mrb[4].mxu1 %vm384_vm2, %v8500_v62  ;;  %v6988_v62 = vsel %vm11467_vm0, %v6956_v8, %v11835_v63  ;;  %v6957_v63 = vld [vmem:[#allocation2 + $0x84] sm:$0xe]  ;;  %v8504_v31 = vcombine.low %v7112_v55, %v7115_v29  ;;  %v7133_v10 = vsel %vm11518_vm6, %v8485_v3, %v7132_v33  ;;  %v6999_v8 = vsel %vm6420_vm3, %v9921_v6, %v11910_v5  ;;  %v6961_v33 = vld [vmem:[#allocation2 + $0xb4] sm:$0xe] }
 0x476   : > { %9373 = vmatprep.mubr.msk.bf16.mxu1 %vm384_vm2, %v8501_v60  ;;  %v8483_v60 = vrot.slane %v6988_v62, 9  ;;  %v6991_v17 = vsel %vm11467_vm0, %v6957_v63, %v11866_v9  ;;  %v8507_v7 = vcombine.low %v7133_v10, %v7136_v54  ;;  %v7004_v5 = vsel %vm6419_vm4, %v9923_v52, %v11926_v27  ;;  %v12337_v62 = vld [vmem:[#allocation3_spill] sm:$0xff] }
 0x477   : > { %v8484_v9 = vrot.slane %v6991_v17, 9  ;;  %v7142_v2 = vrot.slane %v6999_v8, 5  ;;  %v7153_v29 = vrot.slane %v7004_v5, 5  ;;  %v7003_v22 = vsel %vm11467_vm0, %v6961_v33, %v12339_v18  ;;  %v8535_v5 = vld [vmem:[%s9998_s6 + $0x31] sm:$0xff] }
 0x478   : > { %v7119_v38 = vsel %vm11518_vm6, %v8483_v60, %v7118_v53  ;;  %v7129_v53 = vsel %vm11518_vm6, %v7127_v59, %v7128_v0  ;;  %v7160_v60 = vrot.slane %v7007_v40, 5  ;;  %v8488_v23 = vrot.slane %v7003_v22, 9 }
 0x479   : > { %v8505_v28 = vcombine.low %v7119_v38, %v7122_v26  ;;  %v7126_v15 = vsel %vm11518_vm6, %v8484_v9, %v7125_v51  ;;  %v7143_v49 = vsel %vm11518_vm6, %v7141_v20, %v7142_v2  ;;  %v7140_v26 = vsel %vm11518_vm6, %v8486_v57, %v7139_v39  ;;  %v6962_v38 = vld [vmem:[#allocation2 + $0xc0] sm:$0xe]  ;;  %v6963_v39 = vld [vmem:[#allocation2 + $0xcc] sm:$0xe] }
 0x47a   : > { %v8506_v43 = vcombine.low %v7126_v15, %v7129_v53  ;;  %v8508_v55 = vcombine.low %v7140_v26, %v7143_v49  ;;  %v7155_v30 = vrot.slane %v7153_v29, 4  ;;  %v7162_v17 = vrot.slane %v7160_v60, 4  ;;  %v8536_v49 = vld [vmem:[%s9998_s6 + $0x39] sm:$0xff] }
 0x47b   : > { %v7006_v0 = vsel %vm11467_vm0, %v6962_v38, %v11955_v35  ;;  %v7154_v1 = vsel %vm11518_vm6, %v8488_v23, %v7153_v29 }
 0x47c   : > { %v8489_v9 = vrot.slane %v7006_v0, 9 }
 0x47d   : > { %9374 = vmatmul.mubr.msk.bf16.gmra.mrb[8].mxu1 %vm384_vm2, %v8502_v45  ;;  %v7146_v45 = vrot.slane %v7001_v46, 5 }
 0x47e   : > { %9377 = vmatprep.mubr.msk.bf16.mxu1 %vm384_vm2, %v8503_v41  ;;  %v6960_v41 = vld [vmem:[#allocation2 + $0xa8] sm:$0xe]  ;;  %v7161_v54 = vsel %vm11518_vm6, %v8489_v9, %v7160_v60 }
 0x47f   : > { %v7148_v21 = vrot.slane %v7146_v45, 4  ;;  %v7000_v11 = vsel %vm11467_vm0, %v6960_v41, %v12337_v62 }
 0x480   : > { %v8487_v51 = vrot.slane %v7000_v11, 9 }
 0x481   : > { %v7150_v27 = vsel %vm11518_vm6, %v7148_v21, %v7149_v24 }
 0x482   : > { %v7147_v63 = vsel %vm11518_vm6, %v8487_v51, %v7146_v45  ;;  %v9928_v45 = vld [vmem:[#allocation2 + $0xd4] sm:$0x1] }
 0x483   : > { %v8509_v50 = vcombine.low %v7147_v63, %v7150_v27  ;;  %v7011_v35 = vsel %vm6420_vm3, %v9928_v45, %v11985_v61  ;;  %v8537_v63 = vld [vmem:[%s9998_s6 + $0x49] sm:$0xff] }
 0x484   : > { %v7170_v10 = vrot.slane %v7011_v35, 5 }
 0x485   : > { %9378 = vmatmul.mubr.msk.bf16.gmra.mrb[12].mxu1 %vm384_vm2, %v8504_v31  ;;  %v7005_v31 = vsel %vm6420_vm3, %v9925_v13, %v11950_v37  ;;  %v7010_v37 = vsel %vm6419_vm4, %v9927_v12, %v12340_v19 }
 0x486   : > { %9381 = vmatprep.mubr.msk.bf16.mxu1 %vm384_vm2, %v8505_v28  ;;  %v12338_v28 = vld [vmem:[#allocation5_spill] sm:$0xff]  ;;  %v7156_v25 = vrot.slane %v7005_v31, 5  ;;  %v7167_v44 = vrot.slane %v7010_v37, 5 }
 0x487   : > { %v7008_v59 = vsel %vm6420_vm3, %v9926_v56, %v12338_v28  ;;  %v8538_v56 = vld [vmem:[%s9998_s6 + $0x51] sm:$0xff]  ;;  %v8539_v37 = vld [vmem:[%s9998_s6 + $0x61] sm:$0xff] }
 0x488   : > { %v7163_v32 = vrot.slane %v7008_v59, 5  ;;  %v7157_v46 = vsel %vm11518_vm6, %v7155_v30, %v7156_v25  ;;  %v7169_v58 = vrot.slane %v7167_v44, 4 }
 0x489   : > { %v8510_v3 = vcombine.low %v7154_v1, %v7157_v46 }
 0x48a   : > { %v7164_v53 = vsel %vm11518_vm6, %v7162_v17, %v7163_v32  ;;  %v7171_v8 = vsel %vm11518_vm6, %v7169_v58, %v7170_v10  ;;  %v8540_v32 = vld [vmem:[%s9998_s6 + $0x69] sm:$0xff]  ;;  %v8542_v10 = vld [vmem:[%s9998_s6 + $0x81] sm:$0xff] }
 0x48b   : > { %v8511_v15 = vcombine.low %v7161_v54, %v7164_v53  ;;  %v8541_v54 = vld [vmem:[%s9998_s6 + $0x79] sm:$0xff] }
 0x48d   : > { %9382 = vmatmul.mubr.msk.bf16.gmra.mrb[16].mxu1 %vm384_vm2, %v8506_v43  ;;  %v7009_v43 = vsel %vm11467_vm0, %v6963_v39, %v11981_v34 }
 0x48e   : > { %9385 = vmatprep.mubr.msk.bf16.mxu1 %vm384_vm2, %v8507_v7  ;;  %v8490_v6 = vrot.slane %v7009_v43, 9  ;;  %v8533_v7 = vld [vmem:[%s9998_s6 + $0x19] sm:$0xff] }
 0x490   : > { %v7168_v4 = vsel %vm11518_vm6, %v8490_v6, %v7167_v44 }
 0x491   : > { %v8512_v61 = vcombine.low %v7168_v4, %v7171_v8 }
 0x495   : > { %9386 = vmatmul.mubr.msk.bf16.gmra.mrb[20].mxu1 %vm384_vm2, %v8508_v55 }
 0x496   : > { %9389 = vmatprep.mubr.msk.bf16.mxu1 %vm384_vm2, %v8509_v50 }
 0x49d   : > { %9390 = vmatmul.mubr.msk.bf16.gmra.mrb[24].mxu1 %vm384_vm2, %v8510_v3 }
 0x49e   : > { %9393 = vmatprep.mubr.msk.bf16.mxu1 %vm384_vm2, %v8511_v15 }
 0x4a5   : > { %9394 = vmatmul.mubr.msk.bf16.gmra.mrb[28].mxu1 %vm384_vm2, %v8512_v61  ;;  %v8549_v61 = vld [vmem:[%s9998_s6 + $0xd9] sm:$0xff] }
 0x540   : > { %v9367_v34 = vpop.f32.mrb[0].mxu1 }
 0x541   : > { %v7329_v41 = vpop.f32.mrb[1].mxu1  ;;  %v7497_v16 = vadd.f32 %v9367_v34, %v12207_v42 }
 0x542   : > { %v7495_v20 = vadd.f32 %v12207_v42, %v7329_v41  ;;  %v9368_v47 = vpop.f32.mrb[2].mxu1 }
 0x543   : > { %v7332_v36 = vpop.f32.mrb[3].mxu1  ;;  %v7561_v11 = vadd.f32 %v8535_v5, %v7497_v16  ;;  %v7498_v48 = vadd.f32 %v9368_v47, %v12207_v42 }
 0x544   : > { %v7559_v21 = vadd.f32 %v8533_v7, %v7495_v20  ;;  %v7496_v52 = vadd.f32 %v12207_v42, %v7332_v36  ;;  %v8550_v36 = vld [vmem:[%s9998_s6 + $0xe1] sm:$0xff] }
 0x545   : > { %v7562_v60 = vadd.f32 %v8536_v49, %v7498_v48  ;;  %v7625_v55 = vmul.f32 0.01, %v7561_v11  ;;  %vm7593_vm8 = vcmp.ge.f32.partialorder %v7561_v11, 0.0 }
 0x546   : > { %v7560_v2 = vadd.f32 %v8534_v14, %v7496_v52  ;;  %vm7591_vm2 = vcmp.ge.f32.partialorder %v7559_v21, 0.0  ;;  %v7623_v62 = vmul.f32 0.01, %v7559_v21 }
 0x547   : > { %v7657_v50 = vsel %vm7593_vm8, %v7561_v11, %v7625_v55  ;;  %v7626_v30 = vmul.f32 0.01, %v7562_v60  ;;  %vm7594_vm3 = vcmp.ge.f32.partialorder %v7562_v60, 0.0  ;;  %v8552_v55 = vld [vmem:[%s9998_s6 + $0xf9] sm:$0xff] }
 0x548   : > { %v9371_v40 = vpop.f32.mrb[4].mxu1  ;;  %v7655_v24 = vsel %vm7591_vm2, %v7559_v21, %v7623_v62  ;;  %v7624_v57 = vmul.f32 0.01, %v7560_v2  ;;  %vm7592_vm7 = vcmp.ge.f32.partialorder %v7560_v2, 0.0  ;;  %v8543_v21 = vld [vmem:[%s9998_s6 + $0x91] sm:$0xff] }
 0x549   : > { %7687 = vxpose.xlu0.b32.start [1/16] (narrow) %v7655_v24, 48  ;;  %v7345_v29 = vpop.f32.mrb[5].mxu1  ;;  %v7501_v22 = vadd.f32 %v9371_v40, %v12207_v42  ;;  %v7658_v12 = vsel %vm7594_vm3, %v7562_v60, %v7626_v30  ;;  %v8551_v62 = vld [vmem:[%s9998_s6 + $0xf1] sm:$0xff] }
 0x54a   : > { %v9372_v51 = vpop.f32.mrb[6].mxu1  ;;  %v7499_v26 = vadd.f32 %v12207_v42, %v7345_v29  ;;  %v7656_v33 = vsel %vm7592_vm7, %v7560_v2, %v7624_v57  ;;  %v8544_v57 = vld [vmem:[%s9998_s6 + $0x99] sm:$0xff] }
 0x54b   : > { %v7348_v27 = vpop.f32.mrb[7].mxu1  ;;  %v7502_v25 = vadd.f32 %v9372_v51, %v12207_v42  ;;  %v7565_v0 = vadd.f32 %v8539_v37, %v7501_v22 }
 0x54c   : > { %v7563_v13 = vadd.f32 %v8537_v63, %v7499_v26  ;;  %v7500_v31 = vadd.f32 %v12207_v42, %v7348_v27 }
 0x54d   : > { %7688 = vxpose.xlu0.b32.cont [2/16] (narrow) %v7656_v33, 48  ;;  %v7566_v1 = vadd.f32 %v8540_v32, %v7502_v25  ;;  %v7629_v35 = vmul.f32 0.01, %v7565_v0  ;;  %vm7597_vm11 = vcmp.ge.f32.partialorder %v7565_v0, 0.0 }
 0x54e   : > { %v7564_v17 = vadd.f32 %v8538_v56, %v7500_v31  ;;  %v7627_v19 = vmul.f32 0.01, %v7563_v13  ;;  %vm7595_vm9 = vcmp.ge.f32.partialorder %v7563_v13, 0.0 }
 0x54f   : > { %v7630_v43 = vmul.f32 0.01, %v7566_v1  ;;  %v7661_v8 = vsel %vm7597_vm11, %v7565_v0, %v7629_v35  ;;  %vm7598_vm12 = vcmp.ge.f32.partialorder %v7566_v1, 0.0  ;;  %v8546_v0 = vld [vmem:[%s9998_s6 + $0xb1] sm:$0xff] }
 0x550   : > { %v9375_v38 = vpop.f32.mrb[8].mxu1  ;;  %v7659_v46 = vsel %vm7595_vm9, %v7563_v13, %v7627_v19  ;;  %v7628_v44 = vmul.f32 0.01, %v7564_v17  ;;  %vm7596_vm10 = vcmp.ge.f32.partialorder %v7564_v17, 0.0 }
 0x551   : > { %7689 = vxpose.xlu0.b32.cont [3/16] (narrow) %v7657_v50, 48  ;;  %v7361_v28 = vpop.f32.mrb[9].mxu1  ;;  %v7505_v7 = vadd.f32 %v9375_v38, %v12207_v42  ;;  %v7662_v14 = vsel %vm7598_vm12, %v7566_v1, %v7630_v43 }
 0x552   : > { %v9376_v59 = vpop.f32.mrb[10].mxu1  ;;  %v7503_v39 = vadd.f32 %v12207_v42, %v7361_v28  ;;  %v7660_v45 = vsel %vm7596_vm10, %v7564_v17, %v7628_v44  ;;  %v8545_v28 = vld [vmem:[%s9998_s6 + $0xa9] sm:$0xff] }
 0x553   : > { %v7364_v18 = vpop.f32.mrb[11].mxu1  ;;  %v7506_v11 = vadd.f32 %v9376_v59, %v12207_v42  ;;  %v7569_v24 = vadd.f32 %v8543_v21, %v7505_v7 }
 0x554   : > { %v7567_v15 = vadd.f32 %v8541_v54, %v7503_v39  ;;  %v7504_v58 = vadd.f32 %v12207_v42, %v7364_v18  ;;  %v8554_v54 = vld [vmem:[%s9998_s6 + $0x111] sm:$0xff] }
 0x555   : > { %7690 = vxpose.xlu0.b32.cont [4/16] (narrow) %v7658_v12, 48  ;;  %v7570_v13 = vadd.f32 %v8544_v57, %v7506_v11  ;;  %vm7601_vm0 = vcmp.ge.f32.partialorder %v7569_v24, 0.0  ;;  %v7633_v56 = vmul.f32 0.01, %v7569_v24  ;;  %v8553_v12 = vld [vmem:[%s9998_s6 + $0x109] sm:$0xff] }
 0x556   : > { %v7568_v20 = vadd.f32 %v8542_v10, %v7504_v58  ;;  %v7631_v16 = vmul.f32 0.01, %v7567_v15  ;;  %vm7599_vm5 = vcmp.ge.f32.partialorder %v7567_v15, 0.0 }
 0x557   : > { %v7634_v37 = vmul.f32 0.01, %v7570_v13  ;;  %v7665_v32 = vsel %vm7601_vm0, %v7569_v24, %v7633_v56  ;;  %vm7602_vm14 = vcmp.ge.f32.partialorder %v7570_v13, 0.0 }
 0x558   : > { %v12225_v23 = vpop.f32.mrb[12].mxu1  ;;  %v7663_v49 = vsel %vm7599_vm5, %v7567_v15, %v7631_v16  ;;  %vm7600_vm1 = vcmp.ge.f32.partialorder %v7568_v20, 0.0  ;;  %v7632_v29 = vmul.f32 0.01, %v7568_v20  ;;  %v8548_v16 = vld [vmem:[%s9998_s6 + $0xc9] sm:$0xff] }
 0x559   : > { %7691 = vxpose.xlu0.b32.cont [5/16] (narrow) %v7659_v46, 48  ;;  %v7377_v9 = vpop.f32.mrb[13].mxu1  ;;  %v7666_v10 = vsel %vm7602_vm14, %v7570_v13, %v7634_v37 }
 0x55a   : > { %v12227_v53 = vpop.f32.mrb[14].mxu1  ;;  %v7507_v38 = vadd.f32 %v12207_v42, %v7377_v9  ;;  %v7664_v30 = vsel %vm7600_vm1, %v7568_v20, %v7632_v29 }
 0x55b   : > { %v12230_v3 = vpop.f32.mrb[15].mxu1 }
 0x55c   : > { %v7508_v19 = vadd.f32 %v12207_v42, %v12230_v3  ;;  %v7571_v25 = vadd.f32 %v8545_v28, %v7507_v38  ;;  %v7509_v3 = vadd.f32 %v12225_v23, %v12207_v42 }
 0x55d   : > { %7692 = vxpose.xlu0.b32.cont [6/16] (narrow) %v7660_v45, 48 }
 0x55e   : > { %v7572_v15 = vadd.f32 %v8546_v0, %v7508_v19  ;;  %vm7603_vm2 = vcmp.ge.f32.partialorder %v7571_v25, 0.0  ;;  %v8560_v0 = vld [vmem:[%s9998_s6 + $0x159] sm:$0xff] }
 0x560   : > { %v9383_v6 = vpop.f32.mrb[16].mxu1  ;;  %vm7604_vm8 = vcmp.ge.f32.partialorder %v7572_v15, 0.0 }
 0x561   : > { %7693 = vxpose.xlu0.b32.cont [7/16] (narrow) %v7661_v8, 48  ;;  %v7393_v4 = vpop.f32.mrb[17].mxu1  ;;  %v7513_v52 = vadd.f32 %v9383_v6, %v12207_v42 }
 0x562   : > { %v7511_v34 = vadd.f32 %v12207_v42, %v7393_v4  ;;  %v9384_v41 = vpop.f32.mrb[18].mxu1 }
 0x563   : > { %v7396_v47 = vpop.f32.mrb[19].mxu1  ;;  %v7577_v51 = vadd.f32 %v8551_v62, %v7513_v52  ;;  %v7514_v27 = vadd.f32 %v9384_v41, %v12207_v42  ;;  %v7636_v52 = vmul.f32 0.01, %v7572_v15 }
 0x564   : > { %v7575_v5 = vadd.f32 %v8549_v61, %v7511_v34  ;;  %v7512_v2 = vadd.f32 %v12207_v42, %v7396_v47  ;;  %v7635_v61 = vmul.f32 0.01, %v7571_v25  ;;  %v8547_v34 = vld [vmem:[%s9998_s6 + $0xc1] sm:$0xff] }
 0x565   : > { %7694 = vxpose.xlu0.b32.cont [8/16] (narrow) %v7662_v14, 48  ;;  %v7578_v59 = vadd.f32 %v8552_v55, %v7514_v27  ;;  %v7641_v17 = vmul.f32 0.01, %v7577_v51  ;;  %vm7609_vm13 = vcmp.ge.f32.partialorder %v7577_v51, 0.0  ;;  %v8555_v47 = vld [vmem:[%s9998_s6 + $0x121] sm:$0xff]  ;;  %v7573_v14 = vadd.f32 %v8547_v34, %v7509_v3 }
 0x566   : > { %v7576_v48 = vadd.f32 %v8550_v36, %v7512_v2  ;;  %vm7607_vm15 = vcmp.ge.f32.partialorder %v7575_v5, 0.0  ;;  %v7639_v40 = vmul.f32 0.01, %v7575_v5  ;;  %v7510_v36 = vadd.f32 %v12227_v53, %v12207_v42 }
 0x567   : > { %v7673_v1 = vsel %vm7609_vm13, %v7577_v51, %v7641_v17  ;;  %v7642_v39 = vmul.f32 0.01, %v7578_v59  ;;  %vm7610_vm6 = vcmp.ge.f32.partialorder %v7578_v59, 0.0  ;;  %v7667_v21 = vsel %vm7603_vm2, %v7571_v25, %v7635_v61 }
 0x568   : > { %v9387_v60 = vpop.f32.mrb[20].mxu1  ;;  %v7671_v26 = vsel %vm7607_vm15, %v7575_v5, %v7639_v40  ;;  %v7640_v33 = vmul.f32 0.01, %v7576_v48  ;;  %vm7608_vm4 = vcmp.ge.f32.partialorder %v7576_v48, 0.0  ;;  %v8556_v40 = vld [vmem:[%s9998_s6 + $0x129] sm:$0xff]  ;;  %v7574_v53 = vadd.f32 %v8548_v16, %v7510_v36 }
 0x569   : > { %7695 = vxpose.xlu0.b32.cont [9/16] (narrow) %v7663_v49, 48  ;;  %7719 = vxpose.xlu1.b32.start [1/16] (narrow) %v7671_v26, 48  ;;  %v7409_v63 = vpop.f32.mrb[21].mxu1  ;;  %v7517_v6 = vadd.f32 %v9387_v60, %v12207_v42  ;;  %v7674_v23 = vsel %vm7610_vm6, %v7578_v59, %v7642_v39  ;;  %v7668_v60 = vsel %vm7604_vm8, %v7572_v15, %v7636_v52  ;;  %vm7605_vm9 = vcmp.ge.f32.partialorder %v7573_v14, 0.0  ;;  %v8558_v59 = vld [vmem:[%s9998_s6 + $0x141] sm:$0xff] }
 0x56a   : > { %v9388_v31 = vpop.f32.mrb[22].mxu1  ;;  %v7515_v18 = vadd.f32 %v12207_v42, %v7409_v63  ;;  %v7672_v22 = vsel %vm7608_vm4, %v7576_v48, %v7640_v33  ;;  %v7637_v26 = vmul.f32 0.01, %v7573_v14  ;;  %v7638_v56 = vmul.f32 0.01, %v7574_v53 }
 0x56b   : > { %v7412_v50 = vpop.f32.mrb[23].mxu1  ;;  %v7581_v5 = vadd.f32 %v8555_v47, %v7517_v6  ;;  %v7518_v2 = vadd.f32 %v9388_v31, %v12207_v42  ;;  %v8557_v31 = vld [vmem:[%s9998_s6 + $0x139] sm:$0xff]  ;;  %vm7606_vm11 = vcmp.ge.f32.partialorder %v7574_v53, 0.0 }
 0x56c   : > { %v7579_v46 = vadd.f32 %v8553_v12, %v7515_v18  ;;  %v7516_v44 = vadd.f32 %v12207_v42, %v7412_v50  ;;  %v7669_v38 = vsel %vm7605_vm9, %v7573_v14, %v7637_v26  ;;  %v8559_v12 = vld [vmem:[%s9998_s6 + $0x151] sm:$0xff] }
 0x56d   : > { %7696 = vxpose.xlu0.b32.cont [10/16] (narrow) %v7664_v30, 48  ;;  %7720 = vxpose.xlu1.b32.cont [2/16] (narrow) %v7672_v22, 48  ;;  %v7582_v33 = vadd.f32 %v8556_v40, %v7518_v2  ;;  %v7645_v13 = vmul.f32 0.01, %v7581_v5  ;;  %vm7613_vm10 = vcmp.ge.f32.partialorder %v7581_v5, 0.0 }
 0x56e   : > { %v7580_v41 = vadd.f32 %v8554_v54, %v7516_v44  ;;  %v7643_v20 = vmul.f32 0.01, %v7579_v46  ;;  %vm7611_vm7 = vcmp.ge.f32.partialorder %v7579_v46, 0.0 }
 0x56f   : > { %v7677_v30 = vsel %vm7613_vm10, %v7581_v5, %v7645_v13  ;;  %v7646_v28 = vmul.f32 0.01, %v7582_v33  ;;  %vm7614_vm12 = vcmp.ge.f32.partialorder %v7582_v33, 0.0 }
 0x570   : > { %v9391_v9 = vpop.f32.mrb[24].mxu1  ;;  %v7675_v11 = vsel %vm7611_vm7, %v7579_v46, %v7643_v20  ;;  %v7644_v48 = vmul.f32 0.01, %v7580_v41  ;;  %vm7612_vm3 = vcmp.ge.f32.partialorder %v7580_v41, 0.0 }
 0x571   : > { %v12258_v45 = vadd.f32 %v9391_v9, %v12207_v42  ;;  %7697 = vxpose.xlu0.b32.cont [11/16] (narrow) %v7665_v32, 48  ;;  %7721 = vxpose.xlu1.b32.cont [3/16] (narrow) %v7673_v1, 48  ;;  %v7425_v35 = vpop.f32.mrb[25].mxu1  ;;  %v7678_v22 = vsel %vm7614_vm12, %v7582_v33, %v7646_v28  ;;  %v8561_v9 = vld [vmem:[%s9998_s6 + $0x169] sm:$0xff] }
 0x572   : > { %v7519_v58 = vadd.f32 %v12207_v42, %v7425_v35  ;;  %v9392_v43 = vpop.f32.mrb[26].mxu1  ;;  %v7676_v63 = vsel %vm7612_vm3, %v7580_v41, %v7644_v48  ;;  %v8562_v35 = vld [vmem:[%s9998_s6 + $0x171] sm:$0xff] }
 0x573   : > { %v12266_v8 = vadd.f32 %v9392_v43, %v12207_v42  ;;  %v7428_v4 = vpop.f32.mrb[27].mxu1  ;;  %v7585_v19 = vadd.f32 %v8559_v12, %v12258_v45 }
 0x574   : > { %v7520_v7 = vadd.f32 %v12207_v42, %v7428_v4  ;;  %v7583_v50 = vadd.f32 %v8557_v31, %v7519_v58  ;;  %v8563_v58 = vld [vmem:[%s9998_s6 + $0x181] sm:$0xff] }
 0x575   : > { %7698 = vxpose.xlu0.b32.cont [12/16] (narrow) %v7666_v10, 48  ;;  %7722 = vxpose.xlu1.b32.cont [4/16] (narrow) %v7674_v23, 48  ;;  %v7586_v32 = vadd.f32 %v8560_v0, %v12266_v8  ;;  %v7649_v44 = vmul.f32 0.01, %v7585_v19  ;;  %vm7617_vm1 = vcmp.ge.f32.partialorder %v7585_v19, 0.0  ;;  %v8564_v8 = vld [vmem:[%s9998_s6 + $0x189] sm:$0xff] }
 0x576   : > { %v7584_v18 = vadd.f32 %v8558_v59, %v7520_v7  ;;  %v7647_v17 = vmul.f32 0.01, %v7583_v50  ;;  %vm7615_vm5 = vcmp.ge.f32.partialorder %v7583_v50, 0.0 }
 0x577   : > { %v7681_v39 = vsel %vm7617_vm1, %v7585_v19, %v7649_v44  ;;  %v7650_v54 = vmul.f32 0.01, %v7586_v32  ;;  %vm7618_vm4 = vcmp.ge.f32.partialorder %v7586_v32, 0.0 }
 0x578   : > { %v9395_v62 = vpop.f32.mrb[28].mxu1  ;;  %v7679_v37 = vsel %vm7615_vm5, %v7583_v50, %v7647_v17  ;;  %v7648_v25 = vmul.f32 0.01, %v7584_v18  ;;  %vm7616_vm15 = vcmp.ge.f32.partialorder %v7584_v18, 0.0 }
 0x579   : > { %v12277_v24 = vadd.f32 %v9395_v62, %v12207_v42  ;;  %7699 = vxpose.xlu0.b32.cont [13/16] (narrow) %v7667_v21, 48  ;;  %7723 = vxpose.xlu1.b32.cont [5/16] (narrow) %v7675_v11, 48  ;;  %v7441_v57 = vpop.f32.mrb[29].mxu1  ;;  %v7682_v3 = vsel %vm7618_vm4, %v7586_v32, %v7650_v54 }
 0x57a   : > { %v7523_v49 = vadd.f32 %v12207_v42, %v7441_v57  ;;  %v9396_v29 = vpop.f32.mrb[30].mxu1  ;;  %v7680_v46 = vsel %vm7616_vm15, %v7584_v18, %v7648_v25 }
 0x57b   : > { %v7526_v51 = vadd.f32 %v9396_v29, %v12207_v42  ;;  %v7444_v27 = vpop.f32.mrb[31].mxu1  ;;  %v7589_v43 = vadd.f32 %v8563_v58, %v12277_v24 }
 0x57c   : > { %v7524_v55 = vadd.f32 %v12207_v42, %v7444_v27  ;;  %v7670_v42 = vsel %vm7606_vm11, %v7574_v53, %v7638_v56  ;;  %v7587_v1 = vadd.f32 %v8561_v9, %v7523_v49 }
 0x57d   : > { %7700 = vxpose.xlu0.b32.cont [14/16] (narrow) %v7668_v60, 48  ;;  %7724 = vxpose.xlu1.b32.cont [6/16] (narrow) %v7676_v63, 48  ;;  %v7590_v4 = vadd.f32 %v8564_v8, %v7526_v51  ;;  %v7653_v34 = vmul.f32 0.01, %v7589_v43  ;;  %vm7621_vm14 = vcmp.ge.f32.partialorder %v7589_v43, 0.0 }
 0x57e   : > { %v7588_v45 = vadd.f32 %v8562_v35, %v7524_v55  ;;  %v7651_v15 = vmul.f32 0.01, %v7587_v1  ;;  %vm7619_vm0 = vcmp.ge.f32.partialorder %v7587_v1, 0.0 }
 0x57f   : > { %v7685_v41 = vsel %vm7621_vm14, %v7589_v43, %v7653_v34  ;;  %v7654_v7 = vmul.f32 0.01, %v7590_v4  ;;  %vm7622_vm6 = vcmp.ge.f32.partialorder %v7590_v4, 0.0 }
 0x580   : > { %v7683_v10 = vsel %vm7619_vm0, %v7587_v1, %v7651_v15  ;;  %v7652_v6 = vmul.f32 0.01, %v7588_v45  ;;  %vm7620_vm13 = vcmp.ge.f32.partialorder %v7588_v45, 0.0 }
 0x581   : > { %7701 = vxpose.xlu0.b32.cont [15/16] (narrow) %v7669_v38, 48  ;;  %7725 = vxpose.xlu1.b32.cont [7/16] (narrow) %v7677_v30, 48  ;;  %v7686_v23 = vsel %vm7622_vm6, %v7590_v4, %v7654_v7 }
 0x582   : > { %v7684_v61 = vsel %vm7620_vm13, %v7588_v45, %v7652_v6 }
 0x585   : > { %7702 = vxpose.xlu0.b32.end [16/16] (narrow) %v7670_v42, 48  ;;  %7726 = vxpose.xlu1.b32.cont [8/16] (narrow) %v7678_v22, 48 }
 0x589   : > { %7727 = vxpose.xlu1.b32.cont [9/16] (narrow) %v7679_v37, 48 }
 0x58d   : > { %7728 = vxpose.xlu1.b32.cont [10/16] (narrow) %v7680_v46, 48 }
 0x591   : > { %7729 = vxpose.xlu1.b32.cont [11/16] (narrow) %v7681_v39, 48 }
 0x595   : > { %7730 = vxpose.xlu1.b32.cont [12/16] (narrow) %v7682_v3, 48 }
 0x599   : > { %7731 = vxpose.xlu1.b32.cont [13/16] (narrow) %v7683_v10, 48 }
 0x59d   : > { %7732 = vxpose.xlu1.b32.cont [14/16] (narrow) %v7684_v61, 48 }
 0x5a1   : > { %7733 = vxpose.xlu1.b32.cont [15/16] (narrow) %v7685_v41, 48 }
 0x5a5   : > { %7734 = vxpose.xlu1.b32.end [16/16] (narrow) %v7686_v23, 48 }
 0x5c9   : > { %v7703_v20 = vpop.trf.xlu0 }
 0x5ca   : > { %7751 = vst [vmem:[%s224_s28] sm:$0xff] %v7703_v20 }
 0x5cd   : > { %v7704_v47 = vpop.trf.xlu0 }
 0x5ce   : > { %7753 = vst [vmem:[%s224_s28 + $0x10] sm:$0xff] %v7704_v47 }
 0x5d1   : > { %v7705_v36 = vpop.trf.xlu0 }
 0x5d2   : > { %7755 = vst [vmem:[%s224_s28 + $0x20] sm:$0xff] %v7705_v36 }
 0x5d5   : > { %v7706_v14 = vpop.trf.xlu0 }
 0x5d6   : > { %7757 = vst [vmem:[%s224_s28 + $0x30] sm:$0xff] %v7706_v14 }
 0x5d9   : > { %v7707_v16 = vpop.trf.xlu0 }
 0x5da   : > { %7759 = vst [vmem:[%s224_s28 + $0x40] sm:$0xff] %v7707_v16 }
 0x5dd   : > { %v7708_v21 = vpop.trf.xlu0 }
 0x5de   : > { %7761 = vst [vmem:[%s224_s28 + $0x50] sm:$0x7f] %v7708_v21 }
 0x5e9   : > { %v7735_v52 = vpop.trf.xlu1 }
 0x5ea   : > { %7752 = vst [vmem:[%s224_s28 + $0x8] sm:$0xff] %v7735_v52 }
 0x5ed   : > { %v7736_v5 = vpop.trf.xlu1 }
 0x5ee   : > { %7754 = vst [vmem:[%s224_s28 + $0x18] sm:$0xff] %v7736_v5 }
 0x5f1   : > { %v7737_v2 = vpop.trf.xlu1 }
 0x5f2   : > { %7756 = vst [vmem:[%s224_s28 + $0x28] sm:$0xff] %v7737_v2 }
 0x5f5   : > { %v7738_v62 = vpop.trf.xlu1 }
 0x5f6   : > { %7758 = vst [vmem:[%s224_s28 + $0x38] sm:$0xff] %v7738_v62 }
 0x5f9   : > { %v7739_v11 = vpop.trf.xlu1 }
 0x5fa   : > { %7760 = vst [vmem:[%s224_s28 + $0x48] sm:$0xff] %v7739_v11 }
 0x5fd   : > { %v7740_v48 = vpop.trf.xlu1 }
 0x5fe   : > { %7762 = vst [vmem:[%s224_s28 + $0x58] sm:$0x7f] %v7740_v48 }
 0x5ff PF: > { %s15_s18 = sadd.s32 1, %s9935_s18  }
 0x600   : > { %p12_p4 = scmp.ge.s32.totalorder %s15_s18, 4  }
 0x602   :  { %14 = sbr.rel (!%p12_p4) target bundleno = 1 (0x1), region = 86 }

</bundles_post_ra>
